<compile_context>
chip_gen: v6e
topology: v6e:2x2x1
jax: 0.10.0
libtpu: 0.0.40
codegen_flags: <defaults>
</compile_context>

<pallas_src>
import functools

import jax
import jax.numpy as jnp
from jax import lax
from jax.experimental import pallas as pl
from jax.experimental.pallas import tpu as pltpu


_COL0 = 8  # sublane-aligned column offset of the valid region in the h1 scratch


# ----------------------------------------------------------------------------
# In-kernel helpers
# ----------------------------------------------------------------------------
def _parity_offset(p, k):
    """Source index 2a + p + k - 1 == 2*(a + d) + q, with q in {0, 1}."""
    u = p + k - 1
    q = u % 2
    d = (u - q) // 2
    return q, d


def _conv3x3_parity(src_ref, w_ref, row0, col0, tb, hh, wh):
    """3x3 'same' conv on a parity-split, zero-padded source held in VMEM.

    src_ref : (2, 2, tb, R, S, cin) ref; valid data at rows [row0, row0+hh) and
              cols [col0, col0+wh), with a zero halo one row/col around it.
    w_ref   : (9, cin, cout) ref, tap index = 3*ky + kx.
    Returns : (4*tb*hh*wh, cout) f32 value, rows ordered (p, s, t, a, b).
    """
    cin = src_ref.shape[-1]
    cout = w_ref.shape[-1]
    m = tb * hh * wh
    acc = jnp.zeros((4 * m, cout), jnp.float32)
    for ky in range(3):
        for kx in range(3):
            parts = []
            for p in range(2):
                qy, dy = _parity_offset(p, ky)
                for s in range(2):
                    qx, dx = _parity_offset(s, kx)
                    tap = src_ref[qy, qx, :,
                                  row0 + dy:row0 + dy + hh,
                                  col0 + dx:col0 + dx + wh, :]
                    parts.append(tap.reshape(m, cin))
            lhs = jnp.concatenate(parts, axis=0)          # (4*m, cin), M = TB*H*W
            acc = acc + jnp.dot(lhs, w_ref[3 * ky + kx],
                                preferred_element_type=jnp.float32)
    return acc


# ----------------------------------------------------------------------------
# Fused kernels
# ----------------------------------------------------------------------------
def _encoder_block_kernel(x_ref, w1_ref, b1_ref, w2_ref, b2_ref, wd_ref, bd_ref,
                          skip_ref, down_ref, h1_ref,
                          *, tb, hh, wh, cout, compute_dtype):
    m = tb * hh * wh
    cols = h1_ref.shape[4]

    # Zero ONLY the 4 thin halo strips of the h1 scratch (the interior is fully
    # overwritten below; no full-scratch re-zeroing; megacore-safe).
    zr = jnp.zeros((2, 2, tb, 1, cols, cout), h1_ref.dtype)
    h1_ref[:, :, :, 0:1, :, :] = zr
    h1_ref[:, :, :, hh + 1:hh + 2, :, :] = zr
    zc = jnp.zeros((2, 2, tb, hh + 2, 1, cout), h1_ref.dtype)
    h1_ref[:, :, :, :, _COL0 - 1:_COL0, :] = zc
    h1_ref[:, :, :, :, _COL0 + wh:_COL0 + wh + 1, :] = zc

    # conv1 + bias + ReLU (input block is pre-padded & parity-split by wrapper)
    acc1 = _conv3x3_parity(x_ref, w1_ref, 1, 1, tb, hh, wh)
    h1 = jnp.maximum(acc1 + b1_ref[...], 0.0)
    h1_ref[:, :, :, 1:1 + hh, _COL0:_COL0 + wh, :] = (
        h1.reshape(2, 2, tb, hh, wh, cout).astype(h1_ref.dtype))

    # conv2 + bias + ReLU (h1 never leaves VMEM)
    acc2 = _conv3x3_parity(h1_ref, w2_ref, 1, _COL0, tb, hh, wh)
    skip = jnp.maximum(acc2 + b2_ref[...], 0.0)
    skip_ref[...] = skip.reshape(2, 2, tb, hh, wh, cout).astype(skip_ref.dtype)

    # Fused 2x2 / stride-2 downsample: in parity space this is one dot per
    # parity block of the register-resident skip value (no gather, no scratch).
    skip_c = skip.astype(compute_dtype)
    dacc = jnp.zeros((m, cout), jnp.float32)
    for p in range(2):
        for s in range(2):
            blk = skip_c[(2 * p + s) * m:(2 * p + s + 1) * m]
            dacc = dacc + jnp.dot(blk, wd_ref[2 * p + s],
                                  preferred_element_type=jnp.float32)
    down = dacc + bd_ref[...]
    down_ref[...] = down.reshape(tb, hh, wh, cout).astype(down_ref.dtype)


def _downsample_only_kernel(x_ref, wd_ref, bd_ref, down_ref, *, tb, hh, wh, cout):
    m = tb * hh * wh
    cin = x_ref.shape[-1]
    acc = jnp.zeros((m, cout), jnp.float32)
    for p in range(2):
        for s in range(2):
            blk = x_ref[p, s].reshape(m, cin)
            acc = acc + jnp.dot(blk, wd_ref[2 * p + s],
                                preferred_element_type=jnp.float32)
    down = acc + bd_ref[...]
    down_ref[...] = down.reshape(tb, hh, wh, cout).astype(down_ref.dtype)


# ----------------------------------------------------------------------------
# pallas_call wrappers
# ----------------------------------------------------------------------------
def _const_spec(shape):
    """BlockSpec with a constant index_map -> operand stays VMEM-resident."""
    zeros = (0,) * len(shape)
    return pl.BlockSpec(shape, lambda i, _z=zeros: _z)


_COMPILER_PARAMS = pltpu.CompilerParams(
    dimension_semantics=("parallel",),       # shard batch tiles across TCs (v7x)
    vmem_limit_bytes=48 * 1024 * 1024,       # safe ceiling on v5e/v6e/v7x
)


def _encoder_block_call(xpp_pad, params, *, tb, compute_dtype, out_dtype):
    _, _, n, hhp, whp, cin = xpp_pad.shape
    hh, wh = hhp - 2, whp - 2
    cout = params["w1"].shape[-1]

    w1 = params["w1"].reshape(9, cin, cout).astype(compute_dtype)
    w2 = params["w2"].reshape(9, cout, cout).astype(compute_dtype)
    wd = params["wd"].reshape(4, cout, cout).astype(compute_dtype)
    b1 = params["b1"].reshape(1, cout).astype(jnp.float32)
    b2 = params["b2"].reshape(1, cout).astype(jnp.float32)
    bd = params["bd"].reshape(1, cout).astype(jnp.float32)

    kernel = functools.partial(_encoder_block_kernel, tb=tb, hh=hh, wh=wh,
                               cout=cout, compute_dtype=compute_dtype)
    grid_spec = pltpu.PrefetchScalarGridSpec(
        num_scalar_prefetch=0,
        grid=(n // tb,),
        in_specs=(
            pl.BlockSpec((2, 2, tb, hhp, whp, cin),
                         lambda i: (0, 0, i, 0, 0, 0)),
            _const_spec((9, cin, cout)), _const_spec((1, cout)),
            _const_spec((9, cout, cout)), _const_spec((1, cout)),
            _const_spec((4, cout, cout)), _const_spec((1, cout)),
        ),
        out_specs=(
            pl.BlockSpec((2, 2, tb, hh, wh, cout),
                         lambda i: (0, 0, i, 0, 0, 0)),
            pl.BlockSpec((tb, hh, wh, cout), lambda i: (i, 0, 0, 0)),
        ),
        scratch_shapes=[
            # padded parity-split h1: (qy, qx, t, rows, cols, cout)
            pltpu.VMEM((2, 2, tb, hh + 2, _COL0 + wh + 8, cout), compute_dtype),
        ],
    )
    skip_pp, down = pl.pallas_call(
        kernel,
        out_shape=(jax.ShapeDtypeStruct((2, 2, n, hh, wh, cout), out_dtype),
                   jax.ShapeDtypeStruct((n, hh, wh, cout), out_dtype)),
        grid_spec=grid_spec,
        compiler_params=_COMPILER_PARAMS,
    )(xpp_pad, w1, b1, w2, b2, wd, bd)
    return skip_pp, down


def _downsample_only_call(xpp, wd_hwio, bd, *, tb, compute_dtype, out_dtype):
    _, _, n, hh, wh, c = xpp.shape
    cout = wd_hwio.shape[-1]
    wd = wd_hwio.reshape(4, c, cout).astype(compute_dtype)
    bdr = bd.reshape(1, cout).astype(jnp.float32)
    kernel = functools.partial(_downsample_only_kernel, tb=tb, hh=hh, wh=wh,
                               cout=cout)
    grid_spec = pltpu.PrefetchScalarGridSpec(
        num_scalar_prefetch=0,
        grid=(n // tb,),
        in_specs=(
            pl.BlockSpec((2, 2, tb, hh, wh, c), lambda i: (0, 0, i, 0, 0, 0)),
            _const_spec((4, c, cout)), _const_spec((1, cout)),
        ),
        out_specs=pl.BlockSpec((tb, hh, wh, cout), lambda i: (i, 0, 0, 0)),
    )
    return pl.pallas_call(
        kernel,
        out_shape=jax.ShapeDtypeStruct((n, hh, wh, cout), out_dtype),
        grid_spec=grid_spec,
        compiler_params=_COMPILER_PARAMS,
    )(xpp.astype(compute_dtype), wd, bdr)


# ----------------------------------------------------------------------------
# Wrapper-side layout plumbing (XLA ops, outside the kernel)
# ----------------------------------------------------------------------------
def _nchw_to_parity(x_nchw):
    """(N, C, H, W) -> (2, 2, N, H/2, W/2, C); [p, s, n, a, b, c] = x[n, c, 2a+p, 2b+s]."""
    n, c, h, w = x_nchw.shape
    x = jnp.transpose(x_nchw, (0, 2, 3, 1))                 # NHWC
    x = x.reshape(n, h // 2, 2, w // 2, 2, c)
    return jnp.transpose(x, (2, 4, 0, 1, 3, 5))


def _parity_to_nchw(xpp):
    """(2, 2, N, H/2, W/2, C) -> (N, C, H, W)."""
    _, _, n, hh, wh, c = xpp.shape
    x = jnp.transpose(xpp, (2, 5, 3, 0, 4, 1))              # (N, C, hh, 2, wh, 2)
    return x.reshape(n, c, 2 * hh, 2 * wh)


def encoder_block_forward(x_nchw, params, down_only=False, *,
                          batch_tile=1, compute_dtype=jnp.float32,
                          out_dtype=jnp.float32):
    """Pallas EncoderBlock.forward.  Returns (skip, down, is_peak) in NCHW.

    compute_dtype : MXU operand dtype (bf16 recommended on v6e/v7x; bf16 MXU
                    operands are also fine on v5e).  Accumulation / bias / ReLU
                    stay f32.
    out_dtype     : HBM dtype of skip & down (bf16 halves the largest HBM stream).
    """
    n, _, h, w = x_nchw.shape
    assert h % 2 == 0 and w % 16 == 0, "parity-split kernel needs H%2==0, W%16==0"
    assert n % batch_tile == 0, "batch_tile must divide N"

    if down_only:
        xpp = _nchw_to_parity(x_nchw)
        down = _downsample_only_call(xpp, params["wd"], params["bd"],
                                     tb=batch_tile, compute_dtype=compute_dtype,
                                     out_dtype=out_dtype)
        skip = x_nchw
        is_peak = True
    else:
        xpp = _nchw_to_parity(x_nchw)
        xpp_pad = jnp.pad(xpp, ((0, 0), (0, 0), (0, 0), (1, 1), (1, 1), (0, 0)))
        xpp_pad = xpp_pad.astype(compute_dtype)
        skip_pp, down = _encoder_block_call(xpp_pad, params, tb=batch_tile,
                                            compute_dtype=compute_dtype,
                                            out_dtype=out_dtype)
        skip = _parity_to_nchw(skip_pp)
        is_peak = False

    down_nchw = jnp.transpose(down, (0, 3, 1, 2))
    return skip, down_nchw, is_peak


# ----------------------------------------------------------------------------
# Pure-JAX reference (correctness check)
# ----------------------------------------------------------------------------
def _ref_forward(x_nchw, params, down_only=False):
    x = jnp.transpose(x_nchw, (0, 2, 3, 1)).astype(jnp.float32)
    dn = ("NHWC", "HWIO", "NHWC")

    def conv(v, w, b, stride, pad):
        y = lax.conv_general_dilated(v, w, (stride, stride), pad,
                                     dimension_numbers=dn)
        return y + b.reshape(1, 1, 1, -1)

    if down_only:
        skip = x
    else:
        h1 = jnp.maximum(conv(x, params["w1"], params["b1"], 1, "SAME"), 0.0)
        skip = jnp.maximum(conv(h1, params["w2"], params["b2"], 1, "SAME"), 0.0)
    down = conv(skip, params["wd"], params["bd"], 2, "VALID")
    return (jnp.transpose(skip, (0, 3, 1, 2)), jnp.transpose(down, (0, 3, 1, 2)))


# ----------------------------------------------------------------------------
# main
# ----------------------------------------------------------------------------
if __name__ == "__main__":
    key = jax.random.PRNGKey(0)
    N, Cin, Cout, H, W = 2, 4, 8, 16, 16

    k = jax.random.split(key, 7)
    x = jax.random.normal(k[0], (N, Cin, H, W), jnp.float32)

    def init_w(kk, shape):
        fan_in = shape[0] * shape[1] * shape[2]
        return jax.random.normal(kk, shape, jnp.float32) * (1.0 / fan_in) ** 0.5

    params = {
        "w1": init_w(k[1], (3, 3, Cin, Cout)),
        "b1": jax.random.normal(k[2], (Cout,), jnp.float32) * 0.01,
        "w2": init_w(k[3], (3, 3, Cout, Cout)),
        "b2": jax.random.normal(k[4], (Cout,), jnp.float32) * 0.01,
        "wd": init_w(k[5], (2, 2, Cout, Cout)),
        "bd": jax.random.normal(k[6], (Cout,), jnp.float32) * 0.01,
    }

    # Full path: block (double conv + ReLU) + downsample, fused in one kernel.
    skip, down, is_peak = encoder_block_forward(x, params, down_only=False)
    jax.block_until_ready((skip, down))
    assert skip.shape == (N, Cout, H, W)
    assert down.shape == (N, Cout, H // 2, W // 2)
    assert is_peak is False

    skip_ref, down_ref = _ref_forward(x, params, down_only=False)
    assert jnp.allclose(skip, skip_ref, rtol=1e-4, atol=1e-4)
    assert jnp.allclose(down, down_ref, rtol=1e-4, atol=1e-4)

    # down_only path: skip == x, is_peak == True (input has Cout channels,
    # matching the reference module's assumption on the downsample layer).
    x_peak = jax.random.normal(key, (N, Cout, H, W), jnp.float32)
    skip_p, down_p, peak = encoder_block_forward(x_peak, params, down_only=True)
    jax.block_until_ready((skip_p, down_p))
    skip_pr, down_pr = _ref_forward(x_peak, params, down_only=True)
    assert peak is True
    assert jnp.allclose(skip_p, x_peak)
    assert jnp.allclose(down_p, down_pr, rtol=1e-4, atol=1e-4)

    print("KERNEL_OK")
</pallas_src>

<mosaic_0001>
module attributes {stable_mosaic.version = 11 : i64} {
  func.func @_encoder_block_kernel(%arg0: i32, %arg1: memref<2x2x1x10x10x4xf32, #tpu.memory_space<vmem>>, %arg2: memref<9x4x8xf32, #tpu.memory_space<vmem>>, %arg3: memref<1x8xf32, #tpu.memory_space<vmem>>, %arg4: memref<9x8x8xf32, #tpu.memory_space<vmem>>, %arg5: memref<1x8xf32, #tpu.memory_space<vmem>>, %arg6: memref<4x8x8xf32, #tpu.memory_space<vmem>>, %arg7: memref<1x8xf32, #tpu.memory_space<vmem>>, %arg8: memref<2x2x1x8x8x8xf32, #tpu.memory_space<vmem>>, %arg9: memref<1x8x8x8xf32, #tpu.memory_space<vmem>>, %arg10: memref<2x2x1x10x24x8xf32, #tpu.memory_space<vmem>>) attributes {dimension_semantics = [#tpu.dimension_semantics<parallel>], iteration_bounds = array<i64: 2>, scalar_prefetch = 0 : i64, scratch_operands = 1 : i64, tpu.core_type = #tpu.core_type<tc>, window_params = [{transform_indices = @transform_0, window_bounds = array<i64: 2, 2, 1, 10, 10, 4>}, {pipeline_mode = #tpu.pipeline_mode<synchronous>, transform_indices = @transform_1, window_bounds = array<i64: 9, 4, 8>}, {pipeline_mode = #tpu.pipeline_mode<synchronous>, transform_indices = @transform_2, window_bounds = array<i64: 1, 8>}, {pipeline_mode = #tpu.pipeline_mode<synchronous>, transform_indices = @transform_3, window_bounds = array<i64: 9, 8, 8>}, {pipeline_mode = #tpu.pipeline_mode<synchronous>, transform_indices = @transform_4, window_bounds = array<i64: 1, 8>}, {pipeline_mode = #tpu.pipeline_mode<synchronous>, transform_indices = @transform_5, window_bounds = array<i64: 4, 8, 8>}, {pipeline_mode = #tpu.pipeline_mode<synchronous>, transform_indices = @transform_6, window_bounds = array<i64: 1, 8>}, {transform_indices = @transform_7, window_bounds = array<i64: 2, 2, 1, 8, 8, 8>}, {transform_indices = @transform_8, window_bounds = array<i64: 1, 8, 8, 8>}]} {
    %cst = arith.constant 0.000000e+00 : f32
    %0 = vector.broadcast %cst : f32 to vector<2x2x1x1x24x8xf32>
    %c0 = arith.constant 0 : index
    %c0_0 = arith.constant 0 : index
    %c0_1 = arith.constant 0 : index
    %c0_2 = arith.constant 0 : index
    %c0_3 = arith.constant 0 : index
    %c0_4 = arith.constant 0 : index
    %1 = vector.load %arg10[%c0, %c0_0, %c0_1, %c0_2, %c0_3, %c0_4] : memref<2x2x1x10x24x8xf32, #tpu.memory_space<vmem>>, vector<2x2x1x1x24x8xf32>
    tpu.vector_store %arg10[%c0, %c0_0, %c0_1, %c0_2, %c0_3, %c0_4], %0 {strides = array<i32>} : memref<2x2x1x10x24x8xf32, #tpu.memory_space<vmem>>, vector<2x2x1x1x24x8xf32>,
    %c0_5 = arith.constant 0 : index
    %c0_6 = arith.constant 0 : index
    %c0_7 = arith.constant 0 : index
    %c9 = arith.constant 9 : index
    %c0_8 = arith.constant 0 : index
    %c0_9 = arith.constant 0 : index
    %2 = vector.load %arg10[%c0_5, %c0_6, %c0_7, %c9, %c0_8, %c0_9] : memref<2x2x1x10x24x8xf32, #tpu.memory_space<vmem>>, vector<2x2x1x1x24x8xf32>
    tpu.vector_store %arg10[%c0_5, %c0_6, %c0_7, %c9, %c0_8, %c0_9], %0 {strides = array<i32>} : memref<2x2x1x10x24x8xf32, #tpu.memory_space<vmem>>, vector<2x2x1x1x24x8xf32>,
    %cst_10 = arith.constant 0.000000e+00 : f32
    %3 = vector.broadcast %cst_10 : f32 to vector<2x2x1x10x1x8xf32>
    %c0_11 = arith.constant 0 : index
    %c0_12 = arith.constant 0 : index
    %c0_13 = arith.constant 0 : index
    %c0_14 = arith.constant 0 : index
    %c7 = arith.constant 7 : index
    %c0_15 = arith.constant 0 : index
    %4 = vector.load %arg10[%c0_11, %c0_12, %c0_13, %c0_14, %c7, %c0_15] : memref<2x2x1x10x24x8xf32, #tpu.memory_space<vmem>>, vector<2x2x1x10x1x8xf32>
    tpu.vector_store %arg10[%c0_11, %c0_12, %c0_13, %c0_14, %c7, %c0_15], %3 {strides = array<i32>} : memref<2x2x1x10x24x8xf32, #tpu.memory_space<vmem>>, vector<2x2x1x10x1x8xf32>,
    %c0_16 = arith.constant 0 : index
    %c0_17 = arith.constant 0 : index
    %c0_18 = arith.constant 0 : index
    %c0_19 = arith.constant 0 : index
    %c16 = arith.constant 16 : index
    %c0_20 = arith.constant 0 : index
    %5 = vector.load %arg10[%c0_16, %c0_17, %c0_18, %c0_19, %c16, %c0_20] : memref<2x2x1x10x24x8xf32, #tpu.memory_space<vmem>>, vector<2x2x1x10x1x8xf32>
    tpu.vector_store %arg10[%c0_16, %c0_17, %c0_18, %c0_19, %c16, %c0_20], %3 {strides = array<i32>} : memref<2x2x1x10x24x8xf32, #tpu.memory_space<vmem>>, vector<2x2x1x10x1x8xf32>,
    %cst_21 = arith.constant 0.000000e+00 : f32
    %6 = vector.broadcast %cst_21 : f32 to vector<256x8xf32>
    %c1 = arith.constant 1 : index
    %c1_22 = arith.constant 1 : index
    %c0_23 = arith.constant 0 : index
    %c0_24 = arith.constant 0 : index
    %c0_25 = arith.constant 0 : index
    %c0_26 = arith.constant 0 : index
    %7 = vector.load %arg1[%c1, %c1_22, %c0_23, %c0_24, %c0_25, %c0_26] : memref<2x2x1x10x10x4xf32, #tpu.memory_space<vmem>>, vector<1x1x1x8x8x4xf32>
    %8 = vector.shape_cast %7 : vector<1x1x1x8x8x4xf32> to vector<1x8x8x4xf32>
    %9 = vector.shape_cast %8 : vector<1x8x8x4xf32> to vector<64x4xf32>
    %c1_27 = arith.constant 1 : index
    %c0_28 = arith.constant 0 : index
    %c0_29 = arith.constant 0 : index
    %c0_30 = arith.constant 0 : index
    %c1_31 = arith.constant 1 : index
    %c0_32 = arith.constant 0 : index
    %10 = vector.load %arg1[%c1_27, %c0_28, %c0_29, %c0_30, %c1_31, %c0_32] : memref<2x2x1x10x10x4xf32, #tpu.memory_space<vmem>>, vector<1x1x1x8x8x4xf32>
    %11 = vector.shape_cast %10 : vector<1x1x1x8x8x4xf32> to vector<1x8x8x4xf32>
    %12 = vector.shape_cast %11 : vector<1x8x8x4xf32> to vector<64x4xf32>
    %c0_33 = arith.constant 0 : index
    %c1_34 = arith.constant 1 : index
    %c0_35 = arith.constant 0 : index
    %c1_36 = arith.constant 1 : index
    %c0_37 = arith.constant 0 : index
    %c0_38 = arith.constant 0 : index
    %13 = vector.load %arg1[%c0_33, %c1_34, %c0_35, %c1_36, %c0_37, %c0_38] : memref<2x2x1x10x10x4xf32, #tpu.memory_space<vmem>>, vector<1x1x1x8x8x4xf32>
    %14 = vector.shape_cast %13 : vector<1x1x1x8x8x4xf32> to vector<1x8x8x4xf32>
    %15 = vector.shape_cast %14 : vector<1x8x8x4xf32> to vector<64x4xf32>
    %c0_39 = arith.constant 0 : index
    %c0_40 = arith.constant 0 : index
    %c0_41 = arith.constant 0 : index
    %c1_42 = arith.constant 1 : index
    %c1_43 = arith.constant 1 : index
    %c0_44 = arith.constant 0 : index
    %16 = vector.load %arg1[%c0_39, %c0_40, %c0_41, %c1_42, %c1_43, %c0_44] : memref<2x2x1x10x10x4xf32, #tpu.memory_space<vmem>>, vector<1x1x1x8x8x4xf32>
    %17 = vector.shape_cast %16 : vector<1x1x1x8x8x4xf32> to vector<1x8x8x4xf32>
    %18 = vector.shape_cast %17 : vector<1x8x8x4xf32> to vector<64x4xf32>
    %19 = tpu.concatenate %9, %12, %15, %18 in 0 : vector<64x4xf32>, vector<64x4xf32>, vector<64x4xf32>, vector<64x4xf32> -> vector<256x4xf32>
    %c0_45 = arith.constant 0 : index
    %c0_46 = arith.constant 0 : index
    %c0_47 = arith.constant 0 : index
    %20 = vector.load %arg2[%c0_45, %c0_46, %c0_47] : memref<9x4x8xf32, #tpu.memory_space<vmem>>, vector<1x4x8xf32>
    %21 = vector.shape_cast %20 : vector<1x4x8xf32> to vector<4x8xf32>
    %cst_48 = arith.constant dense<0.000000e+00> : vector<256x8xf32>
    %22 = tpu.matmul %19, %21, %cst_48 {dimension_numbers = #tpu.dot_dimension_numbers<[1], [0], [0], [1], [0, 0, 1, 1], [], []>} : vector<256x4xf32>, vector<4x8xf32>, vector<256x8xf32> -> vector<256x8xf32>
    %23 = arith.addf %6, %22 : vector<256x8xf32>
    %c1_49 = arith.constant 1 : index
    %c0_50 = arith.constant 0 : index
    %c0_51 = arith.constant 0 : index
    %c0_52 = arith.constant 0 : index
    %c1_53 = arith.constant 1 : index
    %c0_54 = arith.constant 0 : index
    %24 = vector.load %arg1[%c1_49, %c0_50, %c0_51, %c0_52, %c1_53, %c0_54] : memref<2x2x1x10x10x4xf32, #tpu.memory_space<vmem>>, vector<1x1x1x8x8x4xf32>
    %25 = vector.shape_cast %24 : vector<1x1x1x8x8x4xf32> to vector<1x8x8x4xf32>
    %26 = vector.shape_cast %25 : vector<1x8x8x4xf32> to vector<64x4xf32>
    %c1_55 = arith.constant 1 : index
    %c1_56 = arith.constant 1 : index
    %c0_57 = arith.constant 0 : index
    %c0_58 = arith.constant 0 : index
    %c1_59 = arith.constant 1 : index
    %c0_60 = arith.constant 0 : index
    %27 = vector.load %arg1[%c1_55, %c1_56, %c0_57, %c0_58, %c1_59, %c0_60] : memref<2x2x1x10x10x4xf32, #tpu.memory_space<vmem>>, vector<1x1x1x8x8x4xf32>
    %28 = vector.shape_cast %27 : vector<1x1x1x8x8x4xf32> to vector<1x8x8x4xf32>
    %29 = vector.shape_cast %28 : vector<1x8x8x4xf32> to vector<64x4xf32>
    %c0_61 = arith.constant 0 : index
    %c0_62 = arith.constant 0 : index
    %c0_63 = arith.constant 0 : index
    %c1_64 = arith.constant 1 : index
    %c1_65 = arith.constant 1 : index
    %c0_66 = arith.constant 0 : index
    %30 = vector.load %arg1[%c0_61, %c0_62, %c0_63, %c1_64, %c1_65, %c0_66] : memref<2x2x1x10x10x4xf32, #tpu.memory_space<vmem>>, vector<1x1x1x8x8x4xf32>
    %31 = vector.shape_cast %30 : vector<1x1x1x8x8x4xf32> to vector<1x8x8x4xf32>
    %32 = vector.shape_cast %31 : vector<1x8x8x4xf32> to vector<64x4xf32>
    %c0_67 = arith.constant 0 : index
    %c1_68 = arith.constant 1 : index
    %c0_69 = arith.constant 0 : index
    %c1_70 = arith.constant 1 : index
    %c1_71 = arith.constant 1 : index
    %c0_72 = arith.constant 0 : index
    %33 = vector.load %arg1[%c0_67, %c1_68, %c0_69, %c1_70, %c1_71, %c0_72] : memref<2x2x1x10x10x4xf32, #tpu.memory_space<vmem>>, vector<1x1x1x8x8x4xf32>
    %34 = vector.shape_cast %33 : vector<1x1x1x8x8x4xf32> to vector<1x8x8x4xf32>
    %35 = vector.shape_cast %34 : vector<1x8x8x4xf32> to vector<64x4xf32>
    %36 = tpu.concatenate %26, %29, %32, %35 in 0 : vector<64x4xf32>, vector<64x4xf32>, vector<64x4xf32>, vector<64x4xf32> -> vector<256x4xf32>
    %c1_73 = arith.constant 1 : index
    %c0_74 = arith.constant 0 : index
    %c0_75 = arith.constant 0 : index
    %37 = vector.load %arg2[%c1_73, %c0_74, %c0_75] : memref<9x4x8xf32, #tpu.memory_space<vmem>>, vector<1x4x8xf32>
    %38 = vector.shape_cast %37 : vector<1x4x8xf32> to vector<4x8xf32>
    %cst_76 = arith.constant dense<0.000000e+00> : vector<256x8xf32>
    %39 = tpu.matmul %36, %38, %cst_76 {dimension_numbers = #tpu.dot_dimension_numbers<[1], [0], [0], [1], [0, 0, 1, 1], [], []>} : vector<256x4xf32>, vector<4x8xf32>, vector<256x8xf32> -> vector<256x8xf32>
    %40 = arith.addf %23, %39 : vector<256x8xf32>
    %c1_77 = arith.constant 1 : index
    %c1_78 = arith.constant 1 : index
    %c0_79 = arith.constant 0 : index
    %c0_80 = arith.constant 0 : index
    %c1_81 = arith.constant 1 : index
    %c0_82 = arith.constant 0 : index
    %41 = vector.load %arg1[%c1_77, %c1_78, %c0_79, %c0_80, %c1_81, %c0_82] : memref<2x2x1x10x10x4xf32, #tpu.memory_space<vmem>>, vector<1x1x1x8x8x4xf32>
    %42 = vector.shape_cast %41 : vector<1x1x1x8x8x4xf32> to vector<1x8x8x4xf32>
    %43 = vector.shape_cast %42 : vector<1x8x8x4xf32> to vector<64x4xf32>
    %c1_83 = arith.constant 1 : index
    %c0_84 = arith.constant 0 : index
    %c0_85 = arith.constant 0 : index
    %c0_86 = arith.constant 0 : index
    %c2 = arith.constant 2 : index
    %c0_87 = arith.constant 0 : index
    %44 = vector.load %arg1[%c1_83, %c0_84, %c0_85, %c0_86, %c2, %c0_87] : memref<2x2x1x10x10x4xf32, #tpu.memory_space<vmem>>, vector<1x1x1x8x8x4xf32>
    %45 = vector.shape_cast %44 : vector<1x1x1x8x8x4xf32> to vector<1x8x8x4xf32>
    %46 = vector.shape_cast %45 : vector<1x8x8x4xf32> to vector<64x4xf32>
    %c0_88 = arith.constant 0 : index
    %c1_89 = arith.constant 1 : index
    %c0_90 = arith.constant 0 : index
    %c1_91 = arith.constant 1 : index
    %c1_92 = arith.constant 1 : index
    %c0_93 = arith.constant 0 : index
    %47 = vector.load %arg1[%c0_88, %c1_89, %c0_90, %c1_91, %c1_92, %c0_93] : memref<2x2x1x10x10x4xf32, #tpu.memory_space<vmem>>, vector<1x1x1x8x8x4xf32>
    %48 = vector.shape_cast %47 : vector<1x1x1x8x8x4xf32> to vector<1x8x8x4xf32>
    %49 = vector.shape_cast %48 : vector<1x8x8x4xf32> to vector<64x4xf32>
    %c0_94 = arith.constant 0 : index
    %c0_95 = arith.constant 0 : index
    %c0_96 = arith.constant 0 : index
    %c1_97 = arith.constant 1 : index
    %c2_98 = arith.constant 2 : index
    %c0_99 = arith.constant 0 : index
    %50 = vector.load %arg1[%c0_94, %c0_95, %c0_96, %c1_97, %c2_98, %c0_99] : memref<2x2x1x10x10x4xf32, #tpu.memory_space<vmem>>, vector<1x1x1x8x8x4xf32>
    %51 = vector.shape_cast %50 : vector<1x1x1x8x8x4xf32> to vector<1x8x8x4xf32>
    %52 = vector.shape_cast %51 : vector<1x8x8x4xf32> to vector<64x4xf32>
    %53 = tpu.concatenate %43, %46, %49, %52 in 0 : vector<64x4xf32>, vector<64x4xf32>, vector<64x4xf32>, vector<64x4xf32> -> vector<256x4xf32>
    %c2_100 = arith.constant 2 : index
    %c0_101 = arith.constant 0 : index
    %c0_102 = arith.constant 0 : index
    %54 = vector.load %arg2[%c2_100, %c0_101, %c0_102] : memref<9x4x8xf32, #tpu.memory_space<vmem>>, vector<1x4x8xf32>
    %55 = vector.shape_cast %54 : vector<1x4x8xf32> to vector<4x8xf32>
    %cst_103 = arith.constant dense<0.000000e+00> : vector<256x8xf32>
    %56 = tpu.matmul %53, %55, %cst_103 {dimension_numbers = #tpu.dot_dimension_numbers<[1], [0], [0], [1], [0, 0, 1, 1], [], []>} : vector<256x4xf32>, vector<4x8xf32>, vector<256x8xf32> -> vector<256x8xf32>
    %57 = arith.addf %40, %56 : vector<256x8xf32>
    %c0_104 = arith.constant 0 : index
    %c1_105 = arith.constant 1 : index
    %c0_106 = arith.constant 0 : index
    %c1_107 = arith.constant 1 : index
    %c0_108 = arith.constant 0 : index
    %c0_109 = arith.constant 0 : index
    %58 = vector.load %arg1[%c0_104, %c1_105, %c0_106, %c1_107, %c0_108, %c0_109] : memref<2x2x1x10x10x4xf32, #tpu.memory_space<vmem>>, vector<1x1x1x8x8x4xf32>
    %59 = vector.shape_cast %58 : vector<1x1x1x8x8x4xf32> to vector<1x8x8x4xf32>
    %60 = vector.shape_cast %59 : vector<1x8x8x4xf32> to vector<64x4xf32>
    %c0_110 = arith.constant 0 : index
    %c0_111 = arith.constant 0 : index
    %c0_112 = arith.constant 0 : index
    %c1_113 = arith.constant 1 : index
    %c1_114 = arith.constant 1 : index
    %c0_115 = arith.constant 0 : index
    %61 = vector.load %arg1[%c0_110, %c0_111, %c0_112, %c1_113, %c1_114, %c0_115] : memref<2x2x1x10x10x4xf32, #tpu.memory_space<vmem>>, vector<1x1x1x8x8x4xf32>
    %62 = vector.shape_cast %61 : vector<1x1x1x8x8x4xf32> to vector<1x8x8x4xf32>
    %63 = vector.shape_cast %62 : vector<1x8x8x4xf32> to vector<64x4xf32>
    %c1_116 = arith.constant 1 : index
    %c1_117 = arith.constant 1 : index
    %c0_118 = arith.constant 0 : index
    %c1_119 = arith.constant 1 : index
    %c0_120 = arith.constant 0 : index
    %c0_121 = arith.constant 0 : index
    %64 = vector.load %arg1[%c1_116, %c1_117, %c0_118, %c1_119, %c0_120, %c0_121] : memref<2x2x1x10x10x4xf32, #tpu.memory_space<vmem>>, vector<1x1x1x8x8x4xf32>
    %65 = vector.shape_cast %64 : vector<1x1x1x8x8x4xf32> to vector<1x8x8x4xf32>
    %66 = vector.shape_cast %65 : vector<1x8x8x4xf32> to vector<64x4xf32>
    %c1_122 = arith.constant 1 : index
    %c0_123 = arith.constant 0 : index
    %c0_124 = arith.constant 0 : index
    %c1_125 = arith.constant 1 : index
    %c1_126 = arith.constant 1 : index
    %c0_127 = arith.constant 0 : index
    %67 = vector.load %arg1[%c1_122, %c0_123, %c0_124, %c1_125, %c1_126, %c0_127] : memref<2x2x1x10x10x4xf32, #tpu.memory_space<vmem>>, vector<1x1x1x8x8x4xf32>
    %68 = vector.shape_cast %67 : vector<1x1x1x8x8x4xf32> to vector<1x8x8x4xf32>
    %69 = vector.shape_cast %68 : vector<1x8x8x4xf32> to vector<64x4xf32>
    %70 = tpu.concatenate %60, %63, %66, %69 in 0 : vector<64x4xf32>, vector<64x4xf32>, vector<64x4xf32>, vector<64x4xf32> -> vector<256x4xf32>
    %c3 = arith.constant 3 : index
    %c0_128 = arith.constant 0 : index
    %c0_129 = arith.constant 0 : index
    %71 = vector.load %arg2[%c3, %c0_128, %c0_129] : memref<9x4x8xf32, #tpu.memory_space<vmem>>, vector<1x4x8xf32>
    %72 = vector.shape_cast %71 : vector<1x4x8xf32> to vector<4x8xf32>
    %cst_130 = arith.constant dense<0.000000e+00> : vector<256x8xf32>
    %73 = tpu.matmul %70, %72, %cst_130 {dimension_numbers = #tpu.dot_dimension_numbers<[1], [0], [0], [1], [0, 0, 1, 1], [], []>} : vector<256x4xf32>, vector<4x8xf32>, vector<256x8xf32> -> vector<256x8xf32>
    %74 = arith.addf %57, %73 : vector<256x8xf32>
    %c0_131 = arith.constant 0 : index
    %c0_132 = arith.constant 0 : index
    %c0_133 = arith.constant 0 : index
    %c1_134 = arith.constant 1 : index
    %c1_135 = arith.constant 1 : index
    %c0_136 = arith.constant 0 : index
    %75 = vector.load %arg1[%c0_131, %c0_132, %c0_133, %c1_134, %c1_135, %c0_136] : memref<2x2x1x10x10x4xf32, #tpu.memory_space<vmem>>, vector<1x1x1x8x8x4xf32>
    %76 = vector.shape_cast %75 : vector<1x1x1x8x8x4xf32> to vector<1x8x8x4xf32>
    %77 = vector.shape_cast %76 : vector<1x8x8x4xf32> to vector<64x4xf32>
    %c0_137 = arith.constant 0 : index
    %c1_138 = arith.constant 1 : index
    %c0_139 = arith.constant 0 : index
    %c1_140 = arith.constant 1 : index
    %c1_141 = arith.constant 1 : index
    %c0_142 = arith.constant 0 : index
    %78 = vector.load %arg1[%c0_137, %c1_138, %c0_139, %c1_140, %c1_141, %c0_142] : memref<2x2x1x10x10x4xf32, #tpu.memory_space<vmem>>, vector<1x1x1x8x8x4xf32>
    %79 = vector.shape_cast %78 : vector<1x1x1x8x8x4xf32> to vector<1x8x8x4xf32>
    %80 = vector.shape_cast %79 : vector<1x8x8x4xf32> to vector<64x4xf32>
    %c1_143 = arith.constant 1 : index
    %c0_144 = arith.constant 0 : index
    %c0_145 = arith.constant 0 : index
    %c1_146 = arith.constant 1 : index
    %c1_147 = arith.constant 1 : index
    %c0_148 = arith.constant 0 : index
    %81 = vector.load %arg1[%c1_143, %c0_144, %c0_145, %c1_146, %c1_147, %c0_148] : memref<2x2x1x10x10x4xf32, #tpu.memory_space<vmem>>, vector<1x1x1x8x8x4xf32>
    %82 = vector.shape_cast %81 : vector<1x1x1x8x8x4xf32> to vector<1x8x8x4xf32>
    %83 = vector.shape_cast %82 : vector<1x8x8x4xf32> to vector<64x4xf32>
    %c1_149 = arith.constant 1 : index
    %c1_150 = arith.constant 1 : index
    %c0_151 = arith.constant 0 : index
    %c1_152 = arith.constant 1 : index
    %c1_153 = arith.constant 1 : index
    %c0_154 = arith.constant 0 : index
    %84 = vector.load %arg1[%c1_149, %c1_150, %c0_151, %c1_152, %c1_153, %c0_154] : memref<2x2x1x10x10x4xf32, #tpu.memory_space<vmem>>, vector<1x1x1x8x8x4xf32>
    %85 = vector.shape_cast %84 : vector<1x1x1x8x8x4xf32> to vector<1x8x8x4xf32>
    %86 = vector.shape_cast %85 : vector<1x8x8x4xf32> to vector<64x4xf32>
    %87 = tpu.concatenate %77, %80, %83, %86 in 0 : vector<64x4xf32>, vector<64x4xf32>, vector<64x4xf32>, vector<64x4xf32> -> vector<256x4xf32>
    %c4 = arith.constant 4 : index
    %c0_155 = arith.constant 0 : index
    %c0_156 = arith.constant 0 : index
    %88 = vector.load %arg2[%c4, %c0_155, %c0_156] : memref<9x4x8xf32, #tpu.memory_space<vmem>>, vector<1x4x8xf32>
    %89 = vector.shape_cast %88 : vector<1x4x8xf32> to vector<4x8xf32>
    %cst_157 = arith.constant dense<0.000000e+00> : vector<256x8xf32>
    %90 = tpu.matmul %87, %89, %cst_157 {dimension_numbers = #tpu.dot_dimension_numbers<[1], [0], [0], [1], [0, 0, 1, 1], [], []>} : vector<256x4xf32>, vector<4x8xf32>, vector<256x8xf32> -> vector<256x8xf32>
    %91 = arith.addf %74, %90 : vector<256x8xf32>
    %c0_158 = arith.constant 0 : index
    %c1_159 = arith.constant 1 : index
    %c0_160 = arith.constant 0 : index
    %c1_161 = arith.constant 1 : index
    %c1_162 = arith.constant 1 : index
    %c0_163 = arith.constant 0 : index
    %92 = vector.load %arg1[%c0_158, %c1_159, %c0_160, %c1_161, %c1_162, %c0_163] : memref<2x2x1x10x10x4xf32, #tpu.memory_space<vmem>>, vector<1x1x1x8x8x4xf32>
    %93 = vector.shape_cast %92 : vector<1x1x1x8x8x4xf32> to vector<1x8x8x4xf32>
    %94 = vector.shape_cast %93 : vector<1x8x8x4xf32> to vector<64x4xf32>
    %c0_164 = arith.constant 0 : index
    %c0_165 = arith.constant 0 : index
    %c0_166 = arith.constant 0 : index
    %c1_167 = arith.constant 1 : index
    %c2_168 = arith.constant 2 : index
    %c0_169 = arith.constant 0 : index
    %95 = vector.load %arg1[%c0_164, %c0_165, %c0_166, %c1_167, %c2_168, %c0_169] : memref<2x2x1x10x10x4xf32, #tpu.memory_space<vmem>>, vector<1x1x1x8x8x4xf32>
    %96 = vector.shape_cast %95 : vector<1x1x1x8x8x4xf32> to vector<1x8x8x4xf32>
    %97 = vector.shape_cast %96 : vector<1x8x8x4xf32> to vector<64x4xf32>
    %c1_170 = arith.constant 1 : index
    %c1_171 = arith.constant 1 : index
    %c0_172 = arith.constant 0 : index
    %c1_173 = arith.constant 1 : index
    %c1_174 = arith.constant 1 : index
    %c0_175 = arith.constant 0 : index
    %98 = vector.load %arg1[%c1_170, %c1_171, %c0_172, %c1_173, %c1_174, %c0_175] : memref<2x2x1x10x10x4xf32, #tpu.memory_space<vmem>>, vector<1x1x1x8x8x4xf32>
    %99 = vector.shape_cast %98 : vector<1x1x1x8x8x4xf32> to vector<1x8x8x4xf32>
    %100 = vector.shape_cast %99 : vector<1x8x8x4xf32> to vector<64x4xf32>
    %c1_176 = arith.constant 1 : index
    %c0_177 = arith.constant 0 : index
    %c0_178 = arith.constant 0 : index
    %c1_179 = arith.constant 1 : index
    %c2_180 = arith.constant 2 : index
    %c0_181 = arith.constant 0 : index
    %101 = vector.load %arg1[%c1_176, %c0_177, %c0_178, %c1_179, %c2_180, %c0_181] : memref<2x2x1x10x10x4xf32, #tpu.memory_space<vmem>>, vector<1x1x1x8x8x4xf32>
    %102 = vector.shape_cast %101 : vector<1x1x1x8x8x4xf32> to vector<1x8x8x4xf32>
    %103 = vector.shape_cast %102 : vector<1x8x8x4xf32> to vector<64x4xf32>
    %104 = tpu.concatenate %94, %97, %100, %103 in 0 : vector<64x4xf32>, vector<64x4xf32>, vector<64x4xf32>, vector<64x4xf32> -> vector<256x4xf32>
    %c5 = arith.constant 5 : index
    %c0_182 = arith.constant 0 : index
    %c0_183 = arith.constant 0 : index
    %105 = vector.load %arg2[%c5, %c0_182, %c0_183] : memref<9x4x8xf32, #tpu.memory_space<vmem>>, vector<1x4x8xf32>
    %106 = vector.shape_cast %105 : vector<1x4x8xf32> to vector<4x8xf32>
    %cst_184 = arith.constant dense<0.000000e+00> : vector<256x8xf32>
    %107 = tpu.matmul %104, %106, %cst_184 {dimension_numbers = #tpu.dot_dimension_numbers<[1], [0], [0], [1], [0, 0, 1, 1], [], []>} : vector<256x4xf32>, vector<4x8xf32>, vector<256x8xf32> -> vector<256x8xf32>
    %108 = arith.addf %91, %107 : vector<256x8xf32>
    %c1_185 = arith.constant 1 : index
    %c1_186 = arith.constant 1 : index
    %c0_187 = arith.constant 0 : index
    %c1_188 = arith.constant 1 : index
    %c0_189 = arith.constant 0 : index
    %c0_190 = arith.constant 0 : index
    %109 = vector.load %arg1[%c1_185, %c1_186, %c0_187, %c1_188, %c0_189, %c0_190] : memref<2x2x1x10x10x4xf32, #tpu.memory_space<vmem>>, vector<1x1x1x8x8x4xf32>
    %110 = vector.shape_cast %109 : vector<1x1x1x8x8x4xf32> to vector<1x8x8x4xf32>
    %111 = vector.shape_cast %110 : vector<1x8x8x4xf32> to vector<64x4xf32>
    %c1_191 = arith.constant 1 : index
    %c0_192 = arith.constant 0 : index
    %c0_193 = arith.constant 0 : index
    %c1_194 = arith.constant 1 : index
    %c1_195 = arith.constant 1 : index
    %c0_196 = arith.constant 0 : index
    %112 = vector.load %arg1[%c1_191, %c0_192, %c0_193, %c1_194, %c1_195, %c0_196] : memref<2x2x1x10x10x4xf32, #tpu.memory_space<vmem>>, vector<1x1x1x8x8x4xf32>
    %113 = vector.shape_cast %112 : vector<1x1x1x8x8x4xf32> to vector<1x8x8x4xf32>
    %114 = vector.shape_cast %113 : vector<1x8x8x4xf32> to vector<64x4xf32>
    %c0_197 = arith.constant 0 : index
    %c1_198 = arith.constant 1 : index
    %c0_199 = arith.constant 0 : index
    %c2_200 = arith.constant 2 : index
    %c0_201 = arith.constant 0 : index
    %c0_202 = arith.constant 0 : index
    %115 = vector.load %arg1[%c0_197, %c1_198, %c0_199, %c2_200, %c0_201, %c0_202] : memref<2x2x1x10x10x4xf32, #tpu.memory_space<vmem>>, vector<1x1x1x8x8x4xf32>
    %116 = vector.shape_cast %115 : vector<1x1x1x8x8x4xf32> to vector<1x8x8x4xf32>
    %117 = vector.shape_cast %116 : vector<1x8x8x4xf32> to vector<64x4xf32>
    %c0_203 = arith.constant 0 : index
    %c0_204 = arith.constant 0 : index
    %c0_205 = arith.constant 0 : index
    %c2_206 = arith.constant 2 : index
    %c1_207 = arith.constant 1 : index
    %c0_208 = arith.constant 0 : index
    %118 = vector.load %arg1[%c0_203, %c0_204, %c0_205, %c2_206, %c1_207, %c0_208] : memref<2x2x1x10x10x4xf32, #tpu.memory_space<vmem>>, vector<1x1x1x8x8x4xf32>
    %119 = vector.shape_cast %118 : vector<1x1x1x8x8x4xf32> to vector<1x8x8x4xf32>
    %120 = vector.shape_cast %119 : vector<1x8x8x4xf32> to vector<64x4xf32>
    %121 = tpu.concatenate %111, %114, %117, %120 in 0 : vector<64x4xf32>, vector<64x4xf32>, vector<64x4xf32>, vector<64x4xf32> -> vector<256x4xf32>
    %c6 = arith.constant 6 : index
    %c0_209 = arith.constant 0 : index
    %c0_210 = arith.constant 0 : index
    %122 = vector.load %arg2[%c6, %c0_209, %c0_210] : memref<9x4x8xf32, #tpu.memory_space<vmem>>, vector<1x4x8xf32>
    %123 = vector.shape_cast %122 : vector<1x4x8xf32> to vector<4x8xf32>
    %cst_211 = arith.constant dense<0.000000e+00> : vector<256x8xf32>
    %124 = tpu.matmul %121, %123, %cst_211 {dimension_numbers = #tpu.dot_dimension_numbers<[1], [0], [0], [1], [0, 0, 1, 1], [], []>} : vector<256x4xf32>, vector<4x8xf32>, vector<256x8xf32> -> vector<256x8xf32>
    %125 = arith.addf %108, %124 : vector<256x8xf32>
    %c1_212 = arith.constant 1 : index
    %c0_213 = arith.constant 0 : index
    %c0_214 = arith.constant 0 : index
    %c1_215 = arith.constant 1 : index
    %c1_216 = arith.constant 1 : index
    %c0_217 = arith.constant 0 : index
    %126 = vector.load %arg1[%c1_212, %c0_213, %c0_214, %c1_215, %c1_216, %c0_217] : memref<2x2x1x10x10x4xf32, #tpu.memory_space<vmem>>, vector<1x1x1x8x8x4xf32>
    %127 = vector.shape_cast %126 : vector<1x1x1x8x8x4xf32> to vector<1x8x8x4xf32>
    %128 = vector.shape_cast %127 : vector<1x8x8x4xf32> to vector<64x4xf32>
    %c1_218 = arith.constant 1 : index
    %c1_219 = arith.constant 1 : index
    %c0_220 = arith.constant 0 : index
    %c1_221 = arith.constant 1 : index
    %c1_222 = arith.constant 1 : index
    %c0_223 = arith.constant 0 : index
    %129 = vector.load %arg1[%c1_218, %c1_219, %c0_220, %c1_221, %c1_222, %c0_223] : memref<2x2x1x10x10x4xf32, #tpu.memory_space<vmem>>, vector<1x1x1x8x8x4xf32>
    %130 = vector.shape_cast %129 : vector<1x1x1x8x8x4xf32> to vector<1x8x8x4xf32>
    %131 = vector.shape_cast %130 : vector<1x8x8x4xf32> to vector<64x4xf32>
    %c0_224 = arith.constant 0 : index
    %c0_225 = arith.constant 0 : index
    %c0_226 = arith.constant 0 : index
    %c2_227 = arith.constant 2 : index
    %c1_228 = arith.constant 1 : index
    %c0_229 = arith.constant 0 : index
    %132 = vector.load %arg1[%c0_224, %c0_225, %c0_226, %c2_227, %c1_228, %c0_229] : memref<2x2x1x10x10x4xf32, #tpu.memory_space<vmem>>, vector<1x1x1x8x8x4xf32>
    %133 = vector.shape_cast %132 : vector<1x1x1x8x8x4xf32> to vector<1x8x8x4xf32>
    %134 = vector.shape_cast %133 : vector<1x8x8x4xf32> to vector<64x4xf32>
    %c0_230 = arith.constant 0 : index
    %c1_231 = arith.constant 1 : index
    %c0_232 = arith.constant 0 : index
    %c2_233 = arith.constant 2 : index
    %c1_234 = arith.constant 1 : index
    %c0_235 = arith.constant 0 : index
    %135 = vector.load %arg1[%c0_230, %c1_231, %c0_232, %c2_233, %c1_234, %c0_235] : memref<2x2x1x10x10x4xf32, #tpu.memory_space<vmem>>, vector<1x1x1x8x8x4xf32>
    %136 = vector.shape_cast %135 : vector<1x1x1x8x8x4xf32> to vector<1x8x8x4xf32>
    %137 = vector.shape_cast %136 : vector<1x8x8x4xf32> to vector<64x4xf32>
    %138 = tpu.concatenate %128, %131, %134, %137 in 0 : vector<64x4xf32>, vector<64x4xf32>, vector<64x4xf32>, vector<64x4xf32> -> vector<256x4xf32>
    %c7_236 = arith.constant 7 : index
    %c0_237 = arith.constant 0 : index
    %c0_238 = arith.constant 0 : index
    %139 = vector.load %arg2[%c7_236, %c0_237, %c0_238] : memref<9x4x8xf32, #tpu.memory_space<vmem>>, vector<1x4x8xf32>
    %140 = vector.shape_cast %139 : vector<1x4x8xf32> to vector<4x8xf32>
    %cst_239 = arith.constant dense<0.000000e+00> : vector<256x8xf32>
    %141 = tpu.matmul %138, %140, %cst_239 {dimension_numbers = #tpu.dot_dimension_numbers<[1], [0], [0], [1], [0, 0, 1, 1], [], []>} : vector<256x4xf32>, vector<4x8xf32>, vector<256x8xf32> -> vector<256x8xf32>
    %142 = arith.addf %125, %141 : vector<256x8xf32>
    %c1_240 = arith.constant 1 : index
    %c1_241 = arith.constant 1 : index
    %c0_242 = arith.constant 0 : index
    %c1_243 = arith.constant 1 : index
    %c1_244 = arith.constant 1 : index
    %c0_245 = arith.constant 0 : index
    %143 = vector.load %arg1[%c1_240, %c1_241, %c0_242, %c1_243, %c1_244, %c0_245] : memref<2x2x1x10x10x4xf32, #tpu.memory_space<vmem>>, vector<1x1x1x8x8x4xf32>
    %144 = vector.shape_cast %143 : vector<1x1x1x8x8x4xf32> to vector<1x8x8x4xf32>
    %145 = vector.shape_cast %144 : vector<1x8x8x4xf32> to vector<64x4xf32>
    %c1_246 = arith.constant 1 : index
    %c0_247 = arith.constant 0 : index
    %c0_248 = arith.constant 0 : index
    %c1_249 = arith.constant 1 : index
    %c2_250 = arith.constant 2 : index
    %c0_251 = arith.constant 0 : index
    %146 = vector.load %arg1[%c1_246, %c0_247, %c0_248, %c1_249, %c2_250, %c0_251] : memref<2x2x1x10x10x4xf32, #tpu.memory_space<vmem>>, vector<1x1x1x8x8x4xf32>
    %147 = vector.shape_cast %146 : vector<1x1x1x8x8x4xf32> to vector<1x8x8x4xf32>
    %148 = vector.shape_cast %147 : vector<1x8x8x4xf32> to vector<64x4xf32>
    %c0_252 = arith.constant 0 : index
    %c1_253 = arith.constant 1 : index
    %c0_254 = arith.constant 0 : index
    %c2_255 = arith.constant 2 : index
    %c1_256 = arith.constant 1 : index
    %c0_257 = arith.constant 0 : index
    %149 = vector.load %arg1[%c0_252, %c1_253, %c0_254, %c2_255, %c1_256, %c0_257] : memref<2x2x1x10x10x4xf32, #tpu.memory_space<vmem>>, vector<1x1x1x8x8x4xf32>
    %150 = vector.shape_cast %149 : vector<1x1x1x8x8x4xf32> to vector<1x8x8x4xf32>
    %151 = vector.shape_cast %150 : vector<1x8x8x4xf32> to vector<64x4xf32>
    %c0_258 = arith.constant 0 : index
    %c0_259 = arith.constant 0 : index
    %c0_260 = arith.constant 0 : index
    %c2_261 = arith.constant 2 : index
    %c2_262 = arith.constant 2 : index
    %c0_263 = arith.constant 0 : index
    %152 = vector.load %arg1[%c0_258, %c0_259, %c0_260, %c2_261, %c2_262, %c0_263] : memref<2x2x1x10x10x4xf32, #tpu.memory_space<vmem>>, vector<1x1x1x8x8x4xf32>
    %153 = vector.shape_cast %152 : vector<1x1x1x8x8x4xf32> to vector<1x8x8x4xf32>
    %154 = vector.shape_cast %153 : vector<1x8x8x4xf32> to vector<64x4xf32>
    %155 = tpu.concatenate %145, %148, %151, %154 in 0 : vector<64x4xf32>, vector<64x4xf32>, vector<64x4xf32>, vector<64x4xf32> -> vector<256x4xf32>
    %c8 = arith.constant 8 : index
    %c0_264 = arith.constant 0 : index
    %c0_265 = arith.constant 0 : index
    %156 = vector.load %arg2[%c8, %c0_264, %c0_265] : memref<9x4x8xf32, #tpu.memory_space<vmem>>, vector<1x4x8xf32>
    %157 = vector.shape_cast %156 : vector<1x4x8xf32> to vector<4x8xf32>
    %cst_266 = arith.constant dense<0.000000e+00> : vector<256x8xf32>
    %158 = tpu.matmul %155, %157, %cst_266 {dimension_numbers = #tpu.dot_dimension_numbers<[1], [0], [0], [1], [0, 0, 1, 1], [], []>} : vector<256x4xf32>, vector<4x8xf32>, vector<256x8xf32> -> vector<256x8xf32>
    %159 = arith.addf %142, %158 : vector<256x8xf32>
    %c0_267 = arith.constant 0 : index
    %c0_268 = arith.constant 0 : index
    %160 = vector.load %arg3[%c0_267, %c0_268] : memref<1x8xf32, #tpu.memory_space<vmem>>, vector<1x8xf32>
    %161 = vector.broadcast %160 : vector<1x8xf32> to vector<256x8xf32>
    %162 = arith.addf %159, %161 : vector<256x8xf32>
    %cst_269 = arith.constant 0.000000e+00 : f32
    %163 = vector.broadcast %cst_269 : f32 to vector<256x8xf32>
    %164 = arith.maximumf %162, %163 : vector<256x8xf32>
    %165 = vector.shape_cast %164 : vector<256x8xf32> to vector<2x2x1x8x8x8xf32>
    %c0_270 = arith.constant 0 : index
    %c0_271 = arith.constant 0 : index
    %c0_272 = arith.constant 0 : index
    %c1_273 = arith.constant 1 : index
    %c8_274 = arith.constant 8 : index
    %c0_275 = arith.constant 0 : index
    %166 = vector.load %arg10[%c0_270, %c0_271, %c0_272, %c1_273, %c8_274, %c0_275] : memref<2x2x1x10x24x8xf32, #tpu.memory_space<vmem>>, vector<2x2x1x8x8x8xf32>
    tpu.vector_store %arg10[%c0_270, %c0_271, %c0_272, %c1_273, %c8_274, %c0_275], %165 {strides = array<i32>} : memref<2x2x1x10x24x8xf32, #tpu.memory_space<vmem>>, vector<2x2x1x8x8x8xf32>,
    %cst_276 = arith.constant 0.000000e+00 : f32
    %167 = vector.broadcast %cst_276 : f32 to vector<256x8xf32>
    %c1_277 = arith.constant 1 : index
    %c1_278 = arith.constant 1 : index
    %c0_279 = arith.constant 0 : index
    %c0_280 = arith.constant 0 : index
    %c7_281 = arith.constant 7 : index
    %c0_282 = arith.constant 0 : index
    %168 = vector.load %arg10[%c1_277, %c1_278, %c0_279, %c0_280, %c7_281, %c0_282] : memref<2x2x1x10x24x8xf32, #tpu.memory_space<vmem>>, vector<1x1x1x8x8x8xf32>
    %169 = vector.shape_cast %168 : vector<1x1x1x8x8x8xf32> to vector<1x8x8x8xf32>
    %170 = vector.shape_cast %169 : vector<1x8x8x8xf32> to vector<64x8xf32>
    %c1_283 = arith.constant 1 : index
    %c0_284 = arith.constant 0 : index
    %c0_285 = arith.constant 0 : index
    %c0_286 = arith.constant 0 : index
    %c8_287 = arith.constant 8 : index
    %c0_288 = arith.constant 0 : index
    %171 = vector.load %arg10[%c1_283, %c0_284, %c0_285, %c0_286, %c8_287, %c0_288] : memref<2x2x1x10x24x8xf32, #tpu.memory_space<vmem>>, vector<1x1x1x8x8x8xf32>
    %172 = vector.shape_cast %171 : vector<1x1x1x8x8x8xf32> to vector<1x8x8x8xf32>
    %173 = vector.shape_cast %172 : vector<1x8x8x8xf32> to vector<64x8xf32>
    %c0_289 = arith.constant 0 : index
    %c1_290 = arith.constant 1 : index
    %c0_291 = arith.constant 0 : index
    %c1_292 = arith.constant 1 : index
    %c7_293 = arith.constant 7 : index
    %c0_294 = arith.constant 0 : index
    %174 = vector.load %arg10[%c0_289, %c1_290, %c0_291, %c1_292, %c7_293, %c0_294] : memref<2x2x1x10x24x8xf32, #tpu.memory_space<vmem>>, vector<1x1x1x8x8x8xf32>
    %175 = vector.shape_cast %174 : vector<1x1x1x8x8x8xf32> to vector<1x8x8x8xf32>
    %176 = vector.shape_cast %175 : vector<1x8x8x8xf32> to vector<64x8xf32>
    %c0_295 = arith.constant 0 : index
    %c0_296 = arith.constant 0 : index
    %c0_297 = arith.constant 0 : index
    %c1_298 = arith.constant 1 : index
    %c8_299 = arith.constant 8 : index
    %c0_300 = arith.constant 0 : index
    %177 = vector.load %arg10[%c0_295, %c0_296, %c0_297, %c1_298, %c8_299, %c0_300] : memref<2x2x1x10x24x8xf32, #tpu.memory_space<vmem>>, vector<1x1x1x8x8x8xf32>
    %178 = vector.shape_cast %177 : vector<1x1x1x8x8x8xf32> to vector<1x8x8x8xf32>
    %179 = vector.shape_cast %178 : vector<1x8x8x8xf32> to vector<64x8xf32>
    %180 = tpu.concatenate %170, %173, %176, %179 in 0 : vector<64x8xf32>, vector<64x8xf32>, vector<64x8xf32>, vector<64x8xf32> -> vector<256x8xf32>
    %c0_301 = arith.constant 0 : index
    %c0_302 = arith.constant 0 : index
    %c0_303 = arith.constant 0 : index
    %181 = vector.load %arg4[%c0_301, %c0_302, %c0_303] : memref<9x8x8xf32, #tpu.memory_space<vmem>>, vector<1x8x8xf32>
    %182 = vector.shape_cast %181 : vector<1x8x8xf32> to vector<8x8xf32>
    %cst_304 = arith.constant dense<0.000000e+00> : vector<256x8xf32>
    %183 = tpu.matmul %180, %182, %cst_304 {dimension_numbers = #tpu.dot_dimension_numbers<[1], [0], [0], [1], [0, 0, 1, 1], [], []>} : vector<256x8xf32>, vector<8x8xf32>, vector<256x8xf32> -> vector<256x8xf32>
    %184 = arith.addf %167, %183 : vector<256x8xf32>
    %c1_305 = arith.constant 1 : index
    %c0_306 = arith.constant 0 : index
    %c0_307 = arith.constant 0 : index
    %c0_308 = arith.constant 0 : index
    %c8_309 = arith.constant 8 : index
    %c0_310 = arith.constant 0 : index
    %185 = vector.load %arg10[%c1_305, %c0_306, %c0_307, %c0_308, %c8_309, %c0_310] : memref<2x2x1x10x24x8xf32, #tpu.memory_space<vmem>>, vector<1x1x1x8x8x8xf32>
    %186 = vector.shape_cast %185 : vector<1x1x1x8x8x8xf32> to vector<1x8x8x8xf32>
    %187 = vector.shape_cast %186 : vector<1x8x8x8xf32> to vector<64x8xf32>
    %c1_311 = arith.constant 1 : index
    %c1_312 = arith.constant 1 : index
    %c0_313 = arith.constant 0 : index
    %c0_314 = arith.constant 0 : index
    %c8_315 = arith.constant 8 : index
    %c0_316 = arith.constant 0 : index
    %188 = vector.load %arg10[%c1_311, %c1_312, %c0_313, %c0_314, %c8_315, %c0_316] : memref<2x2x1x10x24x8xf32, #tpu.memory_space<vmem>>, vector<1x1x1x8x8x8xf32>
    %189 = vector.shape_cast %188 : vector<1x1x1x8x8x8xf32> to vector<1x8x8x8xf32>
    %190 = vector.shape_cast %189 : vector<1x8x8x8xf32> to vector<64x8xf32>
    %c0_317 = arith.constant 0 : index
    %c0_318 = arith.constant 0 : index
    %c0_319 = arith.constant 0 : index
    %c1_320 = arith.constant 1 : index
    %c8_321 = arith.constant 8 : index
    %c0_322 = arith.constant 0 : index
    %191 = vector.load %arg10[%c0_317, %c0_318, %c0_319, %c1_320, %c8_321, %c0_322] : memref<2x2x1x10x24x8xf32, #tpu.memory_space<vmem>>, vector<1x1x1x8x8x8xf32>
    %192 = vector.shape_cast %191 : vector<1x1x1x8x8x8xf32> to vector<1x8x8x8xf32>
    %193 = vector.shape_cast %192 : vector<1x8x8x8xf32> to vector<64x8xf32>
    %c0_323 = arith.constant 0 : index
    %c1_324 = arith.constant 1 : index
    %c0_325 = arith.constant 0 : index
    %c1_326 = arith.constant 1 : index
    %c8_327 = arith.constant 8 : index
    %c0_328 = arith.constant 0 : index
    %194 = vector.load %arg10[%c0_323, %c1_324, %c0_325, %c1_326, %c8_327, %c0_328] : memref<2x2x1x10x24x8xf32, #tpu.memory_space<vmem>>, vector<1x1x1x8x8x8xf32>
    %195 = vector.shape_cast %194 : vector<1x1x1x8x8x8xf32> to vector<1x8x8x8xf32>
    %196 = vector.shape_cast %195 : vector<1x8x8x8xf32> to vector<64x8xf32>
    %197 = tpu.concatenate %187, %190, %193, %196 in 0 : vector<64x8xf32>, vector<64x8xf32>, vector<64x8xf32>, vector<64x8xf32> -> vector<256x8xf32>
    %c1_329 = arith.constant 1 : index
    %c0_330 = arith.constant 0 : index
    %c0_331 = arith.constant 0 : index
    %198 = vector.load %arg4[%c1_329, %c0_330, %c0_331] : memref<9x8x8xf32, #tpu.memory_space<vmem>>, vector<1x8x8xf32>
    %199 = vector.shape_cast %198 : vector<1x8x8xf32> to vector<8x8xf32>
    %cst_332 = arith.constant dense<0.000000e+00> : vector<256x8xf32>
    %200 = tpu.matmul %197, %199, %cst_332 {dimension_numbers = #tpu.dot_dimension_numbers<[1], [0], [0], [1], [0, 0, 1, 1], [], []>} : vector<256x8xf32>, vector<8x8xf32>, vector<256x8xf32> -> vector<256x8xf32>
    %201 = arith.addf %184, %200 : vector<256x8xf32>
    %c1_333 = arith.constant 1 : index
    %c1_334 = arith.constant 1 : index
    %c0_335 = arith.constant 0 : index
    %c0_336 = arith.constant 0 : index
    %c8_337 = arith.constant 8 : index
    %c0_338 = arith.constant 0 : index
    %202 = vector.load %arg10[%c1_333, %c1_334, %c0_335, %c0_336, %c8_337, %c0_338] : memref<2x2x1x10x24x8xf32, #tpu.memory_space<vmem>>, vector<1x1x1x8x8x8xf32>
    %203 = vector.shape_cast %202 : vector<1x1x1x8x8x8xf32> to vector<1x8x8x8xf32>
    %204 = vector.shape_cast %203 : vector<1x8x8x8xf32> to vector<64x8xf32>
    %c1_339 = arith.constant 1 : index
    %c0_340 = arith.constant 0 : index
    %c0_341 = arith.constant 0 : index
    %c0_342 = arith.constant 0 : index
    %c9_343 = arith.constant 9 : index
    %c0_344 = arith.constant 0 : index
    %205 = vector.load %arg10[%c1_339, %c0_340, %c0_341, %c0_342, %c9_343, %c0_344] : memref<2x2x1x10x24x8xf32, #tpu.memory_space<vmem>>, vector<1x1x1x8x8x8xf32>
    %206 = vector.shape_cast %205 : vector<1x1x1x8x8x8xf32> to vector<1x8x8x8xf32>
    %207 = vector.shape_cast %206 : vector<1x8x8x8xf32> to vector<64x8xf32>
    %c0_345 = arith.constant 0 : index
    %c1_346 = arith.constant 1 : index
    %c0_347 = arith.constant 0 : index
    %c1_348 = arith.constant 1 : index
    %c8_349 = arith.constant 8 : index
    %c0_350 = arith.constant 0 : index
    %208 = vector.load %arg10[%c0_345, %c1_346, %c0_347, %c1_348, %c8_349, %c0_350] : memref<2x2x1x10x24x8xf32, #tpu.memory_space<vmem>>, vector<1x1x1x8x8x8xf32>
    %209 = vector.shape_cast %208 : vector<1x1x1x8x8x8xf32> to vector<1x8x8x8xf32>
    %210 = vector.shape_cast %209 : vector<1x8x8x8xf32> to vector<64x8xf32>
    %c0_351 = arith.constant 0 : index
    %c0_352 = arith.constant 0 : index
    %c0_353 = arith.constant 0 : index
    %c1_354 = arith.constant 1 : index
    %c9_355 = arith.constant 9 : index
    %c0_356 = arith.constant 0 : index
    %211 = vector.load %arg10[%c0_351, %c0_352, %c0_353, %c1_354, %c9_355, %c0_356] : memref<2x2x1x10x24x8xf32, #tpu.memory_space<vmem>>, vector<1x1x1x8x8x8xf32>
    %212 = vector.shape_cast %211 : vector<1x1x1x8x8x8xf32> to vector<1x8x8x8xf32>
    %213 = vector.shape_cast %212 : vector<1x8x8x8xf32> to vector<64x8xf32>
    %214 = tpu.concatenate %204, %207, %210, %213 in 0 : vector<64x8xf32>, vector<64x8xf32>, vector<64x8xf32>, vector<64x8xf32> -> vector<256x8xf32>
    %c2_357 = arith.constant 2 : index
    %c0_358 = arith.constant 0 : index
    %c0_359 = arith.constant 0 : index
    %215 = vector.load %arg4[%c2_357, %c0_358, %c0_359] : memref<9x8x8xf32, #tpu.memory_space<vmem>>, vector<1x8x8xf32>
    %216 = vector.shape_cast %215 : vector<1x8x8xf32> to vector<8x8xf32>
    %cst_360 = arith.constant dense<0.000000e+00> : vector<256x8xf32>
    %217 = tpu.matmul %214, %216, %cst_360 {dimension_numbers = #tpu.dot_dimension_numbers<[1], [0], [0], [1], [0, 0, 1, 1], [], []>} : vector<256x8xf32>, vector<8x8xf32>, vector<256x8xf32> -> vector<256x8xf32>
    %218 = arith.addf %201, %217 : vector<256x8xf32>
    %c0_361 = arith.constant 0 : index
    %c1_362 = arith.constant 1 : index
    %c0_363 = arith.constant 0 : index
    %c1_364 = arith.constant 1 : index
    %c7_365 = arith.constant 7 : index
    %c0_366 = arith.constant 0 : index
    %219 = vector.load %arg10[%c0_361, %c1_362, %c0_363, %c1_364, %c7_365, %c0_366] : memref<2x2x1x10x24x8xf32, #tpu.memory_space<vmem>>, vector<1x1x1x8x8x8xf32>
    %220 = vector.shape_cast %219 : vector<1x1x1x8x8x8xf32> to vector<1x8x8x8xf32>
    %221 = vector.shape_cast %220 : vector<1x8x8x8xf32> to vector<64x8xf32>
    %c0_367 = arith.constant 0 : index
    %c0_368 = arith.constant 0 : index
    %c0_369 = arith.constant 0 : index
    %c1_370 = arith.constant 1 : index
    %c8_371 = arith.constant 8 : index
    %c0_372 = arith.constant 0 : index
    %222 = vector.load %arg10[%c0_367, %c0_368, %c0_369, %c1_370, %c8_371, %c0_372] : memref<2x2x1x10x24x8xf32, #tpu.memory_space<vmem>>, vector<1x1x1x8x8x8xf32>
    %223 = vector.shape_cast %222 : vector<1x1x1x8x8x8xf32> to vector<1x8x8x8xf32>
    %224 = vector.shape_cast %223 : vector<1x8x8x8xf32> to vector<64x8xf32>
    %c1_373 = arith.constant 1 : index
    %c1_374 = arith.constant 1 : index
    %c0_375 = arith.constant 0 : index
    %c1_376 = arith.constant 1 : index
    %c7_377 = arith.constant 7 : index
    %c0_378 = arith.constant 0 : index
    %225 = vector.load %arg10[%c1_373, %c1_374, %c0_375, %c1_376, %c7_377, %c0_378] : memref<2x2x1x10x24x8xf32, #tpu.memory_space<vmem>>, vector<1x1x1x8x8x8xf32>
    %226 = vector.shape_cast %225 : vector<1x1x1x8x8x8xf32> to vector<1x8x8x8xf32>
    %227 = vector.shape_cast %226 : vector<1x8x8x8xf32> to vector<64x8xf32>
    %c1_379 = arith.constant 1 : index
    %c0_380 = arith.constant 0 : index
    %c0_381 = arith.constant 0 : index
    %c1_382 = arith.constant 1 : index
    %c8_383 = arith.constant 8 : index
    %c0_384 = arith.constant 0 : index
    %228 = vector.load %arg10[%c1_379, %c0_380, %c0_381, %c1_382, %c8_383, %c0_384] : memref<2x2x1x10x24x8xf32, #tpu.memory_space<vmem>>, vector<1x1x1x8x8x8xf32>
    %229 = vector.shape_cast %228 : vector<1x1x1x8x8x8xf32> to vector<1x8x8x8xf32>
    %230 = vector.shape_cast %229 : vector<1x8x8x8xf32> to vector<64x8xf32>
    %231 = tpu.concatenate %221, %224, %227, %230 in 0 : vector<64x8xf32>, vector<64x8xf32>, vector<64x8xf32>, vector<64x8xf32> -> vector<256x8xf32>
    %c3_385 = arith.constant 3 : index
    %c0_386 = arith.constant 0 : index
    %c0_387 = arith.constant 0 : index
    %232 = vector.load %arg4[%c3_385, %c0_386, %c0_387] : memref<9x8x8xf32, #tpu.memory_space<vmem>>, vector<1x8x8xf32>
    %233 = vector.shape_cast %232 : vector<1x8x8xf32> to vector<8x8xf32>
    %cst_388 = arith.constant dense<0.000000e+00> : vector<256x8xf32>
    %234 = tpu.matmul %231, %233, %cst_388 {dimension_numbers = #tpu.dot_dimension_numbers<[1], [0], [0], [1], [0, 0, 1, 1], [], []>} : vector<256x8xf32>, vector<8x8xf32>, vector<256x8xf32> -> vector<256x8xf32>
    %235 = arith.addf %218, %234 : vector<256x8xf32>
    %c0_389 = arith.constant 0 : index
    %c0_390 = arith.constant 0 : index
    %c0_391 = arith.constant 0 : index
    %c1_392 = arith.constant 1 : index
    %c8_393 = arith.constant 8 : index
    %c0_394 = arith.constant 0 : index
    %236 = vector.load %arg10[%c0_389, %c0_390, %c0_391, %c1_392, %c8_393, %c0_394] : memref<2x2x1x10x24x8xf32, #tpu.memory_space<vmem>>, vector<1x1x1x8x8x8xf32>
    %237 = vector.shape_cast %236 : vector<1x1x1x8x8x8xf32> to vector<1x8x8x8xf32>
    %238 = vector.shape_cast %237 : vector<1x8x8x8xf32> to vector<64x8xf32>
    %c0_395 = arith.constant 0 : index
    %c1_396 = arith.constant 1 : index
    %c0_397 = arith.constant 0 : index
    %c1_398 = arith.constant 1 : index
    %c8_399 = arith.constant 8 : index
    %c0_400 = arith.constant 0 : index
    %239 = vector.load %arg10[%c0_395, %c1_396, %c0_397, %c1_398, %c8_399, %c0_400] : memref<2x2x1x10x24x8xf32, #tpu.memory_space<vmem>>, vector<1x1x1x8x8x8xf32>
    %240 = vector.shape_cast %239 : vector<1x1x1x8x8x8xf32> to vector<1x8x8x8xf32>
    %241 = vector.shape_cast %240 : vector<1x8x8x8xf32> to vector<64x8xf32>
    %c1_401 = arith.constant 1 : index
    %c0_402 = arith.constant 0 : index
    %c0_403 = arith.constant 0 : index
    %c1_404 = arith.constant 1 : index
    %c8_405 = arith.constant 8 : index
    %c0_406 = arith.constant 0 : index
    %242 = vector.load %arg10[%c1_401, %c0_402, %c0_403, %c1_404, %c8_405, %c0_406] : memref<2x2x1x10x24x8xf32, #tpu.memory_space<vmem>>, vector<1x1x1x8x8x8xf32>
    %243 = vector.shape_cast %242 : vector<1x1x1x8x8x8xf32> to vector<1x8x8x8xf32>
    %244 = vector.shape_cast %243 : vector<1x8x8x8xf32> to vector<64x8xf32>
    %c1_407 = arith.constant 1 : index
    %c1_408 = arith.constant 1 : index
    %c0_409 = arith.constant 0 : index
    %c1_410 = arith.constant 1 : index
    %c8_411 = arith.constant 8 : index
    %c0_412 = arith.constant 0 : index
    %245 = vector.load %arg10[%c1_407, %c1_408, %c0_409, %c1_410, %c8_411, %c0_412] : memref<2x2x1x10x24x8xf32, #tpu.memory_space<vmem>>, vector<1x1x1x8x8x8xf32>
    %246 = vector.shape_cast %245 : vector<1x1x1x8x8x8xf32> to vector<1x8x8x8xf32>
    %247 = vector.shape_cast %246 : vector<1x8x8x8xf32> to vector<64x8xf32>
    %248 = tpu.concatenate %238, %241, %244, %247 in 0 : vector<64x8xf32>, vector<64x8xf32>, vector<64x8xf32>, vector<64x8xf32> -> vector<256x8xf32>
    %c4_413 = arith.constant 4 : index
    %c0_414 = arith.constant 0 : index
    %c0_415 = arith.constant 0 : index
    %249 = vector.load %arg4[%c4_413, %c0_414, %c0_415] : memref<9x8x8xf32, #tpu.memory_space<vmem>>, vector<1x8x8xf32>
    %250 = vector.shape_cast %249 : vector<1x8x8xf32> to vector<8x8xf32>
    %cst_416 = arith.constant dense<0.000000e+00> : vector<256x8xf32>
    %251 = tpu.matmul %248, %250, %cst_416 {dimension_numbers = #tpu.dot_dimension_numbers<[1], [0], [0], [1], [0, 0, 1, 1], [], []>} : vector<256x8xf32>, vector<8x8xf32>, vector<256x8xf32> -> vector<256x8xf32>
    %252 = arith.addf %235, %251 : vector<256x8xf32>
    %c0_417 = arith.constant 0 : index
    %c1_418 = arith.constant 1 : index
    %c0_419 = arith.constant 0 : index
    %c1_420 = arith.constant 1 : index
    %c8_421 = arith.constant 8 : index
    %c0_422 = arith.constant 0 : index
    %253 = vector.load %arg10[%c0_417, %c1_418, %c0_419, %c1_420, %c8_421, %c0_422] : memref<2x2x1x10x24x8xf32, #tpu.memory_space<vmem>>, vector<1x1x1x8x8x8xf32>
    %254 = vector.shape_cast %253 : vector<1x1x1x8x8x8xf32> to vector<1x8x8x8xf32>
    %255 = vector.shape_cast %254 : vector<1x8x8x8xf32> to vector<64x8xf32>
    %c0_423 = arith.constant 0 : index
    %c0_424 = arith.constant 0 : index
    %c0_425 = arith.constant 0 : index
    %c1_426 = arith.constant 1 : index
    %c9_427 = arith.constant 9 : index
    %c0_428 = arith.constant 0 : index
    %256 = vector.load %arg10[%c0_423, %c0_424, %c0_425, %c1_426, %c9_427, %c0_428] : memref<2x2x1x10x24x8xf32, #tpu.memory_space<vmem>>, vector<1x1x1x8x8x8xf32>
    %257 = vector.shape_cast %256 : vector<1x1x1x8x8x8xf32> to vector<1x8x8x8xf32>
    %258 = vector.shape_cast %257 : vector<1x8x8x8xf32> to vector<64x8xf32>
    %c1_429 = arith.constant 1 : index
    %c1_430 = arith.constant 1 : index
    %c0_431 = arith.constant 0 : index
    %c1_432 = arith.constant 1 : index
    %c8_433 = arith.constant 8 : index
    %c0_434 = arith.constant 0 : index
    %259 = vector.load %arg10[%c1_429, %c1_430, %c0_431, %c1_432, %c8_433, %c0_434] : memref<2x2x1x10x24x8xf32, #tpu.memory_space<vmem>>, vector<1x1x1x8x8x8xf32>
    %260 = vector.shape_cast %259 : vector<1x1x1x8x8x8xf32> to vector<1x8x8x8xf32>
    %261 = vector.shape_cast %260 : vector<1x8x8x8xf32> to vector<64x8xf32>
    %c1_435 = arith.constant 1 : index
    %c0_436 = arith.constant 0 : index
    %c0_437 = arith.constant 0 : index
    %c1_438 = arith.constant 1 : index
    %c9_439 = arith.constant 9 : index
    %c0_440 = arith.constant 0 : index
    %262 = vector.load %arg10[%c1_435, %c0_436, %c0_437, %c1_438, %c9_439, %c0_440] : memref<2x2x1x10x24x8xf32, #tpu.memory_space<vmem>>, vector<1x1x1x8x8x8xf32>
    %263 = vector.shape_cast %262 : vector<1x1x1x8x8x8xf32> to vector<1x8x8x8xf32>
    %264 = vector.shape_cast %263 : vector<1x8x8x8xf32> to vector<64x8xf32>
    %265 = tpu.concatenate %255, %258, %261, %264 in 0 : vector<64x8xf32>, vector<64x8xf32>, vector<64x8xf32>, vector<64x8xf32> -> vector<256x8xf32>
    %c5_441 = arith.constant 5 : index
    %c0_442 = arith.constant 0 : index
    %c0_443 = arith.constant 0 : index
    %266 = vector.load %arg4[%c5_441, %c0_442, %c0_443] : memref<9x8x8xf32, #tpu.memory_space<vmem>>, vector<1x8x8xf32>
    %267 = vector.shape_cast %266 : vector<1x8x8xf32> to vector<8x8xf32>
    %cst_444 = arith.constant dense<0.000000e+00> : vector<256x8xf32>
    %268 = tpu.matmul %265, %267, %cst_444 {dimension_numbers = #tpu.dot_dimension_numbers<[1], [0], [0], [1], [0, 0, 1, 1], [], []>} : vector<256x8xf32>, vector<8x8xf32>, vector<256x8xf32> -> vector<256x8xf32>
    %269 = arith.addf %252, %268 : vector<256x8xf32>
    %c1_445 = arith.constant 1 : index
    %c1_446 = arith.constant 1 : index
    %c0_447 = arith.constant 0 : index
    %c1_448 = arith.constant 1 : index
    %c7_449 = arith.constant 7 : index
    %c0_450 = arith.constant 0 : index
    %270 = vector.load %arg10[%c1_445, %c1_446, %c0_447, %c1_448, %c7_449, %c0_450] : memref<2x2x1x10x24x8xf32, #tpu.memory_space<vmem>>, vector<1x1x1x8x8x8xf32>
    %271 = vector.shape_cast %270 : vector<1x1x1x8x8x8xf32> to vector<1x8x8x8xf32>
    %272 = vector.shape_cast %271 : vector<1x8x8x8xf32> to vector<64x8xf32>
    %c1_451 = arith.constant 1 : index
    %c0_452 = arith.constant 0 : index
    %c0_453 = arith.constant 0 : index
    %c1_454 = arith.constant 1 : index
    %c8_455 = arith.constant 8 : index
    %c0_456 = arith.constant 0 : index
    %273 = vector.load %arg10[%c1_451, %c0_452, %c0_453, %c1_454, %c8_455, %c0_456] : memref<2x2x1x10x24x8xf32, #tpu.memory_space<vmem>>, vector<1x1x1x8x8x8xf32>
    %274 = vector.shape_cast %273 : vector<1x1x1x8x8x8xf32> to vector<1x8x8x8xf32>
    %275 = vector.shape_cast %274 : vector<1x8x8x8xf32> to vector<64x8xf32>
    %c0_457 = arith.constant 0 : index
    %c1_458 = arith.constant 1 : index
    %c0_459 = arith.constant 0 : index
    %c2_460 = arith.constant 2 : index
    %c7_461 = arith.constant 7 : index
    %c0_462 = arith.constant 0 : index
    %276 = vector.load %arg10[%c0_457, %c1_458, %c0_459, %c2_460, %c7_461, %c0_462] : memref<2x2x1x10x24x8xf32, #tpu.memory_space<vmem>>, vector<1x1x1x8x8x8xf32>
    %277 = vector.shape_cast %276 : vector<1x1x1x8x8x8xf32> to vector<1x8x8x8xf32>
    %278 = vector.shape_cast %277 : vector<1x8x8x8xf32> to vector<64x8xf32>
    %c0_463 = arith.constant 0 : index
    %c0_464 = arith.constant 0 : index
    %c0_465 = arith.constant 0 : index
    %c2_466 = arith.constant 2 : index
    %c8_467 = arith.constant 8 : index
    %c0_468 = arith.constant 0 : index
    %279 = vector.load %arg10[%c0_463, %c0_464, %c0_465, %c2_466, %c8_467, %c0_468] : memref<2x2x1x10x24x8xf32, #tpu.memory_space<vmem>>, vector<1x1x1x8x8x8xf32>
    %280 = vector.shape_cast %279 : vector<1x1x1x8x8x8xf32> to vector<1x8x8x8xf32>
    %281 = vector.shape_cast %280 : vector<1x8x8x8xf32> to vector<64x8xf32>
    %282 = tpu.concatenate %272, %275, %278, %281 in 0 : vector<64x8xf32>, vector<64x8xf32>, vector<64x8xf32>, vector<64x8xf32> -> vector<256x8xf32>
    %c6_469 = arith.constant 6 : index
    %c0_470 = arith.constant 0 : index
    %c0_471 = arith.constant 0 : index
    %283 = vector.load %arg4[%c6_469, %c0_470, %c0_471] : memref<9x8x8xf32, #tpu.memory_space<vmem>>, vector<1x8x8xf32>
    %284 = vector.shape_cast %283 : vector<1x8x8xf32> to vector<8x8xf32>
    %cst_472 = arith.constant dense<0.000000e+00> : vector<256x8xf32>
    %285 = tpu.matmul %282, %284, %cst_472 {dimension_numbers = #tpu.dot_dimension_numbers<[1], [0], [0], [1], [0, 0, 1, 1], [], []>} : vector<256x8xf32>, vector<8x8xf32>, vector<256x8xf32> -> vector<256x8xf32>
    %286 = arith.addf %269, %285 : vector<256x8xf32>
    %c1_473 = arith.constant 1 : index
    %c0_474 = arith.constant 0 : index
    %c0_475 = arith.constant 0 : index
    %c1_476 = arith.constant 1 : index
    %c8_477 = arith.constant 8 : index
    %c0_478 = arith.constant 0 : index
    %287 = vector.load %arg10[%c1_473, %c0_474, %c0_475, %c1_476, %c8_477, %c0_478] : memref<2x2x1x10x24x8xf32, #tpu.memory_space<vmem>>, vector<1x1x1x8x8x8xf32>
    %288 = vector.shape_cast %287 : vector<1x1x1x8x8x8xf32> to vector<1x8x8x8xf32>
    %289 = vector.shape_cast %288 : vector<1x8x8x8xf32> to vector<64x8xf32>
    %c1_479 = arith.constant 1 : index
    %c1_480 = arith.constant 1 : index
    %c0_481 = arith.constant 0 : index
    %c1_482 = arith.constant 1 : index
    %c8_483 = arith.constant 8 : index
    %c0_484 = arith.constant 0 : index
    %290 = vector.load %arg10[%c1_479, %c1_480, %c0_481, %c1_482, %c8_483, %c0_484] : memref<2x2x1x10x24x8xf32, #tpu.memory_space<vmem>>, vector<1x1x1x8x8x8xf32>
    %291 = vector.shape_cast %290 : vector<1x1x1x8x8x8xf32> to vector<1x8x8x8xf32>
    %292 = vector.shape_cast %291 : vector<1x8x8x8xf32> to vector<64x8xf32>
    %c0_485 = arith.constant 0 : index
    %c0_486 = arith.constant 0 : index
    %c0_487 = arith.constant 0 : index
    %c2_488 = arith.constant 2 : index
    %c8_489 = arith.constant 8 : index
    %c0_490 = arith.constant 0 : index
    %293 = vector.load %arg10[%c0_485, %c0_486, %c0_487, %c2_488, %c8_489, %c0_490] : memref<2x2x1x10x24x8xf32, #tpu.memory_space<vmem>>, vector<1x1x1x8x8x8xf32>
    %294 = vector.shape_cast %293 : vector<1x1x1x8x8x8xf32> to vector<1x8x8x8xf32>
    %295 = vector.shape_cast %294 : vector<1x8x8x8xf32> to vector<64x8xf32>
    %c0_491 = arith.constant 0 : index
    %c1_492 = arith.constant 1 : index
    %c0_493 = arith.constant 0 : index
    %c2_494 = arith.constant 2 : index
    %c8_495 = arith.constant 8 : index
    %c0_496 = arith.constant 0 : index
    %296 = vector.load %arg10[%c0_491, %c1_492, %c0_493, %c2_494, %c8_495, %c0_496] : memref<2x2x1x10x24x8xf32, #tpu.memory_space<vmem>>, vector<1x1x1x8x8x8xf32>
    %297 = vector.shape_cast %296 : vector<1x1x1x8x8x8xf32> to vector<1x8x8x8xf32>
    %298 = vector.shape_cast %297 : vector<1x8x8x8xf32> to vector<64x8xf32>
    %299 = tpu.concatenate %289, %292, %295, %298 in 0 : vector<64x8xf32>, vector<64x8xf32>, vector<64x8xf32>, vector<64x8xf32> -> vector<256x8xf32>
    %c7_497 = arith.constant 7 : index
    %c0_498 = arith.constant 0 : index
    %c0_499 = arith.constant 0 : index
    %300 = vector.load %arg4[%c7_497, %c0_498, %c0_499] : memref<9x8x8xf32, #tpu.memory_space<vmem>>, vector<1x8x8xf32>
    %301 = vector.shape_cast %300 : vector<1x8x8xf32> to vector<8x8xf32>
    %cst_500 = arith.constant dense<0.000000e+00> : vector<256x8xf32>
    %302 = tpu.matmul %299, %301, %cst_500 {dimension_numbers = #tpu.dot_dimension_numbers<[1], [0], [0], [1], [0, 0, 1, 1], [], []>} : vector<256x8xf32>, vector<8x8xf32>, vector<256x8xf32> -> vector<256x8xf32>
    %303 = arith.addf %286, %302 : vector<256x8xf32>
    %c1_501 = arith.constant 1 : index
    %c1_502 = arith.constant 1 : index
    %c0_503 = arith.constant 0 : index
    %c1_504 = arith.constant 1 : index
    %c8_505 = arith.constant 8 : index
    %c0_506 = arith.constant 0 : index
    %304 = vector.load %arg10[%c1_501, %c1_502, %c0_503, %c1_504, %c8_505, %c0_506] : memref<2x2x1x10x24x8xf32, #tpu.memory_space<vmem>>, vector<1x1x1x8x8x8xf32>
    %305 = vector.shape_cast %304 : vector<1x1x1x8x8x8xf32> to vector<1x8x8x8xf32>
    %306 = vector.shape_cast %305 : vector<1x8x8x8xf32> to vector<64x8xf32>
    %c1_507 = arith.constant 1 : index
    %c0_508 = arith.constant 0 : index
    %c0_509 = arith.constant 0 : index
    %c1_510 = arith.constant 1 : index
    %c9_511 = arith.constant 9 : index
    %c0_512 = arith.constant 0 : index
    %307 = vector.load %arg10[%c1_507, %c0_508, %c0_509, %c1_510, %c9_511, %c0_512] : memref<2x2x1x10x24x8xf32, #tpu.memory_space<vmem>>, vector<1x1x1x8x8x8xf32>
    %308 = vector.shape_cast %307 : vector<1x1x1x8x8x8xf32> to vector<1x8x8x8xf32>
    %309 = vector.shape_cast %308 : vector<1x8x8x8xf32> to vector<64x8xf32>
    %c0_513 = arith.constant 0 : index
    %c1_514 = arith.constant 1 : index
    %c0_515 = arith.constant 0 : index
    %c2_516 = arith.constant 2 : index
    %c8_517 = arith.constant 8 : index
    %c0_518 = arith.constant 0 : index
    %310 = vector.load %arg10[%c0_513, %c1_514, %c0_515, %c2_516, %c8_517, %c0_518] : memref<2x2x1x10x24x8xf32, #tpu.memory_space<vmem>>, vector<1x1x1x8x8x8xf32>
    %311 = vector.shape_cast %310 : vector<1x1x1x8x8x8xf32> to vector<1x8x8x8xf32>
    %312 = vector.shape_cast %311 : vector<1x8x8x8xf32> to vector<64x8xf32>
    %c0_519 = arith.constant 0 : index
    %c0_520 = arith.constant 0 : index
    %c0_521 = arith.constant 0 : index
    %c2_522 = arith.constant 2 : index
    %c9_523 = arith.constant 9 : index
    %c0_524 = arith.constant 0 : index
    %313 = vector.load %arg10[%c0_519, %c0_520, %c0_521, %c2_522, %c9_523, %c0_524] : memref<2x2x1x10x24x8xf32, #tpu.memory_space<vmem>>, vector<1x1x1x8x8x8xf32>
    %314 = vector.shape_cast %313 : vector<1x1x1x8x8x8xf32> to vector<1x8x8x8xf32>
    %315 = vector.shape_cast %314 : vector<1x8x8x8xf32> to vector<64x8xf32>
    %316 = tpu.concatenate %306, %309, %312, %315 in 0 : vector<64x8xf32>, vector<64x8xf32>, vector<64x8xf32>, vector<64x8xf32> -> vector<256x8xf32>
    %c8_525 = arith.constant 8 : index
    %c0_526 = arith.constant 0 : index
    %c0_527 = arith.constant 0 : index
    %317 = vector.load %arg4[%c8_525, %c0_526, %c0_527] : memref<9x8x8xf32, #tpu.memory_space<vmem>>, vector<1x8x8xf32>
    %318 = vector.shape_cast %317 : vector<1x8x8xf32> to vector<8x8xf32>
    %cst_528 = arith.constant dense<0.000000e+00> : vector<256x8xf32>
    %319 = tpu.matmul %316, %318, %cst_528 {dimension_numbers = #tpu.dot_dimension_numbers<[1], [0], [0], [1], [0, 0, 1, 1], [], []>} : vector<256x8xf32>, vector<8x8xf32>, vector<256x8xf32> -> vector<256x8xf32>
    %320 = arith.addf %303, %319 : vector<256x8xf32>
    %c0_529 = arith.constant 0 : index
    %c0_530 = arith.constant 0 : index
    %321 = vector.load %arg5[%c0_529, %c0_530] : memref<1x8xf32, #tpu.memory_space<vmem>>, vector<1x8xf32>
    %322 = vector.broadcast %321 : vector<1x8xf32> to vector<256x8xf32>
    %323 = arith.addf %320, %322 : vector<256x8xf32>
    %cst_531 = arith.constant 0.000000e+00 : f32
    %324 = vector.broadcast %cst_531 : f32 to vector<256x8xf32>
    %325 = arith.maximumf %323, %324 : vector<256x8xf32>
    %326 = vector.shape_cast %325 : vector<256x8xf32> to vector<2x2x1x8x8x8xf32>
    %c0_532 = arith.constant 0 : index
    %c0_533 = arith.constant 0 : index
    %c0_534 = arith.constant 0 : index
    %c0_535 = arith.constant 0 : index
    %c0_536 = arith.constant 0 : index
    %c0_537 = arith.constant 0 : index
    %327 = vector.load %arg8[%c0_532, %c0_533, %c0_534, %c0_535, %c0_536, %c0_537] : memref<2x2x1x8x8x8xf32, #tpu.memory_space<vmem>>, vector<2x2x1x8x8x8xf32>
    tpu.vector_store %arg8[%c0_532, %c0_533, %c0_534, %c0_535, %c0_536, %c0_537], %326 {strides = array<i32>} : memref<2x2x1x8x8x8xf32, #tpu.memory_space<vmem>>, vector<2x2x1x8x8x8xf32>,
    %cst_538 = arith.constant 0.000000e+00 : f32
    %328 = vector.broadcast %cst_538 : f32 to vector<64x8xf32>
    %329 = vector.extract_strided_slice %325 {offsets = [0, 0], sizes = [64, 8], strides = [1, 1]} : vector<256x8xf32> to vector<64x8xf32>
    %c0_539 = arith.constant 0 : index
    %c0_540 = arith.constant 0 : index
    %c0_541 = arith.constant 0 : index
    %330 = vector.load %arg6[%c0_539, %c0_540, %c0_541] : memref<4x8x8xf32, #tpu.memory_space<vmem>>, vector<1x8x8xf32>
    %331 = vector.shape_cast %330 : vector<1x8x8xf32> to vector<8x8xf32>
    %cst_542 = arith.constant dense<0.000000e+00> : vector<64x8xf32>
    %332 = tpu.matmul %329, %331, %cst_542 {dimension_numbers = #tpu.dot_dimension_numbers<[1], [0], [0], [1], [0, 0, 1, 1], [], []>} : vector<64x8xf32>, vector<8x8xf32>, vector<64x8xf32> -> vector<64x8xf32>
    %333 = arith.addf %328, %332 : vector<64x8xf32>
    %334 = vector.extract_strided_slice %325 {offsets = [64, 0], sizes = [64, 8], strides = [1, 1]} : vector<256x8xf32> to vector<64x8xf32>
    %c1_543 = arith.constant 1 : index
    %c0_544 = arith.constant 0 : index
    %c0_545 = arith.constant 0 : index
    %335 = vector.load %arg6[%c1_543, %c0_544, %c0_545] : memref<4x8x8xf32, #tpu.memory_space<vmem>>, vector<1x8x8xf32>
    %336 = vector.shape_cast %335 : vector<1x8x8xf32> to vector<8x8xf32>
    %cst_546 = arith.constant dense<0.000000e+00> : vector<64x8xf32>
    %337 = tpu.matmul %334, %336, %cst_546 {dimension_numbers = #tpu.dot_dimension_numbers<[1], [0], [0], [1], [0, 0, 1, 1], [], []>} : vector<64x8xf32>, vector<8x8xf32>, vector<64x8xf32> -> vector<64x8xf32>
    %338 = arith.addf %333, %337 : vector<64x8xf32>
    %339 = vector.extract_strided_slice %325 {offsets = [128, 0], sizes = [64, 8], strides = [1, 1]} : vector<256x8xf32> to vector<64x8xf32>
    %c2_547 = arith.constant 2 : index
    %c0_548 = arith.constant 0 : index
    %c0_549 = arith.constant 0 : index
    %340 = vector.load %arg6[%c2_547, %c0_548, %c0_549] : memref<4x8x8xf32, #tpu.memory_space<vmem>>, vector<1x8x8xf32>
    %341 = vector.shape_cast %340 : vector<1x8x8xf32> to vector<8x8xf32>
    %cst_550 = arith.constant dense<0.000000e+00> : vector<64x8xf32>
    %342 = tpu.matmul %339, %341, %cst_550 {dimension_numbers = #tpu.dot_dimension_numbers<[1], [0], [0], [1], [0, 0, 1, 1], [], []>} : vector<64x8xf32>, vector<8x8xf32>, vector<64x8xf32> -> vector<64x8xf32>
    %343 = arith.addf %338, %342 : vector<64x8xf32>
    %344 = vector.extract_strided_slice %325 {offsets = [192, 0], sizes = [64, 8], strides = [1, 1]} : vector<256x8xf32> to vector<64x8xf32>
    %c3_551 = arith.constant 3 : index
    %c0_552 = arith.constant 0 : index
    %c0_553 = arith.constant 0 : index
    %345 = vector.load %arg6[%c3_551, %c0_552, %c0_553] : memref<4x8x8xf32, #tpu.memory_space<vmem>>, vector<1x8x8xf32>
    %346 = vector.shape_cast %345 : vector<1x8x8xf32> to vector<8x8xf32>
    %cst_554 = arith.constant dense<0.000000e+00> : vector<64x8xf32>
    %347 = tpu.matmul %344, %346, %cst_554 {dimension_numbers = #tpu.dot_dimension_numbers<[1], [0], [0], [1], [0, 0, 1, 1], [], []>} : vector<64x8xf32>, vector<8x8xf32>, vector<64x8xf32> -> vector<64x8xf32>
    %348 = arith.addf %343, %347 : vector<64x8xf32>
    %c0_555 = arith.constant 0 : index
    %c0_556 = arith.constant 0 : index
    %349 = vector.load %arg7[%c0_555, %c0_556] : memref<1x8xf32, #tpu.memory_space<vmem>>, vector<1x8xf32>
    %350 = vector.broadcast %349 : vector<1x8xf32> to vector<64x8xf32>
    %351 = arith.addf %348, %350 : vector<64x8xf32>
    %352 = vector.shape_cast %351 : vector<64x8xf32> to vector<1x8x8x8xf32>
    %c0_557 = arith.constant 0 : index
    %c0_558 = arith.constant 0 : index
    %c0_559 = arith.constant 0 : index
    %c0_560 = arith.constant 0 : index
    %353 = vector.load %arg9[%c0_557, %c0_558, %c0_559, %c0_560] : memref<1x8x8x8xf32, #tpu.memory_space<vmem>>, vector<1x8x8x8xf32>
    tpu.vector_store %arg9[%c0_557, %c0_558, %c0_559, %c0_560], %352 {strides = array<i32>} : memref<1x8x8x8xf32, #tpu.memory_space<vmem>>, vector<1x8x8x8xf32>,
    return
  }
  func.func @transform_0(%arg0: i32) -> (i32, i32, i32, i32, i32, i32) {
    %c0_i32 = arith.constant 0 : i32
    %c0_i32_0 = arith.constant 0 : i32
    %c0_i32_1 = arith.constant 0 : i32
    %c0_i32_2 = arith.constant 0 : i32
    %c0_i32_3 = arith.constant 0 : i32
    %c0_i32_4 = arith.constant 0 : i32
    return %c0_i32, %c0_i32_0, %arg0, %c0_i32_1, %c0_i32_2, %c0_i32_3 : i32, i32, i32, i32, i32, i32
  }
  func.func @transform_1(%arg0: i32) -> (i32, i32, i32) {
    %c0_i32 = arith.constant 0 : i32
    %c0_i32_0 = arith.constant 0 : i32
    %c0_i32_1 = arith.constant 0 : i32
    %c0_i32_2 = arith.constant 0 : i32
    return %c0_i32, %c0_i32_0, %c0_i32_1 : i32, i32, i32
  }
  func.func @transform_2(%arg0: i32) -> (i32, i32) {
    %c0_i32 = arith.constant 0 : i32
    %c0_i32_0 = arith.constant 0 : i32
    %c0_i32_1 = arith.constant 0 : i32
    return %c0_i32, %c0_i32_0 : i32, i32
  }
  func.func @transform_3(%arg0: i32) -> (i32, i32, i32) {
    %c0_i32 = arith.constant 0 : i32
    %c0_i32_0 = arith.constant 0 : i32
    %c0_i32_1 = arith.constant 0 : i32
    %c0_i32_2 = arith.constant 0 : i32
    return %c0_i32, %c0_i32_0, %c0_i32_1 : i32, i32, i32
  }
  func.func @transform_4(%arg0: i32) -> (i32, i32) {
    %c0_i32 = arith.constant 0 : i32
    %c0_i32_0 = arith.constant 0 : i32
    %c0_i32_1 = arith.constant 0 : i32
    return %c0_i32, %c0_i32_0 : i32, i32
  }
  func.func @transform_5(%arg0: i32) -> (i32, i32, i32) {
    %c0_i32 = arith.constant 0 : i32
    %c0_i32_0 = arith.constant 0 : i32
    %c0_i32_1 = arith.constant 0 : i32
    %c0_i32_2 = arith.constant 0 : i32
    return %c0_i32, %c0_i32_0, %c0_i32_1 : i32, i32, i32
  }
  func.func @transform_6(%arg0: i32) -> (i32, i32) {
    %c0_i32 = arith.constant 0 : i32
    %c0_i32_0 = arith.constant 0 : i32
    %c0_i32_1 = arith.constant 0 : i32
    return %c0_i32, %c0_i32_0 : i32, i32
  }
  func.func @transform_7(%arg0: i32) -> (i32, i32, i32, i32, i32, i32) {
    %c0_i32 = arith.constant 0 : i32
    %c0_i32_0 = arith.constant 0 : i32
    %c0_i32_1 = arith.constant 0 : i32
    %c0_i32_2 = arith.constant 0 : i32
    %c0_i32_3 = arith.constant 0 : i32
    %c0_i32_4 = arith.constant 0 : i32
    return %c0_i32, %c0_i32_0, %arg0, %c0_i32_1, %c0_i32_2, %c0_i32_3 : i32, i32, i32, i32, i32, i32
  }
  func.func @transform_8(%arg0: i32) -> (i32, i32, i32, i32) {
    %c0_i32 = arith.constant 0 : i32
    %c0_i32_0 = arith.constant 0 : i32
    %c0_i32_1 = arith.constant 0 : i32
    %c0_i32_2 = arith.constant 0 : i32
    return %arg0, %c0_i32, %c0_i32_0, %c0_i32_1 : i32, i32, i32, i32
  }
}

</mosaic_0001>

<bundles_post_ra>
// kernel: tpu_custom_call.1
= control target key start
LH: loop header
LB: loop body
LE: loop exit
PB: predicated region body
PF: predicated region fallthrough
CT: control target
= control target key end

     0   :  { %14 = vsyncpa [#allocation5], 0  ;;  %s13210_s0 = inlined_call_operand.vmem [shape: f32[2,2,2,10,10,4], index: 0, kind: input, shape index: {}]   ;;  %s13211_s1 = inlined_call_operand.vmem [shape: f32[9,4,8], index: 1, kind: input, shape index: {}]   ;;  %s13212_s2 = inlined_call_operand.vmem [shape: f32[1,8], index: 2, kind: input, shape index: {}]   ;;  %s13213_s3 = inlined_call_operand.vmem [shape: f32[9,8,8], index: 3, kind: input, shape index: {}]   ;;  %s13214_s4 = inlined_call_operand.vmem [shape: f32[1,8], index: 4, kind: input, shape index: {}]   ;;  %s13215_s5 = inlined_call_operand.vmem [shape: f32[4,8,8], index: 5, kind: input, shape index: {}]   ;;  %s13216_s6 = inlined_call_operand.vmem [shape: f32[1,8], index: 6, kind: input, shape index: {}]   ;;  %s13217_s7 = inlined_call_operand.hbm [shape: f32[2,2,2,8,8,8], index: 7, kind: output, shape index: {0}]   ;;  %s13218_s8 = inlined_call_operand.hbm [shape: f32[2,8,8,8], index: 8, kind: output, shape index: {1}]  }
   0x1   :  { %16 = vsyncpa [#allocation5 + $0x1], 0 }
   0x2   :  { %17 = vsyncpa [#allocation7], 0 }
   0x3   :  { %19 = vsyncpa [#allocation7 + $0x1], 0  ;;  %s9854_s27 = smov 0   ;;  %s9856_s28 = smov 0  }
   0x4   :  { %s9858_s29 = smov 0   ;;  %s9860_s30 = smov 0  }
   0x5 LB: > { %s7300_s9 = sadd.s32 4294967295, %s9797_s30   ;;  %s7301_s10 = sadd.s32 4294967294, %s9797_s30   ;;  %s9797_s30 = sphi %s9860_s30, %s13586_s30   ;;  %s9793_s29 = sphi %s9858_s29, %s13585_s29   ;;  %s9789_s28 = sphi %s9856_s28, %s13584_s28   ;;  %s9785_s27 = sphi %s9854_s27, %s13583_s27  }
   0x6   : > { %s9877_s11 = sadd.s32 1, %s9797_s30   ;;  %s32_s12 = sadd.s32 1, %s9793_s29 }
   0x7   : > { %s29_s13 = ssub.s32 %s9797_s30, %s9877_s11  ;;  %p39_p0 = scmp.ne.s32.totalorder %s9793_s29, %s9789_s28 }
   0x8   : > { %p30_p1 = scmp.eq.s32.totalorder %s29_s13, 0  ;;  %p40_p2 = scmp.eq.s32.totalorder %s9797_s30, 0 }
   0x9   : > { %p195_p3 = scmp.eq.s32.totalorder %s7300_s9, 1  ;;  %p200_p4 = scmp.ne.s32.totalorder %s9789_s28, %s9785_s27 }
   0xa   : > { %s9890_s14 = scalar_select %p30_p1, %s9793_s29, %s32_s12  }
   0xb   : > { %p41_p5 = por %p40_p2, %p39_p0  ;;  %p9892_p6 = por %p195_p3, %p39_p0 }
   0xc   : > { %p201_p7 = scmp.eq.s32.totalorder %s7301_s10, 1  ;;  %p7303_p9 = scmp.ge.s32.totalorder %s9797_s30, 2 }
   0xe   : > { %p9896_p8 = por %p201_p7, %p200_p4  ;;  %261 = sbr.rel (%p7303_p9) target bundleno = 64 (0x40), region = 40 }
  0x13   : > { %264 = sbr.rel (!%p41_p5) target bundleno = 64 (0x40), region = 44  ;;  %s266_s17 = sand.u32 (%p41_p5), 1, %s9793_s29  }
  0x14   : > { %s9672_s18 = smul.u32 (%p41_p5), 160, %s9797_s30 }
  0x15   : > { %s9671_s19 = smul.u32 (%p41_p5), 640, %s266_s17 }
  0x16   : > { %s9908_s22 = scalar_lea.vmem (%p41_p5), %s13210_s0, %s9672_s18 }
  0x17   : > { %v458_v0 = vld [vmem:[%s9908_s22] sm:$0xff] (%p41_p5)  ;;  %v460_v1 = vld [vmem:[%s9908_s22 + $0x8] sm:$0xff] (%p41_p5)  ;;  %v462_v2 = vld [vmem:[%s9908_s22 + $0x10] sm:$0xff] (%p41_p5)  ;;  %s9913_s23 = scalar_lea.vmem (%p41_p5), [#allocation3], %s9671_s19 }
  0x18   : > { %459 = vst [vmem:[%s9913_s23] sm:$0xff] %v458_v0  ;;  %461 = vst [vmem:[%s9913_s23 + $0x8] sm:$0xff] %v460_v1  ;;  %v464_v3 = vld [vmem:[%s9908_s22 + $0x18] sm:$0xff]  ;;  %v466_v4 = vld [vmem:[%s9908_s22 + $0x20] sm:$0xff] }
  0x19   : > { %463 = vst [vmem:[%s9913_s23 + $0x10] sm:$0xff] %v462_v2  ;;  %v468_v5 = vld [vmem:[%s9908_s22 + $0x28] sm:$0xff]  ;;  %465 = vst [vmem:[%s9913_s23 + $0x18] sm:$0xff] %v464_v3  ;;  %v470_v6 = vld [vmem:[%s9908_s22 + $0x30] sm:$0xff] }
  0x1a   : > { %467 = vst [vmem:[%s9913_s23 + $0x20] sm:$0xff] %v466_v4  ;;  %469 = vst [vmem:[%s9913_s23 + $0x28] sm:$0xff] %v468_v5  ;;  %v472_v7 = vld [vmem:[%s9908_s22 + $0x38] sm:$0xff]  ;;  %v474_v8 = vld [vmem:[%s9908_s22 + $0x40] sm:$0xff] }
  0x1b   : > { %471 = vst [vmem:[%s9913_s23 + $0x30] sm:$0xff] %v470_v6  ;;  %473 = vst [vmem:[%s9913_s23 + $0x38] sm:$0xff] %v472_v7  ;;  %v476_v9 = vld [vmem:[%s9908_s22 + $0x48] sm:$0xff]  ;;  %v478_v10 = vld [vmem:[%s9908_s22 + $0x50] sm:$0xff] }
  0x1c   : > { %475 = vst [vmem:[%s9913_s23 + $0x40] sm:$0xff] %v474_v8  ;;  %v480_v11 = vld [vmem:[%s9908_s22 + $0x58] sm:$0xff]  ;;  %477 = vst [vmem:[%s9913_s23 + $0x48] sm:$0xff] %v476_v9  ;;  %v482_v12 = vld [vmem:[%s9908_s22 + $0x60] sm:$0xff] }
  0x1d   : > { %479 = vst [vmem:[%s9913_s23 + $0x50] sm:$0xff] %v478_v10  ;;  %481 = vst [vmem:[%s9913_s23 + $0x58] sm:$0xff] %v480_v11  ;;  %v484_v13 = vld [vmem:[%s9908_s22 + $0x68] sm:$0xff]  ;;  %v486_v14 = vld [vmem:[%s9908_s22 + $0x70] sm:$0xff] }
  0x1e   : > { %483 = vst [vmem:[%s9913_s23 + $0x60] sm:$0xff] %v482_v12  ;;  %485 = vst [vmem:[%s9913_s23 + $0x68] sm:$0xff] %v484_v13  ;;  %v488_v15 = vld [vmem:[%s9908_s22 + $0x78] sm:$0xff]  ;;  %v490_v16 = vld [vmem:[%s9908_s22 + $0x80] sm:$0xff] }
  0x1f   : > { %487 = vst [vmem:[%s9913_s23 + $0x70] sm:$0xff] %v486_v14  ;;  %v492_v17 = vld [vmem:[%s9908_s22 + $0x88] sm:$0xff]  ;;  %489 = vst [vmem:[%s9913_s23 + $0x78] sm:$0xff] %v488_v15  ;;  %v494_v18 = vld [vmem:[%s9908_s22 + $0x90] sm:$0xff] }
  0x20   : > { %491 = vst [vmem:[%s9913_s23 + $0x80] sm:$0xff] %v490_v16  ;;  %493 = vst [vmem:[%s9913_s23 + $0x88] sm:$0xff] %v492_v17  ;;  %v496_v19 = vld [vmem:[%s9908_s22 + $0x98] sm:$0xff]  ;;  %v498_v20 = vld [vmem:[%s9908_s22 + $0x140] sm:$0xff] }
  0x21   : > { %495 = vst [vmem:[%s9913_s23 + $0x90] sm:$0xff] %v494_v18  ;;  %497 = vst [vmem:[%s9913_s23 + $0x98] sm:$0xff] %v496_v19  ;;  %v500_v21 = vld [vmem:[%s9908_s22 + $0x148] sm:$0xff]  ;;  %v502_v22 = vld [vmem:[%s9908_s22 + $0x150] sm:$0xff] }
  0x22   : > { %499 = vst [vmem:[%s9913_s23 + $0xa0] sm:$0xff] %v498_v20  ;;  %v504_v23 = vld [vmem:[%s9908_s22 + $0x158] sm:$0xff]  ;;  %501 = vst [vmem:[%s9913_s23 + $0xa8] sm:$0xff] %v500_v21  ;;  %v506_v24 = vld [vmem:[%s9908_s22 + $0x160] sm:$0xff] }
  0x23   : > { %503 = vst [vmem:[%s9913_s23 + $0xb0] sm:$0xff] %v502_v22  ;;  %505 = vst [vmem:[%s9913_s23 + $0xb8] sm:$0xff] %v504_v23  ;;  %v508_v25 = vld [vmem:[%s9908_s22 + $0x168] sm:$0xff]  ;;  %v510_v26 = vld [vmem:[%s9908_s22 + $0x170] sm:$0xff] }
  0x24   : > { %507 = vst [vmem:[%s9913_s23 + $0xc0] sm:$0xff] %v506_v24  ;;  %509 = vst [vmem:[%s9913_s23 + $0xc8] sm:$0xff] %v508_v25  ;;  %v512_v27 = vld [vmem:[%s9908_s22 + $0x178] sm:$0xff]  ;;  %v514_v28 = vld [vmem:[%s9908_s22 + $0x180] sm:$0xff] }
  0x25   : > { %511 = vst [vmem:[%s9913_s23 + $0xd0] sm:$0xff] %v510_v26  ;;  %v516_v29 = vld [vmem:[%s9908_s22 + $0x188] sm:$0xff]  ;;  %513 = vst [vmem:[%s9913_s23 + $0xd8] sm:$0xff] %v512_v27  ;;  %v518_v30 = vld [vmem:[%s9908_s22 + $0x190] sm:$0xff] }
  0x26   : > { %515 = vst [vmem:[%s9913_s23 + $0xe0] sm:$0xff] %v514_v28  ;;  %517 = vst [vmem:[%s9913_s23 + $0xe8] sm:$0xff] %v516_v29  ;;  %v520_v31 = vld [vmem:[%s9908_s22 + $0x198] sm:$0xff]  ;;  %v522_v32 = vld [vmem:[%s9908_s22 + $0x1a0] sm:$0xff] }
  0x27   : > { %519 = vst [vmem:[%s9913_s23 + $0xf0] sm:$0xff] %v518_v30  ;;  %521 = vst [vmem:[%s9913_s23 + $0xf8] sm:$0xff] %v520_v31  ;;  %v524_v33 = vld [vmem:[%s9908_s22 + $0x1a8] sm:$0xff]  ;;  %v526_v34 = vld [vmem:[%s9908_s22 + $0x1b0] sm:$0xff] }
  0x28   : > { %523 = vst [vmem:[%s9913_s23 + $0x100] sm:$0xff] %v522_v32  ;;  %v528_v35 = vld [vmem:[%s9908_s22 + $0x1b8] sm:$0xff]  ;;  %525 = vst [vmem:[%s9913_s23 + $0x108] sm:$0xff] %v524_v33  ;;  %v530_v36 = vld [vmem:[%s9908_s22 + $0x1c0] sm:$0xff] }
  0x29   : > { %527 = vst [vmem:[%s9913_s23 + $0x110] sm:$0xff] %v526_v34  ;;  %529 = vst [vmem:[%s9913_s23 + $0x118] sm:$0xff] %v528_v35  ;;  %v532_v37 = vld [vmem:[%s9908_s22 + $0x1c8] sm:$0xff]  ;;  %v534_v38 = vld [vmem:[%s9908_s22 + $0x1d0] sm:$0xff] }
  0x2a   : > { %531 = vst [vmem:[%s9913_s23 + $0x120] sm:$0xff] %v530_v36  ;;  %533 = vst [vmem:[%s9913_s23 + $0x128] sm:$0xff] %v532_v37  ;;  %v536_v39 = vld [vmem:[%s9908_s22 + $0x1d8] sm:$0xff]  ;;  %v538_v40 = vld [vmem:[%s9908_s22 + $0x280] sm:$0xff] }
  0x2b   : > { %535 = vst [vmem:[%s9913_s23 + $0x130] sm:$0xff] %v534_v38  ;;  %v540_v41 = vld [vmem:[%s9908_s22 + $0x288] sm:$0xff]  ;;  %537 = vst [vmem:[%s9913_s23 + $0x138] sm:$0xff] %v536_v39  ;;  %v542_v42 = vld [vmem:[%s9908_s22 + $0x290] sm:$0xff] }
  0x2c   : > { %539 = vst [vmem:[%s9913_s23 + $0x140] sm:$0xff] %v538_v40  ;;  %541 = vst [vmem:[%s9913_s23 + $0x148] sm:$0xff] %v540_v41  ;;  %v544_v43 = vld [vmem:[%s9908_s22 + $0x298] sm:$0xff]  ;;  %v546_v44 = vld [vmem:[%s9908_s22 + $0x2a0] sm:$0xff] }
  0x2d   : > { %543 = vst [vmem:[%s9913_s23 + $0x150] sm:$0xff] %v542_v42  ;;  %545 = vst [vmem:[%s9913_s23 + $0x158] sm:$0xff] %v544_v43  ;;  %v548_v45 = vld [vmem:[%s9908_s22 + $0x2a8] sm:$0xff]  ;;  %v550_v46 = vld [vmem:[%s9908_s22 + $0x2b0] sm:$0xff] }
  0x2e   : > { %547 = vst [vmem:[%s9913_s23 + $0x160] sm:$0xff] %v546_v44  ;;  %v552_v47 = vld [vmem:[%s9908_s22 + $0x2b8] sm:$0xff]  ;;  %549 = vst [vmem:[%s9913_s23 + $0x168] sm:$0xff] %v548_v45  ;;  %v554_v48 = vld [vmem:[%s9908_s22 + $0x2c0] sm:$0xff] }
  0x2f   : > { %551 = vst [vmem:[%s9913_s23 + $0x170] sm:$0xff] %v550_v46  ;;  %553 = vst [vmem:[%s9913_s23 + $0x178] sm:$0xff] %v552_v47  ;;  %v556_v49 = vld [vmem:[%s9908_s22 + $0x2c8] sm:$0xff]  ;;  %v558_v50 = vld [vmem:[%s9908_s22 + $0x2d0] sm:$0xff] }
  0x30   : > { %555 = vst [vmem:[%s9913_s23 + $0x180] sm:$0xff] %v554_v48  ;;  %557 = vst [vmem:[%s9913_s23 + $0x188] sm:$0xff] %v556_v49  ;;  %v560_v51 = vld [vmem:[%s9908_s22 + $0x2d8] sm:$0xff]  ;;  %v562_v52 = vld [vmem:[%s9908_s22 + $0x2e0] sm:$0xff] }
  0x31   : > { %559 = vst [vmem:[%s9913_s23 + $0x190] sm:$0xff] %v558_v50  ;;  %v564_v53 = vld [vmem:[%s9908_s22 + $0x2e8] sm:$0xff]  ;;  %561 = vst [vmem:[%s9913_s23 + $0x198] sm:$0xff] %v560_v51  ;;  %v566_v54 = vld [vmem:[%s9908_s22 + $0x2f0] sm:$0xff] }
  0x32   : > { %563 = vst [vmem:[%s9913_s23 + $0x1a0] sm:$0xff] %v562_v52  ;;  %565 = vst [vmem:[%s9913_s23 + $0x1a8] sm:$0xff] %v564_v53  ;;  %v568_v55 = vld [vmem:[%s9908_s22 + $0x2f8] sm:$0xff]  ;;  %v570_v56 = vld [vmem:[%s9908_s22 + $0x300] sm:$0xff] }
  0x33   : > { %567 = vst [vmem:[%s9913_s23 + $0x1b0] sm:$0xff] %v566_v54  ;;  %569 = vst [vmem:[%s9913_s23 + $0x1b8] sm:$0xff] %v568_v55  ;;  %v572_v57 = vld [vmem:[%s9908_s22 + $0x308] sm:$0xff]  ;;  %v574_v58 = vld [vmem:[%s9908_s22 + $0x310] sm:$0xff] }
  0x34   : > { %571 = vst [vmem:[%s9913_s23 + $0x1c0] sm:$0xff] %v570_v56  ;;  %v576_v59 = vld [vmem:[%s9908_s22 + $0x318] sm:$0xff]  ;;  %573 = vst [vmem:[%s9913_s23 + $0x1c8] sm:$0xff] %v572_v57  ;;  %v578_v60 = vld [vmem:[%s9908_s22 + $0x3c0] sm:$0xff] }
  0x35   : > { %575 = vst [vmem:[%s9913_s23 + $0x1d0] sm:$0xff] %v574_v58  ;;  %577 = vst [vmem:[%s9913_s23 + $0x1d8] sm:$0xff] %v576_v59  ;;  %v580_v61 = vld [vmem:[%s9908_s22 + $0x3c8] sm:$0xff]  ;;  %v582_v62 = vld [vmem:[%s9908_s22 + $0x3d0] sm:$0xff] }
  0x36   : > { %579 = vst [vmem:[%s9913_s23 + $0x1e0] sm:$0xff] %v578_v60  ;;  %581 = vst [vmem:[%s9913_s23 + $0x1e8] sm:$0xff] %v580_v61  ;;  %v584_v63 = vld [vmem:[%s9908_s22 + $0x3d8] sm:$0xff]  ;;  %v586_v0 = vld [vmem:[%s9908_s22 + $0x3e0] sm:$0xff] }
  0x37   : > { %583 = vst [vmem:[%s9913_s23 + $0x1f0] sm:$0xff] %v582_v62  ;;  %v588_v1 = vld [vmem:[%s9908_s22 + $0x3e8] sm:$0xff]  ;;  %585 = vst [vmem:[%s9913_s23 + $0x1f8] sm:$0xff] %v584_v63  ;;  %v590_v2 = vld [vmem:[%s9908_s22 + $0x3f0] sm:$0xff] }
  0x38   : > { %587 = vst [vmem:[%s9913_s23 + $0x200] sm:$0xff] %v586_v0  ;;  %589 = vst [vmem:[%s9913_s23 + $0x208] sm:$0xff] %v588_v1  ;;  %v592_v3 = vld [vmem:[%s9908_s22 + $0x3f8] sm:$0xff]  ;;  %v594_v4 = vld [vmem:[%s9908_s22 + $0x400] sm:$0xff] }
  0x39   : > { %591 = vst [vmem:[%s9913_s23 + $0x210] sm:$0xff] %v590_v2  ;;  %593 = vst [vmem:[%s9913_s23 + $0x218] sm:$0xff] %v592_v3  ;;  %v596_v5 = vld [vmem:[%s9908_s22 + $0x408] sm:$0xff]  ;;  %v598_v6 = vld [vmem:[%s9908_s22 + $0x410] sm:$0xff] }
  0x3a   : > { %595 = vst [vmem:[%s9913_s23 + $0x220] sm:$0xff] %v594_v4  ;;  %v600_v7 = vld [vmem:[%s9908_s22 + $0x418] sm:$0xff]  ;;  %597 = vst [vmem:[%s9913_s23 + $0x228] sm:$0xff] %v596_v5  ;;  %v602_v8 = vld [vmem:[%s9908_s22 + $0x420] sm:$0xff] }
  0x3b   : > { %599 = vst [vmem:[%s9913_s23 + $0x230] sm:$0xff] %v598_v6  ;;  %601 = vst [vmem:[%s9913_s23 + $0x238] sm:$0xff] %v600_v7  ;;  %v604_v9 = vld [vmem:[%s9908_s22 + $0x428] sm:$0xff]  ;;  %v606_v10 = vld [vmem:[%s9908_s22 + $0x430] sm:$0xff] }
  0x3c   : > { %603 = vst [vmem:[%s9913_s23 + $0x240] sm:$0xff] %v602_v8  ;;  %605 = vst [vmem:[%s9913_s23 + $0x248] sm:$0xff] %v604_v9  ;;  %v608_v11 = vld [vmem:[%s9908_s22 + $0x438] sm:$0xff]  ;;  %v610_v12 = vld [vmem:[%s9908_s22 + $0x440] sm:$0xff] }
  0x3d   : > { %607 = vst [vmem:[%s9913_s23 + $0x250] sm:$0xff] %v606_v10  ;;  %v612_v13 = vld [vmem:[%s9908_s22 + $0x448] sm:$0xff]  ;;  %609 = vst [vmem:[%s9913_s23 + $0x258] sm:$0xff] %v608_v11  ;;  %v614_v14 = vld [vmem:[%s9908_s22 + $0x450] sm:$0xff] }
  0x3e   : > { %611 = vst [vmem:[%s9913_s23 + $0x260] sm:$0xff] %v610_v12  ;;  %613 = vst [vmem:[%s9913_s23 + $0x268] sm:$0xff] %v612_v13  ;;  %v616_v15 = vld [vmem:[%s9908_s22 + $0x458] sm:$0xff] }
  0x3f   : > { %615 = vst [vmem:[%s9913_s23 + $0x270] sm:$0xff] %v614_v14  ;;  %617 = vst [vmem:[%s9913_s23 + $0x278] sm:$0xff] %v616_v15 }
  0x40 PF: > { %p7305_p10 = scmp.ge.s32.totalorder %s9797_s30, 1  ;;  %p622_p11 = scmp.lt.s32.totalorder %s9797_s30, 3 }
  0x42   : > { %p623_p12 = pnand %p7305_p10, %p622_p11 }
  0x44   : > { %626 = sbr.rel (%p623_p12) target bundleno = 1331 (0x533), region = 82 }
  0x49   : > { %v7356_v16 = vld [vmem:[%s13211_s1 + $0x4] sm:$0xf]  ;;  %vm926_vm0 = vcmask 1043456   ;;  %v810_v17 = vld [vmem:[%s13211_s1] sm:$0xf]  ;;  %s10081_s12 = sand.u32 1, %s9789_s28  }
  0x4a   : > { %8715 = vmatprep.subr.msk.mxu0 %vm926_vm0, %v7356_v16  ;;  %8765 = vmatprep.subr.msk.mxu1 %vm926_vm0, %v810_v17  ;;  %s9673_s13 = smul.u32 640, %s10081_s12  ;;  %v7439_v18 = vld [vmem:[%s13211_s1 + $0x8] sm:$0xf]  ;;  %vm829_vm1 = vcmask 31744   ;;  %v7489_v19 = vld [vmem:[%s13211_s1 + $0xc] sm:$0xf] }
  0x4b   : > { %8716 = vmatpush3.msk.msra.mxu0 %vm926_vm0, %v7356_v16  ;;  %8766 = vmatpush3.msk.msra.mxu1 %vm926_vm0, %v810_v17  ;;  %v10121_v26 = vld [vmem:[%s13211_s1 + $0x10] sm:$0xf]  ;;  %v10126_v27 = vld [vmem:[%s13211_s1 + $0x14] sm:$0xf]  ;;  %v10386_v6 = vld [vmem:[%s13211_s1 + $0x18] sm:$0xf] }
  0x4c   : > { %8815 = vmatprep.subr.msk.mxu0 %vm926_vm0, %v7439_v18  ;;  %8865 = vmatprep.subr.msk.mxu1 %vm926_vm0, %v7489_v19  ;;  %s10096_s21 = scalar_lea.vmem [#allocation3], %s9673_s13  ;;  %v10391_v7 = vld [vmem:[%s13211_s1 + $0x1c] sm:$0xf]  ;;  %vm667_vm2 = vcmask 64512   ;;  %vm693_vm3 = vcmask 57344   ;;  %s7306_s26 = sshll.u32 %s10081_s12, 8 }
  0x4d   : > { %v7316_v20 = vld [vmem:[%s10096_s21 + $0x141] sm:$0xff]  ;;  %v10101_v22 = vld [vmem:[%s10096_s21 + $0x151] sm:$0xff]  ;;  %s12877_s10 = scalar_lea.vmem [#allocation4], %s7306_s26  ;;  %s7307_s13 = sshll.u32 %s10081_s12, 6 }
  0x4e   : > { %v7308_v21 = vld [vmem:[%s10096_s21 + $0x1e0] sm:$0xff]  ;;  %8717 = vmatprep.mubr.msk.f32.mxu0 %vm829_vm1, %v7316_v20  ;;  %v10106_v23 = vld [vmem:[%s10096_s21 + $0x1f0] sm:$0xff]  ;;  %s13122_s19 = scalar_lea.vmem [#allocation6], %s7307_s13  ;;  %s7144_s20 = scalar_lea.sflag [#allocation5], %s10081_s12 }
  0x4f   : > { %8767 = vmatprep.mubr.msk.f32.mxu1 %vm829_vm1, %v7308_v21  ;;  %v10109_v24 = vld [vmem:[%s10096_s21 + $0x161] sm:$0xff]  ;;  %8718 = vmatmul.mubr.msk.f32.vlgmr.msra.gmra.mxu0 %vm829_vm1, %v10101_v22  ;;  %v10132_v28 = vld [vmem:[%s10096_s21 + $0x171] sm:$0xff] }
  0x50   : > { %v10112_v25 = vld [vmem:[%s10096_s21 + $0x200] sm:$0xff]  ;;  %8768 = vmatmul.mubr.msk.f32.vlgmr.msra.gmra.mxu1 %vm829_vm1, %v10106_v23  ;;  %8816 = vmatpush3.msk.msra.mxu0 %vm926_vm0, %v7439_v18  ;;  %v10135_v29 = vld [vmem:[%s10096_s21 + $0x210] sm:$0xff] }
  0x51   : > { %8720 = vmatprep.mubr.msk.f32.mxu0 %vm829_vm1, %v10109_v24  ;;  %8770 = vmatprep.mubr.msk.f32.mxu1 %vm829_vm1, %v10112_v25  ;;  %v10140_v30 = vld [vmem:[%s10096_s21 + $0x181] sm:$0xff]  ;;  %v10159_v32 = vld [vmem:[%s10096_s21 + $0x191] sm:$0xff] }
  0x52   : > { %v10143_v31 = vld [vmem:[%s10096_s21 + $0x220] sm:$0xff]  ;;  %8866 = vmatpush3.msk.msra.mxu1 %vm926_vm0, %v7489_v19  ;;  %8915 = vmatprep.subr.msk.mxu0 %vm926_vm0, %v10121_v26  ;;  %v10162_v33 = vld [vmem:[%s10096_s21 + $0x230] sm:$0xff] }
  0x53   : > { %8965 = vmatprep.subr.msk.mxu1 %vm926_vm0, %v10126_v27  ;;  %8721 = vmatmul.mubr.msk.f32.gmra.mxu0 %vm829_vm1, %v10132_v28  ;;  %v10165_v34 = vld [vmem:[%s10096_s21 + $0x1a1] sm:$0xff]  ;;  %v10179_v36 = vld [vmem:[%s10096_s21 + $0x1b1] sm:$0xff] }
  0x54   : > { %8771 = vmatmul.mubr.msk.f32.gmra.mxu1 %vm829_vm1, %v10135_v29  ;;  %8723 = vmatprep.mubr.msk.f32.mxu0 %vm829_vm1, %v10140_v30  ;;  %v10168_v35 = vld [vmem:[%s10096_s21 + $0x240] sm:$0xff]  ;;  %v10182_v37 = vld [vmem:[%s10096_s21 + $0x250] sm:$0xff] }
  0x55   : > { %8773 = vmatprep.mubr.msk.f32.mxu1 %vm829_vm1, %v10143_v31  ;;  %v10185_v38 = vld [vmem:[%s10096_s21 + $0x1e1] sm:$0xff]  ;;  %v10195_v39 = vld [vmem:[%s10096_s21 + $0x1f1] sm:$0xff] }
  0x56   : > { %v10198_v40 = vld [vmem:[%s10096_s21 + $0x201] sm:$0xff]  ;;  %v10209_v41 = vld [vmem:[%s10096_s21 + $0x211] sm:$0xff] }
  0x57   : > { %8724 = vmatmul.mubr.msk.f32.gmra.mxu0 %vm829_vm1, %v10159_v32  ;;  %v10212_v42 = vld [vmem:[%s10096_s21 + $0x221] sm:$0xff]  ;;  %v10223_v43 = vld [vmem:[%s10096_s21 + $0x231] sm:$0xff] }
  0x58   : > { %8774 = vmatmul.mubr.msk.f32.gmra.mxu1 %vm829_vm1, %v10162_v33  ;;  %8726 = vmatprep.mubr.msk.f32.mxu0 %vm829_vm1, %v10165_v34  ;;  %v10226_v44 = vld [vmem:[%s10096_s21 + $0x241] sm:$0xff]  ;;  %v10237_v45 = vld [vmem:[%s10096_s21 + $0x251] sm:$0xff] }
  0x59   : > { %8776 = vmatprep.mubr.msk.f32.mxu1 %vm829_vm1, %v10168_v35  ;;  %v10240_v46 = vld [vmem:[%s10096_s21 + $0x11] sm:$0xff]  ;;  %v10251_v48 = vld [vmem:[%s10096_s21 + $0x21] sm:$0xff] }
  0x5a   : > { %v7324_v47 = vld [vmem:[%s10096_s21 + $0xb0] sm:$0xff]  ;;  %v10254_v49 = vld [vmem:[%s10096_s21 + $0xc0] sm:$0xff] }
  0x5b   : > { %8727 = vmatmul.mubr.msk.f32.gmra.mxu0 %vm829_vm1, %v10179_v36  ;;  %v10257_v50 = vld [vmem:[%s10096_s21 + $0x31] sm:$0xff]  ;;  %v10271_v52 = vld [vmem:[%s10096_s21 + $0x41] sm:$0xff] }
  0x5c   : > { %8777 = vmatmul.mubr.msk.f32.gmra.mxu1 %vm829_vm1, %v10182_v37  ;;  %8729 = vmatprep.mubr.msk.f32.mxu0 %vm829_vm1, %v10185_v38  ;;  %v10260_v51 = vld [vmem:[%s10096_s21 + $0xd0] sm:$0xff]  ;;  %v10274_v53 = vld [vmem:[%s10096_s21 + $0xe0] sm:$0xff] }
  0x5d   : > { %8779 = vmatprep.mubr.msk.f32.mxu1 %vm829_vm1, %v7316_v20  ;;  %v10277_v54 = vld [vmem:[%s10096_s21 + $0x51] sm:$0xff]  ;;  %v10291_v56 = vld [vmem:[%s10096_s21 + $0x61] sm:$0xff] }
  0x5e   : > { %v10280_v55 = vld [vmem:[%s10096_s21 + $0xf0] sm:$0xff]  ;;  %v10294_v57 = vld [vmem:[%s10096_s21 + $0x100] sm:$0xff] }
  0x5f   : > { %8730 = vmatmul.mubr.msk.f32.gmra.mxu0 %vm829_vm1, %v10195_v39  ;;  %v10297_v58 = vld [vmem:[%s10096_s21 + $0x71] sm:$0xff]  ;;  %v10311_v60 = vld [vmem:[%s10096_s21 + $0x81] sm:$0xff] }
  0x60   : > { %8780 = vmatmul.mubr.msk.f32.gmra.mxu1 %vm829_vm1, %v10101_v22  ;;  %8732 = vmatprep.mubr.msk.f32.mxu0 %vm829_vm1, %v10198_v40  ;;  %v10300_v59 = vld [vmem:[%s10096_s21 + $0x110] sm:$0xff]  ;;  %v10314_v61 = vld [vmem:[%s10096_s21 + $0x120] sm:$0xff] }
  0x61   : > { %8782 = vmatprep.mubr.msk.f32.mxu1 %vm829_vm1, %v10109_v24  ;;  %v10317_v62 = vld [vmem:[%s10096_s21 + $0xb1] sm:$0xff]  ;;  %v10328_v63 = vld [vmem:[%s10096_s21 + $0xc1] sm:$0xff] }
  0x62   : > { %v10331_v0 = vld [vmem:[%s10096_s21 + $0xd1] sm:$0xff]  ;;  %v10342_v1 = vld [vmem:[%s10096_s21 + $0xe1] sm:$0xff] }
  0x63   : > { %8733 = vmatmul.mubr.msk.f32.gmra.mxu0 %vm829_vm1, %v10209_v41  ;;  %v10345_v2 = vld [vmem:[%s10096_s21 + $0xf1] sm:$0xff]  ;;  %v10356_v3 = vld [vmem:[%s10096_s21 + $0x101] sm:$0xff] }
  0x64   : > { %8783 = vmatmul.mubr.msk.f32.gmra.mxu1 %vm829_vm1, %v10132_v28  ;;  %8735 = vmatprep.mubr.msk.f32.mxu0 %vm829_vm1, %v10212_v42  ;;  %v10359_v4 = vld [vmem:[%s10096_s21 + $0x111] sm:$0xff]  ;;  %v10370_v5 = vld [vmem:[%s10096_s21 + $0x121] sm:$0xff] }
  0x65   : > { %8785 = vmatprep.mubr.msk.f32.mxu1 %vm829_vm1, %v10140_v30  ;;  %v7423_v8 = vld [vmem:[%s10096_s21 + $0x142] sm:$0xff]  ;;  %v10428_v9 = vld [vmem:[%s10096_s21 + $0x152] sm:$0xff] }
  0x66   : > { %v10433_v10 = vld [vmem:[%s10096_s21 + $0x162] sm:$0xff]  ;;  %v10442_v11 = vld [vmem:[%s10096_s21 + $0x172] sm:$0xff] }
  0x67   : > { %8736 = vmatmul.mubr.msk.f32.gmra.mxu0 %vm829_vm1, %v10223_v43  ;;  %v10447_v12 = vld [vmem:[%s10096_s21 + $0x182] sm:$0xff]  ;;  %v10456_v13 = vld [vmem:[%s10096_s21 + $0x192] sm:$0xff] }
  0x68   : > { %8786 = vmatmul.mubr.msk.f32.gmra.mxu1 %vm829_vm1, %v10159_v32  ;;  %8738 = vmatprep.mubr.msk.f32.mxu0 %vm829_vm1, %v10226_v44  ;;  %v10461_v14 = vld [vmem:[%s10096_s21 + $0x1a2] sm:$0xff]  ;;  %v10470_v15 = vld [vmem:[%s10096_s21 + $0x1b2] sm:$0xff] }
  0x69   : > { %8788 = vmatprep.mubr.msk.f32.mxu1 %vm829_vm1, %v10165_v34  ;;  %v10507_v16 = vld [vmem:[%s10096_s21 + $0x260] sm:$0xff]  ;;  %v7431_v17 = vld [vmem:[%s10096_s21 + $0x12] sm:$0xff] }
  0x6a   : > { %v10516_v18 = vld [vmem:[%s10096_s21 + $0x22] sm:$0xff]  ;;  %v10521_v19 = vld [vmem:[%s10096_s21 + $0x32] sm:$0xff] }
  0x6b   : > { %8739 = vmatmul.mubr.msk.f32.gmra.mxu0 %vm829_vm1, %v10237_v45  ;;  %v10530_v20 = vld [vmem:[%s10096_s21 + $0x42] sm:$0xff]  ;;  %v10535_v21 = vld [vmem:[%s10096_s21 + $0x52] sm:$0xff] }
  0x6c   : > { %8789 = vmatmul.mubr.msk.f32.gmra.mxu1 %vm829_vm1, %v10179_v36  ;;  %8741 = vmatprep.mubr.msk.f32.mxu0 %vm829_vm1, %v10240_v46 }
  0x6d   : > { %8791 = vmatprep.mubr.msk.f32.mxu1 %vm829_vm1, %v7324_v47 }
  0x6f   : > { %8742 = vmatmul.mubr.msk.f32.gmra.mxu0 %vm829_vm1, %v10251_v48 }
  0x70   : > { %8792 = vmatmul.mubr.msk.f32.gmra.mxu1 %vm829_vm1, %v10254_v49  ;;  %8744 = vmatprep.mubr.msk.f32.mxu0 %vm829_vm1, %v10257_v50 }
  0x71   : > { %8794 = vmatprep.mubr.msk.f32.mxu1 %vm829_vm1, %v10260_v51 }
  0x73   : > { %8745 = vmatmul.mubr.msk.f32.gmra.mxu0 %vm829_vm1, %v10271_v52 }
  0x74   : > { %8795 = vmatmul.mubr.msk.f32.gmra.mxu1 %vm829_vm1, %v10274_v53  ;;  %8747 = vmatprep.mubr.msk.f32.mxu0 %vm829_vm1, %v10277_v54 }
  0x75   : > { %8797 = vmatprep.mubr.msk.f32.mxu1 %vm829_vm1, %v10280_v55 }
  0x77   : > { %8748 = vmatmul.mubr.msk.f32.gmra.mxu0 %vm829_vm1, %v10291_v56 }
  0x78   : > { %8798 = vmatmul.mubr.msk.f32.gmra.mxu1 %vm829_vm1, %v10294_v57  ;;  %8750 = vmatprep.mubr.msk.f32.mxu0 %vm829_vm1, %v10297_v58 }
  0x79   : > { %8800 = vmatprep.mubr.msk.f32.mxu1 %vm829_vm1, %v10300_v59 }
  0x7b   : > { %8751 = vmatmul.mubr.msk.f32.gmra.mxu0 %vm829_vm1, %v10311_v60 }
  0x7c   : > { %8801 = vmatmul.mubr.msk.f32.gmra.mxu1 %vm829_vm1, %v10314_v61  ;;  %8753 = vmatprep.mubr.msk.f32.mxu0 %vm829_vm1, %v10317_v62 }
  0x7d   : > { %8803 = vmatprep.mubr.msk.f32.mxu1 %vm829_vm1, %v10240_v46 }
  0x7f   : > { %8754 = vmatmul.mubr.msk.f32.gmra.mxu0 %vm829_vm1, %v10328_v63 }
  0x80   : > { %8804 = vmatmul.mubr.msk.f32.gmra.mxu1 %vm829_vm1, %v10251_v48  ;;  %8756 = vmatprep.mubr.msk.f32.mxu0 %vm829_vm1, %v10331_v0 }
  0x81   : > { %8806 = vmatprep.mubr.msk.f32.mxu1 %vm829_vm1, %v10257_v50 }
  0x83   : > { %8757 = vmatmul.mubr.msk.f32.gmra.mxu0 %vm829_vm1, %v10342_v1 }
  0x84   : > { %8807 = vmatmul.mubr.msk.f32.gmra.mxu1 %vm829_vm1, %v10271_v52  ;;  %8759 = vmatprep.mubr.msk.f32.mxu0 %vm829_vm1, %v10345_v2 }
  0x85   : > { %8809 = vmatprep.mubr.msk.f32.mxu1 %vm829_vm1, %v10277_v54 }
  0x87   : > { %8760 = vmatmul.mubr.msk.f32.gmra.mxu0 %vm829_vm1, %v10356_v3 }
  0x88   : > { %8810 = vmatmul.mubr.msk.f32.gmra.mxu1 %vm829_vm1, %v10291_v56  ;;  %8762 = vmatprep.mubr.msk.f32.mxu0 %vm829_vm1, %v10359_v4 }
  0x89   : > { %8812 = vmatprep.mubr.msk.f32.mxu1 %vm829_vm1, %v10297_v58 }
  0x8b   : > { %8763 = vmatmul.mubr.msk.f32.gmra.mxu0 %vm829_vm1, %v10370_v5 }
  0x8c   : > { %8813 = vmatmul.mubr.msk.f32.gmra.mxu1 %vm829_vm1, %v10311_v60  ;;  %8817 = vmatprep.mubr.msk.f32.mxu0 %vm829_vm1, %v10185_v38  ;;  %v10558_v38 = vld [vmem:[%s10096_s21 + $0x82] sm:$0xff] }
  0x8d   : > { %8867 = vmatprep.mubr.msk.f32.mxu1 %vm829_vm1, %v7324_v47  ;;  %13234 = vst [vmem:[#allocation14_spill] sm:$0xff] %v10558_v38  ;;  %v10563_v47 = vld [vmem:[%s10096_s21 + $0x1c1] sm:$0xff] }
  0x8f   : > { %8818 = vmatmul.mubr.msk.f32.vlgmr.msra.gmra.mxu0 %vm829_vm1, %v10195_v39 }
  0x90   : > { %8868 = vmatmul.mubr.msk.f32.vlgmr.msra.gmra.mxu1 %vm829_vm1, %v10254_v49  ;;  %8916 = vmatpush3.msk.msra.mxu0 %vm926_vm0, %v10121_v26  ;;  %v10544_v26 = vld [vmem:[%s10096_s21 + $0x62] sm:$0xff] }
  0x91   : > { %8820 = vmatprep.mubr.msk.f32.mxu0 %vm829_vm1, %v10198_v40  ;;  %8870 = vmatprep.mubr.msk.f32.mxu1 %vm829_vm1, %v10260_v51  ;;  %13232 = vst [vmem:[#allocation12_spill] sm:$0xff] %v10544_v26 }
  0x92   : > { %8966 = vmatpush3.msk.msra.mxu1 %vm926_vm0, %v10126_v27  ;;  %9015 = vmatprep.subr.msk.mxu0 %vm926_vm0, %v10386_v6  ;;  %v10549_v27 = vld [vmem:[%s10096_s21 + $0x72] sm:$0xff] }
  0x93   : > { %9065 = vmatprep.subr.msk.mxu1 %vm926_vm0, %v10391_v7  ;;  %8821 = vmatmul.mubr.msk.f32.gmra.mxu0 %vm829_vm1, %v10209_v41  ;;  %13233 = vst [vmem:[#allocation13_spill] sm:$0xff] %v10549_v27 }
  0x94   : > { %8871 = vmatmul.mubr.msk.f32.gmra.mxu1 %vm829_vm1, %v10274_v53  ;;  %8823 = vmatprep.mubr.msk.f32.mxu0 %vm829_vm1, %v10212_v42 }
  0x95   : > { %8873 = vmatprep.mubr.msk.f32.mxu1 %vm829_vm1, %v10280_v55 }
  0x97   : > { %8824 = vmatmul.mubr.msk.f32.gmra.mxu0 %vm829_vm1, %v10223_v43 }
  0x98   : > { %8874 = vmatmul.mubr.msk.f32.gmra.mxu1 %vm829_vm1, %v10294_v57  ;;  %8826 = vmatprep.mubr.msk.f32.mxu0 %vm829_vm1, %v10226_v44 }
  0x99   : > { %8876 = vmatprep.mubr.msk.f32.mxu1 %vm829_vm1, %v10300_v59 }
  0x9b   : > { %8827 = vmatmul.mubr.msk.f32.gmra.mxu0 %vm829_vm1, %v10237_v45 }
  0x9c   : > { %8877 = vmatmul.mubr.msk.f32.gmra.mxu1 %vm829_vm1, %v10314_v61  ;;  %8829 = vmatprep.mubr.msk.f32.mxu0 %vm829_vm1, %v7423_v8  ;;  %v10580_v8 = vld [vmem:[%s13211_s1 + $0x20] sm:$0xf] }
  0x9d   : > { %8879 = vmatprep.mubr.msk.f32.mxu1 %vm829_vm1, %v10240_v46 }
  0x9f   : > { %8830 = vmatmul.mubr.msk.f32.gmra.mxu0 %vm829_vm1, %v10428_v9 }
  0xa0   : > { %8880 = vmatmul.mubr.msk.f32.gmra.mxu1 %vm829_vm1, %v10251_v48  ;;  %8832 = vmatprep.mubr.msk.f32.mxu0 %vm829_vm1, %v10433_v10 }
  0xa1   : > { %8882 = vmatprep.mubr.msk.f32.mxu1 %vm829_vm1, %v10257_v50 }
  0xa3   : > { %8833 = vmatmul.mubr.msk.f32.gmra.mxu0 %vm829_vm1, %v10442_v11 }
  0xa4   : > { %8883 = vmatmul.mubr.msk.f32.gmra.mxu1 %vm829_vm1, %v10271_v52  ;;  %8835 = vmatprep.mubr.msk.f32.mxu0 %vm829_vm1, %v10447_v12 }
  0xa5   : > { %8885 = vmatprep.mubr.msk.f32.mxu1 %vm829_vm1, %v10277_v54 }
  0xa7   : > { %8836 = vmatmul.mubr.msk.f32.gmra.mxu0 %vm829_vm1, %v10456_v13 }
  0xa8   : > { %8886 = vmatmul.mubr.msk.f32.gmra.mxu1 %vm829_vm1, %v10291_v56  ;;  %8838 = vmatprep.mubr.msk.f32.mxu0 %vm829_vm1, %v10461_v14 }
  0xa9   : > { %8888 = vmatprep.mubr.msk.f32.mxu1 %vm829_vm1, %v10297_v58 }
  0xab   : > { %8839 = vmatmul.mubr.msk.f32.gmra.mxu0 %vm829_vm1, %v10470_v15 }
  0xac   : > { %8889 = vmatmul.mubr.msk.f32.gmra.mxu1 %vm829_vm1, %v10311_v60  ;;  %8841 = vmatprep.mubr.msk.f32.mxu0 %vm829_vm1, %v10317_v62 }
  0xad   : > { %8891 = vmatprep.mubr.msk.f32.mxu1 %vm829_vm1, %v10106_v23 }
  0xaf   : > { %8842 = vmatmul.mubr.msk.f32.gmra.mxu0 %vm829_vm1, %v10328_v63 }
  0xb0   : > { %8892 = vmatmul.mubr.msk.f32.gmra.mxu1 %vm829_vm1, %v10112_v25  ;;  %8844 = vmatprep.mubr.msk.f32.mxu0 %vm829_vm1, %v10331_v0 }
  0xb1   : > { %8894 = vmatprep.mubr.msk.f32.mxu1 %vm829_vm1, %v10135_v29 }
  0xb3   : > { %8845 = vmatmul.mubr.msk.f32.gmra.mxu0 %vm829_vm1, %v10342_v1 }
  0xb4   : > { %8895 = vmatmul.mubr.msk.f32.gmra.mxu1 %vm829_vm1, %v10143_v31  ;;  %8847 = vmatprep.mubr.msk.f32.mxu0 %vm829_vm1, %v10345_v2 }
  0xb5   : > { %8897 = vmatprep.mubr.msk.f32.mxu1 %vm829_vm1, %v10162_v33 }
  0xb7   : > { %8848 = vmatmul.mubr.msk.f32.gmra.mxu0 %vm829_vm1, %v10356_v3 }
  0xb8   : > { %8898 = vmatmul.mubr.msk.f32.gmra.mxu1 %vm829_vm1, %v10168_v35  ;;  %8850 = vmatprep.mubr.msk.f32.mxu0 %vm829_vm1, %v10359_v4 }
  0xb9   : > { %8900 = vmatprep.mubr.msk.f32.mxu1 %vm829_vm1, %v10182_v37 }
  0xbb   : > { %8851 = vmatmul.mubr.msk.f32.gmra.mxu0 %vm829_vm1, %v10370_v5 }
  0xbc   : > { %8901 = vmatmul.mubr.msk.f32.gmra.mxu1 %vm829_vm1, %v10507_v16  ;;  %8853 = vmatprep.mubr.msk.f32.mxu0 %vm829_vm1, %v7431_v17 }
  0xbd   : > { %8903 = vmatprep.mubr.msk.f32.mxu1 %vm829_vm1, %v10101_v22 }
  0xbf   : > { %8854 = vmatmul.mubr.msk.f32.gmra.mxu0 %vm829_vm1, %v10516_v18 }
  0xc0   : > { %8904 = vmatmul.mubr.msk.f32.gmra.mxu1 %vm829_vm1, %v10109_v24  ;;  %8856 = vmatprep.mubr.msk.f32.mxu0 %vm829_vm1, %v10521_v19 }
  0xc1   : > { %8906 = vmatprep.mubr.msk.f32.mxu1 %vm829_vm1, %v10132_v28 }
  0xc3   : > { %8857 = vmatmul.mubr.msk.f32.gmra.mxu0 %vm829_vm1, %v10530_v20 }
  0xc4   : > { %8907 = vmatmul.mubr.msk.f32.gmra.mxu1 %vm829_vm1, %v10140_v30  ;;  %8859 = vmatprep.mubr.msk.f32.mxu0 %vm829_vm1, %v10535_v21 }
  0xc5   : > { %8909 = vmatprep.mubr.msk.f32.mxu1 %vm829_vm1, %v10159_v32 }
  0xc7   : > { %8860 = vmatmul.mubr.msk.f32.gmra.mxu0 %vm829_vm1, %v10544_v26 }
  0xc8   : > { %8910 = vmatmul.mubr.msk.f32.gmra.mxu1 %vm829_vm1, %v10165_v34  ;;  %8862 = vmatprep.mubr.msk.f32.mxu0 %vm829_vm1, %v10549_v27 }
  0xc9   : > { %8912 = vmatprep.mubr.msk.f32.mxu1 %vm829_vm1, %v10179_v36 }
  0xcb   : > { %8863 = vmatmul.mubr.msk.f32.gmra.mxu0 %vm829_vm1, %v10558_v38 }
  0xcc   : > { %8913 = vmatmul.mubr.msk.f32.gmra.mxu1 %vm829_vm1, %v10563_v47  ;;  %8917 = vmatprep.mubr.msk.f32.mxu0 %vm829_vm1, %v10240_v46  ;;  %v10672_v46 = vld [vmem:[%s10096_s21 + $0x261] sm:$0xff] }
  0xcd   : > { %8967 = vmatprep.mubr.msk.f32.mxu1 %vm829_vm1, %v10317_v62 }
  0xcf   : > { %8918 = vmatmul.mubr.msk.f32.vlgmr.msra.gmra.mxu0 %vm829_vm1, %v10251_v48 }
  0xd0   : > { %8968 = vmatmul.mubr.msk.f32.vlgmr.msra.gmra.mxu1 %vm829_vm1, %v10328_v63  ;;  %9016 = vmatpush3.msk.msra.mxu0 %vm926_vm0, %v10386_v6 }
  0xd1   : > { %8920 = vmatprep.mubr.msk.f32.mxu0 %vm829_vm1, %v10257_v50  ;;  %8970 = vmatprep.mubr.msk.f32.mxu1 %vm829_vm1, %v10331_v0 }
  0xd2   : > { %9066 = vmatpush3.msk.msra.mxu1 %vm926_vm0, %v10391_v7  ;;  %9115 = vmatprep.subr.msk.mxu0 %vm926_vm0, %v10580_v8 }
  0xd3   : > { %8921 = vmatmul.mubr.msk.f32.gmra.mxu0 %vm829_vm1, %v10271_v52 }
  0xd4   : > { %8971 = vmatmul.mubr.msk.f32.gmra.mxu1 %vm829_vm1, %v10342_v1  ;;  %8923 = vmatprep.mubr.msk.f32.mxu0 %vm829_vm1, %v10277_v54 }
  0xd5   : > { %8973 = vmatprep.mubr.msk.f32.mxu1 %vm829_vm1, %v10345_v2 }
  0xd7   : > { %8924 = vmatmul.mubr.msk.f32.gmra.mxu0 %vm829_vm1, %v10291_v56 }
  0xd8   : > { %8974 = vmatmul.mubr.msk.f32.gmra.mxu1 %vm829_vm1, %v10356_v3  ;;  %8926 = vmatprep.mubr.msk.f32.mxu0 %vm829_vm1, %v10297_v58 }
  0xd9   : > { %8976 = vmatprep.mubr.msk.f32.mxu1 %vm829_vm1, %v10359_v4 }
  0xdb   : > { %8927 = vmatmul.mubr.msk.f32.gmra.mxu0 %vm829_vm1, %v10311_v60 }
  0xdc   : > { %8977 = vmatmul.mubr.msk.f32.gmra.mxu1 %vm829_vm1, %v10370_v5  ;;  %8929 = vmatprep.mubr.msk.f32.mxu0 %vm829_vm1, %v10317_v62  ;;  %v10707_v62 = vld [vmem:[%s10096_s21 + $0x1c2] sm:$0xff] }
  0xdd   : > { %8979 = vmatprep.mubr.msk.f32.mxu1 %vm829_vm1, %v7431_v17 }
  0xdf   : > { %8930 = vmatmul.mubr.msk.f32.gmra.mxu0 %vm829_vm1, %v10328_v63 }
  0xe0   : > { %8980 = vmatmul.mubr.msk.f32.gmra.mxu1 %vm829_vm1, %v10516_v18  ;;  %8932 = vmatprep.mubr.msk.f32.mxu0 %vm829_vm1, %v10331_v0 }
  0xe1   : > { %8982 = vmatprep.mubr.msk.f32.mxu1 %vm829_vm1, %v10521_v19 }
  0xe3   : > { %8933 = vmatmul.mubr.msk.f32.gmra.mxu0 %vm829_vm1, %v10342_v1 }
  0xe4   : > { %8983 = vmatmul.mubr.msk.f32.gmra.mxu1 %vm829_vm1, %v10530_v20  ;;  %8935 = vmatprep.mubr.msk.f32.mxu0 %vm829_vm1, %v10345_v2 }
  0xe5   : > { %8985 = vmatprep.mubr.msk.f32.mxu1 %vm829_vm1, %v10535_v21 }
  0xe7   : > { %8936 = vmatmul.mubr.msk.f32.gmra.mxu0 %vm829_vm1, %v10356_v3 }
  0xe8   : > { %8986 = vmatmul.mubr.msk.f32.gmra.mxu1 %vm829_vm1, %v10544_v26  ;;  %8938 = vmatprep.mubr.msk.f32.mxu0 %vm829_vm1, %v10359_v4 }
  0xe9   : > { %8988 = vmatprep.mubr.msk.f32.mxu1 %vm829_vm1, %v10549_v27 }
  0xeb   : > { %8939 = vmatmul.mubr.msk.f32.gmra.mxu0 %vm829_vm1, %v10370_v5 }
  0xec   : > { %8989 = vmatmul.mubr.msk.f32.gmra.mxu1 %vm829_vm1, %v10558_v38  ;;  %8941 = vmatprep.mubr.msk.f32.mxu0 %vm829_vm1, %v10101_v22 }
  0xed   : > { %8991 = vmatprep.mubr.msk.f32.mxu1 %vm829_vm1, %v10195_v39 }
  0xef   : > { %8942 = vmatmul.mubr.msk.f32.gmra.mxu0 %vm829_vm1, %v10109_v24 }
  0xf0   : > { %8992 = vmatmul.mubr.msk.f32.gmra.mxu1 %vm829_vm1, %v10198_v40  ;;  %8944 = vmatprep.mubr.msk.f32.mxu0 %vm829_vm1, %v10132_v28 }
  0xf1   : > { %8994 = vmatprep.mubr.msk.f32.mxu1 %vm829_vm1, %v10209_v41 }
  0xf3   : > { %8945 = vmatmul.mubr.msk.f32.gmra.mxu0 %vm829_vm1, %v10140_v30 }
  0xf4   : > { %8995 = vmatmul.mubr.msk.f32.gmra.mxu1 %vm829_vm1, %v10212_v42  ;;  %8947 = vmatprep.mubr.msk.f32.mxu0 %vm829_vm1, %v10159_v32 }
  0xf5   : > { %8997 = vmatprep.mubr.msk.f32.mxu1 %vm829_vm1, %v10223_v43 }
  0xf7   : > { %8948 = vmatmul.mubr.msk.f32.gmra.mxu0 %vm829_vm1, %v10165_v34 }
  0xf8   : > { %8998 = vmatmul.mubr.msk.f32.gmra.mxu1 %vm829_vm1, %v10226_v44  ;;  %8950 = vmatprep.mubr.msk.f32.mxu0 %vm829_vm1, %v10179_v36 }
  0xf9   : > { %9000 = vmatprep.mubr.msk.f32.mxu1 %vm829_vm1, %v10237_v45 }
  0xfb   : > { %8951 = vmatmul.mubr.msk.f32.gmra.mxu0 %vm829_vm1, %v10563_v47 }
  0xfc   : > { %9001 = vmatmul.mubr.msk.f32.gmra.mxu1 %vm829_vm1, %v10672_v46  ;;  %8953 = vmatprep.mubr.msk.f32.mxu0 %vm829_vm1, %v10195_v39 }
  0xfd   : > { %9003 = vmatprep.mubr.msk.f32.mxu1 %vm829_vm1, %v10428_v9 }
  0xff   : > { %8954 = vmatmul.mubr.msk.f32.gmra.mxu0 %vm829_vm1, %v10198_v40 }
 0x100   : > { %9004 = vmatmul.mubr.msk.f32.gmra.mxu1 %vm829_vm1, %v10433_v10  ;;  %8956 = vmatprep.mubr.msk.f32.mxu0 %vm829_vm1, %v10209_v41 }
 0x101   : > { %9006 = vmatprep.mubr.msk.f32.mxu1 %vm829_vm1, %v10442_v11 }
 0x103   : > { %8957 = vmatmul.mubr.msk.f32.gmra.mxu0 %vm829_vm1, %v10212_v42 }
 0x104   : > { %9007 = vmatmul.mubr.msk.f32.gmra.mxu1 %vm829_vm1, %v10447_v12  ;;  %8959 = vmatprep.mubr.msk.f32.mxu0 %vm829_vm1, %v10223_v43 }
 0x105   : > { %9009 = vmatprep.mubr.msk.f32.mxu1 %vm829_vm1, %v10456_v13 }
 0x107   : > { %8960 = vmatmul.mubr.msk.f32.gmra.mxu0 %vm829_vm1, %v10226_v44 }
 0x108   : > { %9010 = vmatmul.mubr.msk.f32.gmra.mxu1 %vm829_vm1, %v10461_v14  ;;  %8962 = vmatprep.mubr.msk.f32.mxu0 %vm829_vm1, %v10237_v45 }
 0x109   : > { %9012 = vmatprep.mubr.msk.f32.mxu1 %vm829_vm1, %v10470_v15 }
 0x10b   : > { %8963 = vmatmul.mubr.msk.f32.gmra.mxu0 %vm829_vm1, %v10672_v46 }
 0x10c   : > { %9013 = vmatmul.mubr.msk.f32.gmra.mxu1 %vm829_vm1, %v10707_v62  ;;  %9017 = vmatprep.mubr.msk.f32.mxu0 %vm829_vm1, %v10106_v23 }
 0x10d   : > { %9067 = vmatprep.mubr.msk.f32.mxu1 %vm829_vm1, %v10101_v22 }
 0x10f   : > { %v8719_v6 = vpop.f32.mrf.mxu0  ;;  %9018 = vmatmul.mubr.msk.f32.vlgmr.msra.gmra.mxu0 %vm829_vm1, %v10112_v25 }
 0x110   : > { %v8769_v7 = vpop.f32.mrf.mxu1  ;;  %9068 = vmatmul.mubr.msk.f32.vlgmr.msra.gmra.mxu1 %vm829_vm1, %v10109_v24  ;;  %9116 = vmatpush3.msk.msra.mxu0 %vm926_vm0, %v10580_v8 }
 0x111   : > { %v10721_v17 = vadd.f32 %v8769_v7, %v8719_v6  ;;  %9020 = vmatprep.mubr.msk.f32.mxu0 %vm829_vm1, %v10135_v29  ;;  %v996_v23 = vpop.f32.mrf.mxu0  ;;  %9070 = vmatprep.mubr.msk.f32.mxu1 %vm829_vm1, %v10132_v28 }
 0x112   : > { %v1272_v38 = vpop.f32.mrf.mxu1 }
 0x113   : > { %v10729_v27 = vadd.f32 %v1272_v38, %v996_v23  ;;  %v8722_v26 = vpop.f32.mrf.mxu0  ;;  %9021 = vmatmul.mubr.msk.f32.gmra.mxu0 %vm829_vm1, %v10143_v31 }
 0x114   : > { %v8772_v25 = vpop.f32.mrf.mxu1  ;;  %9071 = vmatmul.mubr.msk.f32.gmra.mxu1 %vm829_vm1, %v10140_v30  ;;  %9023 = vmatprep.mubr.msk.f32.mxu0 %vm829_vm1, %v10162_v33 }
 0x115   : > { %v10735_v6 = vadd.f32 %v8772_v25, %v8722_v26  ;;  %9073 = vmatprep.mubr.msk.f32.mxu1 %vm829_vm1, %v10159_v32  ;;  %v1006_v29 = vpop.f32.mrf.mxu0 }
 0x116   : > { %v1282_v8 = vpop.f32.mrf.mxu1 }
 0x117   : > { %v10741_v38 = vadd.f32 %v1282_v8, %v1006_v29  ;;  %v8725_v7 = vpop.f32.mrf.mxu0  ;;  %9024 = vmatmul.mubr.msk.f32.gmra.mxu0 %vm829_vm1, %v10168_v35 }
 0x118   : > { %v8775_v23 = vpop.f32.mrf.mxu1  ;;  %9074 = vmatmul.mubr.msk.f32.gmra.mxu1 %vm829_vm1, %v10165_v34  ;;  %9026 = vmatprep.mubr.msk.f32.mxu0 %vm829_vm1, %v10182_v37 }
 0x119   : > { %v10747_v31 = vadd.f32 %v8775_v23, %v8725_v7  ;;  %9076 = vmatprep.mubr.msk.f32.mxu1 %vm829_vm1, %v10179_v36  ;;  %v1016_v33 = vpop.f32.mrf.mxu0 }
 0x11a   : > { %v1292_v26 = vpop.f32.mrf.mxu1 }
 0x11b   : > { %v10753_v25 = vadd.f32 %v1292_v26, %v1016_v33  ;;  %v8728_v29 = vpop.f32.mrf.mxu0  ;;  %9027 = vmatmul.mubr.msk.f32.gmra.mxu0 %vm829_vm1, %v10507_v16 }
 0x11c   : > { %v8778_v8 = vpop.f32.mrf.mxu1  ;;  %9077 = vmatmul.mubr.msk.f32.gmra.mxu1 %vm829_vm1, %v10563_v47  ;;  %9029 = vmatprep.mubr.msk.f32.mxu0 %vm829_vm1, %v10101_v22 }
 0x11d   : > { %v10759_v35 = vadd.f32 %v8778_v8, %v8728_v29  ;;  %9079 = vmatprep.mubr.msk.f32.mxu1 %vm829_vm1, %v10195_v39  ;;  %v1026_v37 = vpop.f32.mrf.mxu0 }
 0x11e   : > { %v1302_v7 = vpop.f32.mrf.mxu1 }
 0x11f   : > { %v10765_v23 = vadd.f32 %v1302_v7, %v1026_v37  ;;  %v8731_v33 = vpop.f32.mrf.mxu0  ;;  %9030 = vmatmul.mubr.msk.f32.gmra.mxu0 %vm829_vm1, %v10109_v24 }
 0x120   : > { %v8781_v26 = vpop.f32.mrf.mxu1  ;;  %9080 = vmatmul.mubr.msk.f32.gmra.mxu1 %vm829_vm1, %v10198_v40  ;;  %9032 = vmatprep.mubr.msk.f32.mxu0 %vm829_vm1, %v10132_v28 }
 0x121   : > { %v10771_v16 = vadd.f32 %v8781_v26, %v8731_v33  ;;  %9082 = vmatprep.mubr.msk.f32.mxu1 %vm829_vm1, %v10209_v41  ;;  %v1036_v22 = vpop.f32.mrf.mxu0 }
 0x122   : > { %v1312_v29 = vpop.f32.mrf.mxu1 }
 0x123   : > { %v10777_v8 = vadd.f32 %v1312_v29, %v1036_v22  ;;  %v8734_v37 = vpop.f32.mrf.mxu0  ;;  %9033 = vmatmul.mubr.msk.f32.gmra.mxu0 %vm829_vm1, %v10140_v30 }
 0x124   : > { %v8784_v7 = vpop.f32.mrf.mxu1  ;;  %9083 = vmatmul.mubr.msk.f32.gmra.mxu1 %vm829_vm1, %v10212_v42  ;;  %9035 = vmatprep.mubr.msk.f32.mxu0 %vm829_vm1, %v10159_v32 }
 0x125   : > { %v10783_v24 = vadd.f32 %v8784_v7, %v8734_v37  ;;  %9085 = vmatprep.mubr.msk.f32.mxu1 %vm829_vm1, %v10223_v43  ;;  %v1046_v28 = vpop.f32.mrf.mxu0 }
 0x126   : > { %v1322_v33 = vpop.f32.mrf.mxu1 }
 0x127   : > { %v10789_v26 = vadd.f32 %v1322_v33, %v1046_v28  ;;  %v8737_v22 = vpop.f32.mrf.mxu0  ;;  %9036 = vmatmul.mubr.msk.f32.gmra.mxu0 %vm829_vm1, %v10165_v34 }
 0x128   : > { %v8787_v29 = vpop.f32.mrf.mxu1  ;;  %9086 = vmatmul.mubr.msk.f32.gmra.mxu1 %vm829_vm1, %v10226_v44  ;;  %9038 = vmatprep.mubr.msk.f32.mxu0 %vm829_vm1, %v10179_v36 }
 0x129   : > { %v10795_v30 = vadd.f32 %v8787_v29, %v8737_v22  ;;  %9088 = vmatprep.mubr.msk.f32.mxu1 %vm829_vm1, %v10237_v45  ;;  %v1056_v32 = vpop.f32.mrf.mxu0 }
 0x12a   : > { %v1332_v37 = vpop.f32.mrf.mxu1 }
 0x12b   : > { %v10801_v7 = vadd.f32 %v1332_v37, %v1056_v32  ;;  %v8740_v28 = vpop.f32.mrf.mxu0  ;;  %9039 = vmatmul.mubr.msk.f32.gmra.mxu0 %vm829_vm1, %v10563_v47 }
 0x12c   : > { %v8790_v33 = vpop.f32.mrf.mxu1  ;;  %9089 = vmatmul.mubr.msk.f32.gmra.mxu1 %vm829_vm1, %v10672_v46  ;;  %9041 = vmatprep.mubr.msk.f32.mxu0 %vm829_vm1, %v10254_v49 }
 0x12d   : > { %v10807_v34 = vadd.f32 %v8790_v33, %v8740_v28  ;;  %9091 = vmatprep.mubr.msk.f32.mxu1 %vm829_vm1, %v10251_v48  ;;  %v1066_v36 = vpop.f32.mrf.mxu0 }
 0x12e   : > { %v1342_v22 = vpop.f32.mrf.mxu1 }
 0x12f   : > { %v10813_v29 = vadd.f32 %v1342_v22, %v1066_v36  ;;  %v8743_v32 = vpop.f32.mrf.mxu0  ;;  %9042 = vmatmul.mubr.msk.f32.gmra.mxu0 %vm829_vm1, %v10260_v51 }
 0x130   : > { %v8793_v37 = vpop.f32.mrf.mxu1  ;;  %9092 = vmatmul.mubr.msk.f32.gmra.mxu1 %vm829_vm1, %v10257_v50  ;;  %9044 = vmatprep.mubr.msk.f32.mxu0 %vm829_vm1, %v10274_v53 }
 0x131   : > { %v10819_v47 = vadd.f32 %v8793_v37, %v8743_v32  ;;  %9094 = vmatprep.mubr.msk.f32.mxu1 %vm829_vm1, %v10271_v52  ;;  %v10825_v49 = vpop.f32.mrf.mxu0 }
 0x132   : > { %13235 = vst [vmem:[#allocation15_spill] sm:$0xff] %v10825_v49  ;;  %v10827_v28 = vpop.f32.mrf.mxu1 }
 0x133   : > { %13236 = vst [vmem:[#allocation16_spill] sm:$0xff] %v10827_v28  ;;  %v8746_v33 = vpop.f32.mrf.mxu0  ;;  %9045 = vmatmul.mubr.msk.f32.gmra.mxu0 %vm829_vm1, %v10280_v55 }
 0x134   : > { %v8796_v36 = vpop.f32.mrf.mxu1  ;;  %9095 = vmatmul.mubr.msk.f32.gmra.mxu1 %vm829_vm1, %v10277_v54  ;;  %9047 = vmatprep.mubr.msk.f32.mxu0 %vm829_vm1, %v10294_v57  ;;  %v7614_v57 = vld [vmem:[%s10096_s21 + $0x130] sm:$0xff] }
 0x135   : > { %v10833_v51 = vadd.f32 %v8796_v36, %v8746_v33  ;;  %9097 = vmatprep.mubr.msk.f32.mxu1 %vm829_vm1, %v10291_v56  ;;  %v10839_v53 = vpop.f32.mrf.mxu0  ;;  %v7622_v33 = vld [vmem:[%s10096_s21 + $0x91] sm:$0xff] }
 0x136   : > { %13237 = vst [vmem:[#allocation17_spill] sm:$0xff] %v10839_v53  ;;  %v10841_v22 = vpop.f32.mrf.mxu1 }
 0x137   : > { %13238 = vst [vmem:[#allocation18_spill] sm:$0xff] %v10841_v22  ;;  %v8749_v32 = vpop.f32.mrf.mxu0  ;;  %9048 = vmatmul.mubr.msk.f32.gmra.mxu0 %vm829_vm1, %v10300_v59 }
 0x138   : > { %v8799_v37 = vpop.f32.mrf.mxu1  ;;  %9098 = vmatmul.mubr.msk.f32.gmra.mxu1 %vm829_vm1, %v10297_v58  ;;  %9050 = vmatprep.mubr.msk.f32.mxu0 %vm829_vm1, %v10314_v61 }
 0x139   : > { %v10847_v55 = vadd.f32 %v8799_v37, %v8749_v32  ;;  %9100 = vmatprep.mubr.msk.f32.mxu1 %vm829_vm1, %v10311_v60  ;;  %v10855_v36 = vpop.f32.mrf.mxu0 }
 0x13a   : > { %13239 = vst [vmem:[#allocation19_spill] sm:$0xff] %v10855_v36  ;;  %v10857_v22 = vpop.f32.mrf.mxu1 }
 0x13b   : > { %13240 = vst [vmem:[#allocation20_spill] sm:$0xff] %v10857_v22  ;;  %v8752_v53 = vpop.f32.mrf.mxu0  ;;  %9051 = vmatmul.mubr.msk.f32.gmra.mxu0 %vm829_vm1, %v7614_v57 }
 0x13c   : > { %v8802_v28 = vpop.f32.mrf.mxu1  ;;  %9101 = vmatmul.mubr.msk.f32.gmra.mxu1 %vm829_vm1, %v7622_v33  ;;  %9053 = vmatprep.mubr.msk.f32.mxu0 %vm829_vm1, %v10251_v48 }
 0x13d   : > { %v10861_v59 = vadd.f32 %v8802_v28, %v8752_v53  ;;  %9103 = vmatprep.mubr.msk.f32.mxu1 %vm829_vm1, %v10328_v63  ;;  %v10867_v61 = vpop.f32.mrf.mxu0 }
 0x13e   : > { %13241 = vst [vmem:[#allocation21_spill] sm:$0xff] %v10867_v61  ;;  %v10869_v32 = vpop.f32.mrf.mxu1 }
 0x13f   : > { %13242 = vst [vmem:[#allocation22_spill] sm:$0xff] %v10869_v32  ;;  %v8755_v37 = vpop.f32.mrf.mxu0  ;;  %9054 = vmatmul.mubr.msk.f32.gmra.mxu0 %vm829_vm1, %v10257_v50 }
 0x140   : > { %v8805_v22 = vpop.f32.mrf.mxu1  ;;  %9104 = vmatmul.mubr.msk.f32.gmra.mxu1 %vm829_vm1, %v10331_v0  ;;  %9056 = vmatprep.mubr.msk.f32.mxu0 %vm829_vm1, %v10271_v52 }
 0x141   : > { %v10875_v28 = vadd.f32 %v8805_v22, %v8755_v37  ;;  %9106 = vmatprep.mubr.msk.f32.mxu1 %vm829_vm1, %v10342_v1  ;;  %v10881_v48 = vpop.f32.mrf.mxu0 }
 0x142   : > { %13243 = vst [vmem:[#allocation23_spill] sm:$0xff] %v10881_v48  ;;  %v10883_v53 = vpop.f32.mrf.mxu1 }
 0x143   : > { %13244 = vst [vmem:[#allocation24_spill] sm:$0xff] %v10883_v53  ;;  %v8758_v57 = vpop.f32.mrf.mxu0  ;;  %9057 = vmatmul.mubr.msk.f32.gmra.mxu0 %vm829_vm1, %v10277_v54 }
 0x144   : > { %v8808_v32 = vpop.f32.mrf.mxu1  ;;  %9107 = vmatmul.mubr.msk.f32.gmra.mxu1 %vm829_vm1, %v10345_v2  ;;  %9059 = vmatprep.mubr.msk.f32.mxu0 %vm829_vm1, %v10291_v56  ;;  %v10910_v56 = vld [vmem:[%s10096_s21 + $0x131] sm:$0xff] }
 0x145   : > { %v10889_v50 = vadd.f32 %v8808_v32, %v8758_v57  ;;  %9109 = vmatprep.mubr.msk.f32.mxu1 %vm829_vm1, %v10356_v3  ;;  %v10895_v52 = vpop.f32.mrf.mxu0 }
 0x146   : > { %13245 = vst [vmem:[#allocation25_spill] sm:$0xff] %v10895_v52  ;;  %v10897_v22 = vpop.f32.mrf.mxu1 }
 0x147   : > { %13246 = vst [vmem:[#allocation26_spill] sm:$0xff] %v10897_v22  ;;  %v8761_v37 = vpop.f32.mrf.mxu0  ;;  %9060 = vmatmul.mubr.msk.f32.gmra.mxu0 %vm829_vm1, %v10297_v58 }
 0x148   : > { %v8811_v53 = vpop.f32.mrf.mxu1  ;;  %9110 = vmatmul.mubr.msk.f32.gmra.mxu1 %vm829_vm1, %v10359_v4  ;;  %9062 = vmatprep.mubr.msk.f32.mxu0 %vm829_vm1, %v10311_v60 }
 0x149   : > { %v10903_v54 = vadd.f32 %v8811_v53, %v8761_v37  ;;  %9112 = vmatprep.mubr.msk.f32.mxu1 %vm829_vm1, %v10370_v5  ;;  %v10912_v32 = vpop.f32.mrf.mxu0 }
 0x14a   : > { %13247 = vst [vmem:[#allocation27_spill] sm:$0xff] %v10912_v32  ;;  %v10914_v57 = vpop.f32.mrf.mxu1 }
 0x14b   : > { %13248 = vst [vmem:[#allocation28_spill] sm:$0xff] %v10914_v57  ;;  %v8764_v22 = vpop.f32.mrf.mxu0  ;;  %9063 = vmatmul.mubr.msk.f32.gmra.mxu0 %vm829_vm1, %v7622_v33 }
 0x14c   : > { %v8814_v52 = vpop.f32.mrf.mxu1  ;;  %9113 = vmatmul.mubr.msk.f32.gmra.mxu1 %vm829_vm1, %v10910_v56  ;;  %9117 = vmatprep.mubr.msk.f32.mxu0 %vm829_vm1, %v10195_v39 }
 0x14d   : > { %v10919_v58 = vadd.f32 %v8814_v52, %v8764_v22  ;;  %v10923_v60 = vpop.f32.mrf.mxu0 }
 0x14e   : > { %13249 = vst [vmem:[#allocation29_spill] sm:$0xff] %v10923_v60  ;;  %v10925_v53 = vpop.f32.mrf.mxu1 }
 0x14f   : > { %13250 = vst [vmem:[#allocation30_spill] sm:$0xff] %v10925_v53  ;;  %v8819_v37 = vpop.f32.mrf.mxu0  ;;  %9118 = vmatmul.mubr.msk.f32.vlgmr.msra.gmra.mxu0 %vm829_vm1, %v10198_v40 }
 0x150   : > { %v8869_v57 = vpop.f32.mrf.mxu1  ;;  %v1726_v32 = vadd.f32 %v8819_v37, %v10721_v17  ;;  %9120 = vmatprep.mubr.msk.f32.mxu0 %vm829_vm1, %v10209_v41 }
 0x151   : > { %v1566_v33 = vpop.f32.mrf.mxu0 }
 0x152   : > { %v10932_v52 = vpop.f32.mrf.mxu1  ;;  %v10935_v22 = vadd.f32 %v1566_v33, %v10729_v27  ;;  %v10937_v39 = vadd.f32 %v8869_v57, %v1726_v32 }
 0x153   : > { %v8822_v60 = vpop.f32.mrf.mxu0  ;;  %9121 = vmatmul.mubr.msk.f32.gmra.mxu0 %vm829_vm1, %v10212_v42 }
 0x154   : > { %v8872_v53 = vpop.f32.mrf.mxu1  ;;  %v1728_v40 = vadd.f32 %v8822_v60, %v10735_v6  ;;  %9123 = vmatprep.mubr.msk.f32.mxu0 %vm829_vm1, %v10223_v43 }
 0x155   : > { %v1576_v17 = vpop.f32.mrf.mxu0 }
 0x156   : > { %v10944_v41 = vpop.f32.mrf.mxu1  ;;  %v10947_v37 = vadd.f32 %v1576_v17, %v10741_v38  ;;  %v10949_v27 = vadd.f32 %v8872_v53, %v1728_v40 }
 0x157   : > { %v8825_v32 = vpop.f32.mrf.mxu0  ;;  %9124 = vmatmul.mubr.msk.f32.gmra.mxu0 %vm829_vm1, %v10226_v44 }
 0x158   : > { %v8875_v57 = vpop.f32.mrf.mxu1  ;;  %v1730_v42 = vadd.f32 %v8825_v32, %v10747_v31  ;;  %9126 = vmatprep.mubr.msk.f32.mxu0 %vm829_vm1, %v10237_v45 }
 0x159   : > { %v1586_v6 = vpop.f32.mrf.mxu0 }
 0x15a   : > { %v10956_v43 = vpop.f32.mrf.mxu1  ;;  %v10959_v60 = vadd.f32 %v1586_v6, %v10753_v25  ;;  %v10961_v38 = vadd.f32 %v8875_v57, %v1730_v42 }
 0x15b   : > { %v8828_v53 = vpop.f32.mrf.mxu0  ;;  %9127 = vmatmul.mubr.msk.f32.gmra.mxu0 %vm829_vm1, %v10672_v46 }
 0x15c   : > { %v8878_v33 = vpop.f32.mrf.mxu1  ;;  %v1732_v44 = vadd.f32 %v8828_v53, %v10759_v35  ;;  %9129 = vmatprep.mubr.msk.f32.mxu0 %vm829_vm1, %v10428_v9 }
 0x15d   : > { %v1596_v31 = vpop.f32.mrf.mxu0 }
 0x15e   : > { %v10968_v45 = vpop.f32.mrf.mxu1  ;;  %v10971_v40 = vadd.f32 %v1596_v31, %v10765_v23  ;;  %v10973_v25 = vadd.f32 %v8878_v33, %v1732_v44 }
 0x15f   : > { %v8831_v17 = vpop.f32.mrf.mxu0  ;;  %9130 = vmatmul.mubr.msk.f32.gmra.mxu0 %vm829_vm1, %v10433_v10 }
 0x160   : > { %v8881_v32 = vpop.f32.mrf.mxu1  ;;  %v1734_v46 = vadd.f32 %v8831_v17, %v10771_v16  ;;  %9132 = vmatprep.mubr.msk.f32.mxu0 %vm829_vm1, %v10442_v11 }
 0x161   : > { %v1606_v35 = vpop.f32.mrf.mxu0 }
 0x162   : > { %v10980_v9 = vpop.f32.mrf.mxu1  ;;  %v10983_v57 = vadd.f32 %v1606_v35, %v10777_v8  ;;  %v10985_v23 = vadd.f32 %v8881_v32, %v1734_v46 }
 0x163   : > { %v8834_v42 = vpop.f32.mrf.mxu0  ;;  %9133 = vmatmul.mubr.msk.f32.gmra.mxu0 %vm829_vm1, %v10447_v12 }
 0x164   : > { %v8884_v6 = vpop.f32.mrf.mxu1  ;;  %v1736_v10 = vadd.f32 %v8834_v42, %v10783_v24  ;;  %9135 = vmatprep.mubr.msk.f32.mxu0 %vm829_vm1, %v10456_v13 }
 0x165   : > { %v1616_v16 = vpop.f32.mrf.mxu0 }
 0x166   : > { %v10992_v11 = vpop.f32.mrf.mxu1  ;;  %v10995_v53 = vadd.f32 %v1616_v16, %v10789_v26  ;;  %v10997_v8 = vadd.f32 %v8884_v6, %v1736_v10 }
 0x167   : > { %v8837_v33 = vpop.f32.mrf.mxu0  ;;  %9136 = vmatmul.mubr.msk.f32.gmra.mxu0 %vm829_vm1, %v10461_v14 }
 0x168   : > { %v8887_v44 = vpop.f32.mrf.mxu1  ;;  %v1738_v12 = vadd.f32 %v8837_v33, %v10795_v30  ;;  %9138 = vmatprep.mubr.msk.f32.mxu0 %vm829_vm1, %v10470_v15 }
 0x169   : > { %v1626_v24 = vpop.f32.mrf.mxu0 }
 0x16a   : > { %v11004_v13 = vpop.f32.mrf.mxu1  ;;  %v11007_v31 = vadd.f32 %v1626_v24, %v10801_v7  ;;  %v11009_v26 = vadd.f32 %v8887_v44, %v1738_v12 }
 0x16b   : > { %v8840_v17 = vpop.f32.mrf.mxu0  ;;  %9139 = vmatmul.mubr.msk.f32.gmra.mxu0 %vm829_vm1, %v10707_v62 }
 0x16c   : > { %v8890_v32 = vpop.f32.mrf.mxu1  ;;  %v1740_v14 = vadd.f32 %v8840_v17, %v10807_v34  ;;  %9141 = vmatprep.mubr.msk.f32.mxu0 %vm829_vm1, %v10328_v63 }
 0x16d   : > { %v1636_v30 = vpop.f32.mrf.mxu0 }
 0x16e   : > { %v11016_v15 = vpop.f32.mrf.mxu1  ;;  %v11019_v46 = vadd.f32 %v1636_v30, %v10813_v29  ;;  %v11021_v7 = vadd.f32 %v8890_v32, %v1740_v14 }
 0x16f   : > { %13251 = vst [vmem:[#allocation31_spill] sm:$0xff] %v11016_v15  ;;  %v8843_v35 = vpop.f32.mrf.mxu0  ;;  %9142 = vmatmul.mubr.msk.f32.gmra.mxu0 %vm829_vm1, %v10331_v0 }
 0x170   : > { %13252 = vst [vmem:[#allocation32_spill] sm:$0xff] %v11019_v46  ;;  %v8893_v42 = vpop.f32.mrf.mxu1  ;;  %v1742_v62 = vadd.f32 %v8843_v35, %v10819_v47  ;;  %9144 = vmatprep.mubr.msk.f32.mxu0 %vm829_vm1, %v10342_v1 }
 0x171   : > { %v11028_v34 = vpop.f32.mrf.mxu0 }
 0x172   : > { %13253 = vst [vmem:[#allocation33_spill] sm:$0xff] %v11028_v34  ;;  %v11030_v63 = vpop.f32.mrf.mxu1  ;;  %v11032_v6 = vadd.f32 %v8893_v42, %v1742_v62  ;;  %v13263_v62 = vld [vmem:[#allocation12_spill] sm:$0xff] }
 0x173   : > { %13254 = vst [vmem:[#allocation34_spill] sm:$0xff] %v11030_v63  ;;  %v8846_v29 = vpop.f32.mrf.mxu0  ;;  %9145 = vmatmul.mubr.msk.f32.gmra.mxu0 %vm829_vm1, %v10345_v2 }
 0x174   : > { %v8896_v10 = vpop.f32.mrf.mxu1  ;;  %v1744_v16 = vadd.f32 %v8846_v29, %v10833_v51  ;;  %9147 = vmatprep.mubr.msk.f32.mxu0 %vm829_vm1, %v10356_v3 }
 0x175   : > { %v11039_v0 = vpop.f32.mrf.mxu0 }
 0x176   : > { %13255 = vst [vmem:[#allocation35_spill] sm:$0xff] %v11039_v0  ;;  %v11041_v47 = vpop.f32.mrf.mxu1  ;;  %v11043_v1 = vadd.f32 %v8896_v10, %v1744_v16 }
 0x177   : > { %13256 = vst [vmem:[#allocation36_spill] sm:$0xff] %v11041_v47  ;;  %v8849_v33 = vpop.f32.mrf.mxu0  ;;  %9148 = vmatmul.mubr.msk.f32.gmra.mxu0 %vm829_vm1, %v10359_v4 }
 0x178   : > { %v8899_v44 = vpop.f32.mrf.mxu1  ;;  %v1746_v12 = vadd.f32 %v8849_v33, %v10847_v55  ;;  %9150 = vmatprep.mubr.msk.f32.mxu0 %vm829_vm1, %v10370_v5 }
 0x179   : > { %v11050_v2 = vpop.f32.mrf.mxu0 }
 0x17a   : > { %13257 = vst [vmem:[#allocation37_spill] sm:$0xff] %v11050_v2  ;;  %v11052_v51 = vpop.f32.mrf.mxu1  ;;  %v11054_v3 = vadd.f32 %v8899_v44, %v1746_v12  ;;  %v13266_v44 = vld [vmem:[#allocation13_spill] sm:$0xff] }
 0x17b   : > { %13258 = vst [vmem:[#allocation38_spill] sm:$0xff] %v11052_v51  ;;  %v8852_v24 = vpop.f32.mrf.mxu0  ;;  %9151 = vmatmul.mubr.msk.f32.gmra.mxu0 %vm829_vm1, %v10910_v56 }
 0x17c   : > { %v8902_v17 = vpop.f32.mrf.mxu1  ;;  %v1748_v32 = vadd.f32 %v8852_v24, %v10861_v59  ;;  %9153 = vmatprep.mubr.msk.f32.mxu0 %vm829_vm1, %v10516_v18  ;;  %v7742_v18 = vld [vmem:[%s13213_s3 + $0x8] sm:$0xff] }
 0x17d   : > { %v11061_v4 = vpop.f32.mrf.mxu0  ;;  %9165 = vmatprep.subr.mxu1 %v7742_v18 }
 0x17e   : > { %13259 = vst [vmem:[#allocation39_spill] sm:$0xff] %v11061_v4  ;;  %v11063_v55 = vpop.f32.mrf.mxu1  ;;  %v11065_v5 = vadd.f32 %v8902_v17, %v1748_v32  ;;  %9166 = vmatpush3.msra.mxu1 %v7742_v18 }
 0x17f   : > { %13260 = vst [vmem:[#allocation40_spill] sm:$0xff] %v11063_v55  ;;  %v8855_v14 = vpop.f32.mrf.mxu0  ;;  %9154 = vmatmul.mubr.msk.f32.gmra.mxu0 %vm829_vm1, %v10521_v19 }
 0x180   : > { %v8905_v30 = vpop.f32.mrf.mxu1  ;;  %v1750_v35 = vadd.f32 %v8855_v14, %v10875_v28  ;;  %9156 = vmatprep.mubr.msk.f32.mxu0 %vm829_vm1, %v10530_v20 }
 0x181   : > { %v11075_v59 = vpop.f32.mrf.mxu0 }
 0x182   : > { %13261 = vst [vmem:[#allocation41_spill] sm:$0xff] %v11075_v59  ;;  %v11077_v56 = vpop.f32.mrf.mxu1  ;;  %v11079_v42 = vadd.f32 %v8905_v30, %v1750_v35 }
 0x183   : > { %13262 = vst [vmem:[#allocation42_spill] sm:$0xff] %v11077_v56  ;;  %v8858_v19 = vpop.f32.mrf.mxu0  ;;  %9157 = vmatmul.mubr.msk.f32.gmra.mxu0 %vm829_vm1, %v10535_v21  ;;  %v13267_v21 = vld [vmem:[#allocation14_spill] sm:$0xff] }
 0x184   : > { %v8908_v28 = vpop.f32.mrf.mxu1  ;;  %v1752_v20 = vadd.f32 %v8858_v19, %v10889_v50  ;;  %9159 = vmatprep.mubr.msk.f32.mxu0 %vm829_vm1, %v13263_v62  ;;  %v7706_v50 = vld [vmem:[%s10096_s21 + $0x92] sm:$0xff] }
 0x185   : > { %v11086_v29 = vpop.f32.mrf.mxu0 }
 0x186   : > { %13264 = vst [vmem:[#allocation12_spill] sm:$0xff] %v11086_v29  ;;  %v11088_v10 = vpop.f32.mrf.mxu1  ;;  %v11090_v16 = vadd.f32 %v8908_v28, %v1752_v20 }
 0x187   : > { %13265 = vst [vmem:[#allocation43_spill] sm:$0xff] %v11088_v10  ;;  %v8861_v33 = vpop.f32.mrf.mxu0  ;;  %9160 = vmatmul.mubr.msk.f32.gmra.mxu0 %vm829_vm1, %v13266_v44 }
 0x188   : > { %v8911_v12 = vpop.f32.mrf.mxu1  ;;  %v1754_v24 = vadd.f32 %v8861_v33, %v10903_v54  ;;  %9162 = vmatprep.mubr.msk.f32.mxu0 %vm829_vm1, %v13267_v21 }
 0x189   : > { %v11098_v17 = vpop.f32.mrf.mxu0 }
 0x18a   : > { %13268 = vst [vmem:[#allocation13_spill] sm:$0xff] %v11098_v17  ;;  %v11100_v32 = vpop.f32.mrf.mxu1  ;;  %v11102_v14 = vadd.f32 %v8911_v12, %v1754_v24 }
 0x18b   : > { %13269 = vst [vmem:[#allocation14_spill] sm:$0xff] %v11100_v32  ;;  %v8864_v30 = vpop.f32.mrf.mxu0  ;;  %9163 = vmatmul.mubr.msk.f32.gmra.mxu0 %vm829_vm1, %v7706_v50 }
 0x18c   : > { %v8914_v35 = vpop.f32.mrf.mxu1  ;;  %v1756_v18 = vadd.f32 %v8864_v30, %v10919_v58 }
 0x18d   : > { %v11106_v19 = vpop.f32.mrf.mxu0 }
 0x18e   : > { %13270 = vst [vmem:[#allocation44_spill] sm:$0xff] %v11106_v19  ;;  %v11108_v28 = vpop.f32.mrf.mxu1  ;;  %v11110_v54 = vadd.f32 %v8914_v35, %v1756_v18  ;;  %v9799_v35 = vmov 0.0  }
 0x18f   : > { %13271 = vst [vmem:[#allocation45_spill] sm:$0xff] %v11108_v28  ;;  %v8919_v20 = vpop.f32.mrf.mxu0  ;;  %675 = vst.msk [vmem:[#allocation2 + $0x1e8] sm:$0xff] %vm667_vm2, %v9799_v35 }
 0x190   : > { %v11112_v62 = vpop.f32.mrf.mxu1  ;;  %v11115_v33 = vadd.f32 %v8919_v20, %v10937_v39  ;;  %676 = vst.msk [vmem:[#allocation2 + $0x1f0] sm:$0xff] %vm667_vm2, %v9799_v35  ;;  %677 = vst.msk [vmem:[#allocation2 + $0x2d0] sm:$0xff] %vm667_vm2, %v9799_v35 }
 0x191   : > { %v11117_v44 = vpop.f32.mrf.mxu0  ;;  %678 = vst.msk [vmem:[#allocation2 + $0x2d8] sm:$0xff] %vm667_vm2, %v9799_v35  ;;  %682 = vst.msk [vmem:[#allocation2 + $0xe0] sm:$0xff] %vm667_vm2, %v9799_v35 }
 0x192   : > { %v11119_v12 = vpop.f32.mrf.mxu1  ;;  %683 = vst.msk [vmem:[#allocation2 + $0xe8] sm:$0xff] %vm667_vm2, %v9799_v35  ;;  %684 = vst.msk [vmem:[#allocation2 + $0x1c8] sm:$0xff] %vm667_vm2, %v9799_v35 }
 0x193   : > { %v8922_v24 = vpop.f32.mrf.mxu0  ;;  %685 = vst.msk [vmem:[#allocation2 + $0x1d0] sm:$0xff] %vm667_vm2, %v9799_v35 }
 0x194   : > { %v11121_v21 = vpop.f32.mrf.mxu1  ;;  %v11124_v58 = vadd.f32 %v8922_v24, %v10949_v27  ;;  %705 = vst.msk [vmem:[#allocation2 + $0x10f] sm:$0x1] %vm693_vm3, %v9799_v35  ;;  %706 = vst.msk [vmem:[#allocation2 + $0x127] sm:$0x1] %vm693_vm3, %v9799_v35 }
 0x195   : > { %v11126_v50 = vpop.f32.mrf.mxu0  ;;  %707 = vst.msk [vmem:[#allocation2 + $0x13f] sm:$0x1] %vm693_vm3, %v9799_v35  ;;  %708 = vst.msk [vmem:[#allocation2 + $0x157] sm:$0x1] %vm693_vm3, %v9799_v35 }
 0x196   : > { %v11128_v30 = vpop.f32.mrf.mxu1  ;;  %709 = vst.msk [vmem:[#allocation2 + $0x16f] sm:$0x1] %vm693_vm3, %v9799_v35  ;;  %710 = vst.msk [vmem:[#allocation2 + $0x187] sm:$0x1] %vm693_vm3, %v9799_v35 }
 0x197   : > { %711 = vst.msk [vmem:[#allocation2 + $0x19f] sm:$0x1] %vm693_vm3, %v9799_v35  ;;  %712 = vst.msk [vmem:[#allocation2 + $0x1b7] sm:$0x1] %vm693_vm3, %v9799_v35  ;;  %v8925_v39 = vpop.f32.mrf.mxu0 }
 0x198   : > { %725 = vst.msk [vmem:[#allocation2 + $0x2ef] sm:$0x1] %vm693_vm3, %v9799_v35  ;;  %726 = vst.msk [vmem:[#allocation2 + $0x307] sm:$0x1] %vm693_vm3, %v9799_v35  ;;  %v11170_v27 = vpop.f32.mrf.mxu1  ;;  %v11177_v18 = vadd.f32 %v8925_v39, %v10961_v38 }
 0x199   : > { %727 = vst.msk [vmem:[#allocation2 + $0x31f] sm:$0x1] %vm693_vm3, %v9799_v35  ;;  %728 = vst.msk [vmem:[#allocation2 + $0x337] sm:$0x1] %vm693_vm3, %v9799_v35  ;;  %v11179_v20 = vpop.f32.mrf.mxu0 }
 0x19a   : > { %729 = vst.msk [vmem:[#allocation2 + $0x34f] sm:$0x1] %vm693_vm3, %v9799_v35  ;;  %730 = vst.msk [vmem:[#allocation2 + $0x367] sm:$0x1] %vm693_vm3, %v9799_v35  ;;  %v11181_v24 = vpop.f32.mrf.mxu1 }
 0x19b   : > { %731 = vst.msk [vmem:[#allocation2 + $0x37f] sm:$0x1] %vm693_vm3, %v9799_v35  ;;  %732 = vst.msk [vmem:[#allocation2 + $0x397] sm:$0x1] %vm693_vm3, %v9799_v35  ;;  %v8928_v28 = vpop.f32.mrf.mxu0 }
 0x19c   : > { %735 = vst.msk [vmem:[#allocation2 + $0x28] sm:$0x1] %vm693_vm3, %v9799_v35  ;;  %736 = vst.msk [vmem:[#allocation2 + $0x40] sm:$0x1] %vm693_vm3, %v9799_v35  ;;  %v11183_v19 = vpop.f32.mrf.mxu1  ;;  %v11186_v32 = vadd.f32 %v8928_v28, %v10973_v25 }
 0x19d   : > { %737 = vst.msk [vmem:[#allocation2 + $0x58] sm:$0x1] %vm693_vm3, %v9799_v35  ;;  %738 = vst.msk [vmem:[#allocation2 + $0x70] sm:$0x1] %vm693_vm3, %v9799_v35  ;;  %v11188_v17 = vpop.f32.mrf.mxu0 }
 0x19e   : > { %739 = vst.msk [vmem:[#allocation2 + $0x88] sm:$0x1] %vm693_vm3, %v9799_v35  ;;  %740 = vst.msk [vmem:[#allocation2 + $0xa0] sm:$0x1] %vm693_vm3, %v9799_v35  ;;  %v11190_v10 = vpop.f32.mrf.mxu1 }
 0x19f   : > { %741 = vst.msk [vmem:[#allocation2 + $0xb8] sm:$0x1] %vm693_vm3, %v9799_v35  ;;  %742 = vst.msk [vmem:[#allocation2 + $0xd0] sm:$0x1] %vm693_vm3, %v9799_v35  ;;  %v8931_v29 = vpop.f32.mrf.mxu0 }
 0x1a0   : > { %755 = vst.msk [vmem:[#allocation2 + $0x208] sm:$0x1] %vm693_vm3, %v9799_v35  ;;  %756 = vst.msk [vmem:[#allocation2 + $0x220] sm:$0x1] %vm693_vm3, %v9799_v35  ;;  %v11192_v56 = vpop.f32.mrf.mxu1  ;;  %v11195_v38 = vadd.f32 %v8931_v29, %v10985_v23 }
 0x1a1   : > { %757 = vst.msk [vmem:[#allocation2 + $0x238] sm:$0x1] %vm693_vm3, %v9799_v35  ;;  %758 = vst.msk [vmem:[#allocation2 + $0x250] sm:$0x1] %vm693_vm3, %v9799_v35 }
 0x1a2   : > { %759 = vst.msk [vmem:[#allocation2 + $0x268] sm:$0x1] %vm693_vm3, %v9799_v35  ;;  %760 = vst.msk [vmem:[#allocation2 + $0x280] sm:$0x1] %vm693_vm3, %v9799_v35  ;;  %v11199_v39 = vpop.f32.mrf.mxu1 }
 0x1a3   : > { %761 = vst.msk [vmem:[#allocation2 + $0x298] sm:$0x1] %vm693_vm3, %v9799_v35  ;;  %762 = vst.msk [vmem:[#allocation2 + $0x2b0] sm:$0x1] %vm693_vm3, %v9799_v35 }
 0x1a4   : > { %724 = vst.msk [vmem:[#allocation2 + $0x2d7] sm:$0x1] %vm693_vm3, %v9799_v35  ;;  %713 = vst.msk [vmem:[#allocation2 + $0x1cf] sm:$0x1] %vm693_vm3, %v9799_v35  ;;  %v11201_v55 = vpop.f32.mrf.mxu1 }
 0x1a5   : > { %743 = vst.msk [vmem:[#allocation2 + $0xe8] sm:$0x1] %vm693_vm3, %v9799_v35  ;;  %754 = vst.msk [vmem:[#allocation2 + $0x1f0] sm:$0x1] %vm693_vm3, %v9799_v35  ;;  %v11197_v35 = vpop.f32.mrf.mxu0 }
 0x1a6   : > { %v11208_v48 = vpop.f32.mrf.mxu1 }
 0x1a7   : > { %v8934_v59 = vpop.f32.mrf.mxu0  ;;  %13272 = vst [vmem:[#allocation46_spill] sm:$0xff] %v11208_v48 }
 0x1a8   : > { %v11204_v25 = vadd.f32 %v8934_v59, %v10997_v8  ;;  %v11210_v51 = vpop.f32.mrf.mxu1 }
 0x1a9   : > { %v11206_v28 = vpop.f32.mrf.mxu0  ;;  %13273 = vst [vmem:[#allocation47_spill] sm:$0xff] %v11210_v51 }
 0x1aa   : > { %v11217_v61 = vpop.f32.mrf.mxu1 }
 0x1ab   : > { %v8937_v4 = vpop.f32.mrf.mxu0  ;;  %13276 = vst [vmem:[#allocation50_spill] sm:$0xff] %v11217_v61 }
 0x1ac   : > { %v11213_v23 = vadd.f32 %v8937_v4, %v11009_v26  ;;  %v11219_v47 = vpop.f32.mrf.mxu1 }
 0x1ad   : > { %v11215_v29 = vpop.f32.mrf.mxu0  ;;  %13277 = vst [vmem:[#allocation51_spill] sm:$0xff] %v11219_v47 }
 0x1ae   : > { %13274 = vst [vmem:[#allocation48_spill] sm:$0xff] %v11213_v23  ;;  %13275 = vst [vmem:[#allocation49_spill] sm:$0xff] %v11215_v29  ;;  %v11226_v36 = vpop.f32.mrf.mxu1 }
 0x1af   : > { %v8940_v2 = vpop.f32.mrf.mxu0  ;;  %13280 = vst [vmem:[#allocation54_spill] sm:$0xff] %v11226_v36 }
 0x1b0   : > { %v11222_v8 = vadd.f32 %v8940_v2, %v11021_v7  ;;  %v11228_v63 = vpop.f32.mrf.mxu1 }
 0x1b1   : > { %v11224_v59 = vpop.f32.mrf.mxu0  ;;  %13281 = vst [vmem:[#allocation55_spill] sm:$0xff] %v11228_v63 }
 0x1b2   : > { %13278 = vst [vmem:[#allocation52_spill] sm:$0xff] %v11222_v8  ;;  %13279 = vst [vmem:[#allocation53_spill] sm:$0xff] %v11224_v59  ;;  %v11235_v51 = vpop.f32.mrf.mxu1 }
 0x1b3   : > { %v8943_v0 = vpop.f32.mrf.mxu0  ;;  %13284 = vst [vmem:[#allocation58_spill] sm:$0xff] %v11235_v51 }
 0x1b4   : > { %v11231_v26 = vadd.f32 %v8943_v0, %v11032_v6  ;;  %v11237_v23 = vpop.f32.mrf.mxu1 }
 0x1b5   : > { %v11233_v4 = vpop.f32.mrf.mxu0  ;;  %13285 = vst [vmem:[#allocation59_spill] sm:$0xff] %v11237_v23 }
 0x1b6   : > { %13282 = vst [vmem:[#allocation56_spill] sm:$0xff] %v11231_v26  ;;  %13283 = vst [vmem:[#allocation57_spill] sm:$0xff] %v11233_v4  ;;  %v11244_v47 = vpop.f32.mrf.mxu1 }
 0x1b7   : > { %v8946_v61 = vpop.f32.mrf.mxu0  ;;  %13288 = vst [vmem:[#allocation62_spill] sm:$0xff] %v11244_v47  ;;  %v11264_v47 = vld [vmem:[#allocation2 + $0x1e8] sm:$0xff] }
 0x1b8   : > { %v11240_v7 = vadd.f32 %v8946_v61, %v11043_v1  ;;  %v11246_v8 = vpop.f32.mrf.mxu1  ;;  %13297 = vst [vmem:[#allocation71_spill] sm:$0xff] %v11264_v47  ;;  %9167 = vmatprep.mubr.msk.f32.mxu1 %vm667_vm2, %v11264_v47 }
 0x1b9   : > { %v11242_v2 = vpop.f32.mrf.mxu0  ;;  %13289 = vst [vmem:[#allocation63_spill] sm:$0xff] %v11246_v8 }
 0x1ba   : > { %13286 = vst [vmem:[#allocation60_spill] sm:$0xff] %v11240_v7  ;;  %13287 = vst [vmem:[#allocation61_spill] sm:$0xff] %v11242_v2  ;;  %v11253_v63 = vpop.f32.mrf.mxu1 }
 0x1bb   : > { %v8949_v36 = vpop.f32.mrf.mxu0  ;;  %13292 = vst [vmem:[#allocation66_spill] sm:$0xff] %v11253_v63 }
 0x1bc   : > { %v11249_v6 = vadd.f32 %v8949_v36, %v11054_v3  ;;  %v11255_v26 = vpop.f32.mrf.mxu1 }
 0x1bd   : > { %v11251_v0 = vpop.f32.mrf.mxu0  ;;  %13293 = vst [vmem:[#allocation67_spill] sm:$0xff] %v11255_v26 }
 0x1be   : > { %13290 = vst [vmem:[#allocation64_spill] sm:$0xff] %v11249_v6  ;;  %13291 = vst [vmem:[#allocation65_spill] sm:$0xff] %v11251_v0  ;;  %v11262_v23 = vpop.f32.mrf.mxu1 }
 0x1bf   : > { %v8952_v51 = vpop.f32.mrf.mxu0  ;;  %13296 = vst [vmem:[#allocation70_spill] sm:$0xff] %v11262_v23 }
 0x1c0   : > { %v11258_v61 = vadd.f32 %v8952_v51, %v11065_v5  ;;  %v11266_v7 = vpop.f32.mrf.mxu1 }
 0x1c1   : > { %v11260_v1 = vpop.f32.mrf.mxu0  ;;  %13298 = vst [vmem:[#allocation72_spill] sm:$0xff] %v11266_v7  ;;  %v3728_v7 = vld [vmem:[%s13213_s3] sm:$0xff] }
 0x1c2   : > { %13294 = vst [vmem:[#allocation68_spill] sm:$0xff] %v11258_v61  ;;  %13295 = vst [vmem:[#allocation69_spill] sm:$0xff] %v11260_v1  ;;  %v11275_v26 = vpop.f32.mrf.mxu1  ;;  %9215 = vmatprep.subr.mxu0 %v3728_v7 }
 0x1c3   : > { %v8955_v8 = vpop.f32.mrf.mxu0  ;;  %13301 = vst [vmem:[#allocation75_spill] sm:$0xff] %v11275_v26  ;;  %9216 = vmatpush3.msra.mxu0 %v3728_v7 }
 0x1c4   : > { %v11271_v36 = vadd.f32 %v8955_v8, %v11079_v42  ;;  %v11277_v5 = vpop.f32.mrf.mxu1  ;;  %v11292_v42 = vld [vmem:[%s13213_s3 + $0x10] sm:$0xff] }
 0x1c5   : > { %v11273_v3 = vpop.f32.mrf.mxu0  ;;  %13302 = vst [vmem:[#allocation76_spill] sm:$0xff] %v11277_v5  ;;  %13306 = vst [vmem:[#allocation80_spill] sm:$0xff] %v11292_v42  ;;  %9265 = vmatprep.subr.mxu1 %v11292_v42 }
 0x1c6   : > { %13299 = vst [vmem:[#allocation73_spill] sm:$0xff] %v11271_v36  ;;  %13300 = vst [vmem:[#allocation74_spill] sm:$0xff] %v11273_v3  ;;  %v11287_v47 = vpop.f32.mrf.mxu1 }
 0x1c7   : > { %v8958_v51 = vpop.f32.mrf.mxu0  ;;  %13305 = vst [vmem:[#allocation79_spill] sm:$0xff] %v11287_v47 }
 0x1c8   : > { %v11280_v23 = vadd.f32 %v8958_v51, %v11090_v16  ;;  %v11294_v5 = vpop.f32.mrf.mxu1 }
 0x1c9   : > { %v11285_v61 = vpop.f32.mrf.mxu0  ;;  %13307 = vst [vmem:[#allocation81_spill] sm:$0xff] %v11294_v5  ;;  %v3694_v5 = vld [vmem:[#allocation2 + $0x2d7] sm:$0xff] }
 0x1ca   : > { %13303 = vst [vmem:[#allocation77_spill] sm:$0xff] %v11280_v23  ;;  %13304 = vst [vmem:[#allocation78_spill] sm:$0xff] %v11285_v61  ;;  %v11302_v23 = vpop.f32.mrf.mxu1  ;;  %9217 = vmatprep.mubr.msk.f32.mxu0 %vm667_vm2, %v3694_v5 }
 0x1cb   : > { %v8961_v8 = vpop.f32.mrf.mxu0  ;;  %13310 = vst [vmem:[#allocation84_spill] sm:$0xff] %v11302_v23 }
 0x1cc   : > { %v11298_v16 = vadd.f32 %v8961_v8, %v11102_v14  ;;  %v11304_v61 = vpop.f32.mrf.mxu1 }
 0x1cd   : > { %v11300_v51 = vpop.f32.mrf.mxu0  ;;  %13311 = vst [vmem:[#allocation85_spill] sm:$0xff] %v11304_v61 }
 0x1ce   : > { %13308 = vst [vmem:[#allocation82_spill] sm:$0xff] %v11298_v16  ;;  %13309 = vst [vmem:[#allocation83_spill] sm:$0xff] %v11300_v51  ;;  %v11311_v36 = vpop.f32.mrf.mxu1 }
 0x1cf   : > { %v8964_v47 = vpop.f32.mrf.mxu0  ;;  %13314 = vst [vmem:[#allocation88_spill] sm:$0xff] %v11311_v36 }
 0x1d0   : > { %v11307_v7 = vadd.f32 %v8964_v47, %v11110_v54  ;;  %v11313_v42 = vpop.f32.mrf.mxu1 }
 0x1d1   : > { %v11309_v26 = vpop.f32.mrf.mxu0 }
 0x1d2   : > { %13312 = vst [vmem:[#allocation86_spill] sm:$0xff] %v11307_v7  ;;  %13313 = vst [vmem:[#allocation87_spill] sm:$0xff] %v11309_v26  ;;  %v11316_v8 = vpop.f32.mrf.mxu1 }
 0x1d3   : > { %v9019_v3 = vpop.f32.mrf.mxu0 }
 0x1d4   : > { %v11320_v61 = vpop.f32.mrf.mxu1 }
 0x1d5   : > { %v2810_v14 = vpop.f32.mrf.mxu0 }
 0x1d6   : > { %v11324_v54 = vpop.f32.mrf.mxu1 }
 0x1d7   : > { %v9022_v23 = vpop.f32.mrf.mxu0 }
 0x1d8   : > { %v11330_v26 = vpop.f32.mrf.mxu1 }
 0x1d9   : > { %v11318_v16 = vpop.f32.mrf.mxu0 }
 0x1da   : > { %v11336_v1 = vpop.f32.mrf.mxu1 }
 0x1db   : > { %v11322_v47 = vpop.f32.mrf.mxu0 }
 0x1dc   : > { %v11342_v0 = vpop.f32.mrf.mxu1 }
 0x1dd   : > { %v11326_v7 = vpop.f32.mrf.mxu0 }
 0x1de   : > { %v11348_v59 = vpop.f32.mrf.mxu1 }
 0x1df   : > { %v11328_v36 = vpop.f32.mrf.mxu0  ;;  %13319 = vst [vmem:[#allocation93_spill] sm:$0xff] %v11348_v59 }
 0x1e0   : > { %v11354_v46 = vpop.f32.mrf.mxu1 }
 0x1e1   : > { %v11332_v51 = vpop.f32.mrf.mxu0  ;;  %13322 = vst [vmem:[#allocation96_spill] sm:$0xff] %v11354_v46 }
 0x1e2   : > { %v11360_v49 = vpop.f32.mrf.mxu1 }
 0x1e3   : > { %v11334_v5 = vpop.f32.mrf.mxu0 }
 0x1e5   : > { %v11338_v63 = vpop.f32.mrf.mxu0 }
 0x1e6   : > { %13315 = vst [vmem:[#allocation89_spill] sm:$0xff] %v11338_v63 }
 0x1e7   : > { %v11340_v6 = vpop.f32.mrf.mxu0 }
 0x1e8   : > { %13316 = vst [vmem:[#allocation90_spill] sm:$0xff] %v11340_v6 }
 0x1e9   : > { %v11344_v2 = vpop.f32.mrf.mxu0 }
 0x1ea   : > { %13317 = vst [vmem:[#allocation91_spill] sm:$0xff] %v11344_v2  ;;  %v11366_v2 = vpop.f32.mrf.mxu1 }
 0x1eb   : > { %v11346_v4 = vpop.f32.mrf.mxu0  ;;  %13327 = vst [vmem:[#allocation101_spill] sm:$0xff] %v11366_v2 }
 0x1ec   : > { %13318 = vst [vmem:[#allocation92_spill] sm:$0xff] %v11346_v4 }
 0x1ed   : > { %v11350_v34 = vpop.f32.mrf.mxu0 }
 0x1ee   : > { %13320 = vst [vmem:[#allocation94_spill] sm:$0xff] %v11350_v34  ;;  %v11372_v34 = vpop.f32.mrf.mxu1 }
 0x1ef   : > { %v11352_v15 = vpop.f32.mrf.mxu0  ;;  %13330 = vst [vmem:[#allocation104_spill] sm:$0xff] %v11372_v34 }
 0x1f0   : > { %13321 = vst [vmem:[#allocation95_spill] sm:$0xff] %v11352_v15 }
 0x1f1   : > { %v11356_v29 = vpop.f32.mrf.mxu0 }
 0x1f2   : > { %13323 = vst [vmem:[#allocation97_spill] sm:$0xff] %v11356_v29  ;;  %v11378_v29 = vpop.f32.mrf.mxu1 }
 0x1f3   : > { %v11358_v48 = vpop.f32.mrf.mxu0  ;;  %13333 = vst [vmem:[#allocation107_spill] sm:$0xff] %v11378_v29 }
 0x1f4   : > { %13324 = vst [vmem:[#allocation98_spill] sm:$0xff] %v11358_v48 }
 0x1f5   : > { %v11362_v6 = vpop.f32.mrf.mxu0 }
 0x1f6   : > { %13325 = vst [vmem:[#allocation99_spill] sm:$0xff] %v11362_v6 }
 0x1f7   : > { %v11364_v63 = vpop.f32.mrf.mxu0 }
 0x1f8   : > { %13326 = vst [vmem:[#allocation100_spill] sm:$0xff] %v11364_v63  ;;  %v11385_v63 = vld [vmem:[%s13213_s3 + $0x18] sm:$0xff] }
 0x1f9   : > { %v11368_v4 = vpop.f32.mrf.mxu0  ;;  %13335 = vst [vmem:[#allocation109_spill] sm:$0xff] %v11385_v63  ;;  %9315 = vmatprep.subr.mxu0 %v11385_v63  ;;  %v2055_v63 = vadd.f32 %v10944_v41, %v10947_v37  ;;  %v2644_v41 = vadd.f32 %v11121_v21, %v11124_v58  ;;  %v11435_v21 = vld [vmem:[%s13212_s2] ss:$0 sm:$0xff] }
 0x1fa   : > { %13328 = vst [vmem:[#allocation102_spill] sm:$0xff] %v11368_v4 }
 0x1fb   : > { %v11370_v59 = vpop.f32.mrf.mxu0 }
 0x1fc   : > { %13329 = vst [vmem:[#allocation103_spill] sm:$0xff] %v11370_v59  ;;  %v11390_v59 = vpop.f32.mrf.mxu1 }
 0x1fd   : > { %v11374_v15 = vpop.f32.mrf.mxu0 }
 0x1fe   : > { %13331 = vst [vmem:[#allocation105_spill] sm:$0xff] %v11374_v15  ;;  %v11398_v29 = vpop.f32.mrf.mxu1 }
 0x1ff   : > { %v11376_v46 = vpop.f32.mrf.mxu0  ;;  %13339 = vst [vmem:[#allocation113_spill] sm:$0xff] %v11398_v29 }
 0x200   : > { %13332 = vst [vmem:[#allocation106_spill] sm:$0xff] %v11376_v46  ;;  %v2053_v46 = vadd.f32 %v10932_v52, %v10935_v22  ;;  %v2349_v22 = vadd.f32 %v11126_v50, %v2055_v63 }
 0x201   : > { %v11380_v48 = vpop.f32.mrf.mxu0 }
 0x202   : > { %13334 = vst [vmem:[#allocation108_spill] sm:$0xff] %v11380_v48  ;;  %v2347_v34 = vadd.f32 %v11117_v44, %v2053_v46  ;;  %v2057_v46 = vadd.f32 %v10956_v43, %v10959_v60  ;;  %v2059_v43 = vadd.f32 %v10968_v45, %v10971_v40  ;;  %v2646_v60 = vadd.f32 %v11170_v27, %v11177_v18 }
 0x203   : > { %v11388_v4 = vpop.f32.mrf.mxu0 }
 0x204   : > { %13336 = vst [vmem:[#allocation110_spill] sm:$0xff] %v11388_v4  ;;  %v2642_v4 = vadd.f32 %v11112_v62, %v11115_v33  ;;  %v2641_v52 = vadd.f32 %v11119_v12, %v2347_v34  ;;  %v2351_v62 = vadd.f32 %v11179_v20, %v2057_v46  ;;  %v2643_v34 = vadd.f32 %v11128_v30, %v2349_v22 }
 0x205   : > { %v11392_v6 = vpop.f32.mrf.mxu0  ;;  %v2972_v12 = vadd.f32 %v9022_v23, %v2644_v41  ;;  %v2353_v23 = vadd.f32 %v11188_v17, %v2059_v43  ;;  %v2974_v45 = vadd.f32 %v11322_v47, %v2646_v60  ;;  %v2065_v60 = vadd.f32 %v11004_v13, %v11007_v31  ;;  %v13346_v13 = vld [vmem:[#allocation49_spill] sm:$0xff] }
 0x206   : > { %13337 = vst [vmem:[#allocation111_spill] sm:$0xff] %v11392_v6  ;;  %v11409_v6 = vpop.f32.mrf.mxu1  ;;  %v2970_v29 = vadd.f32 %v9019_v3, %v2642_v4  ;;  %v2969_v37 = vadd.f32 %v2810_v14, %v2641_v52  ;;  %v2971_v20 = vadd.f32 %v11318_v16, %v2643_v34  ;;  %v2648_v16 = vadd.f32 %v11183_v19, %v11186_v32 }
 0x207   : > { %v11394_v15 = vpop.f32.mrf.mxu0  ;;  %v3266_v18 = vadd.f32 %v11320_v61, %v2972_v12  ;;  %v2647_v61 = vadd.f32 %v11190_v10, %v2353_v23  ;;  %v3268_v46 = vadd.f32 %v11330_v26, %v2974_v45  ;;  %v2650_v10 = vadd.f32 %v11192_v56, %v11195_v38  ;;  %v13343_v23 = vld [vmem:[#allocation15_spill] sm:$0xff]  ;;  %v13344_v45 = vld [vmem:[#allocation16_spill] sm:$0xff] }
 0x208   : > { %13338 = vst [vmem:[#allocation112_spill] sm:$0xff] %v11394_v15  ;;  %v11422_v33 = vpop.f32.mrf.mxu1  ;;  %v3264_v63 = vadd.f32 %v11313_v42, %v2970_v29  ;;  %v3263_v58 = vadd.f32 %v11316_v8, %v2969_v37  ;;  %v2645_v29 = vadd.f32 %v11181_v24, %v2351_v62  ;;  %v2061_v42 = vadd.f32 %v10980_v9, %v10983_v57 }
 0x209   : > { %v11400_v48 = vpop.f32.mrf.mxu0  ;;  %v3265_v17 = vadd.f32 %v11324_v54, %v2971_v20  ;;  %v2976_v57 = vadd.f32 %v11328_v36, %v2648_v16  ;;  %v2063_v54 = vadd.f32 %v10992_v11, %v10995_v53  ;;  %v2975_v37 = vadd.f32 %v11332_v51, %v2647_v61  ;;  %v13348_v16 = vld [vmem:[#allocation90_spill] sm:$0xff] }
 0x20a   : > { %v11442_v40 = vpop.f32.mrf.mxu1  ;;  %v2973_v24 = vadd.f32 %v11326_v7, %v2645_v29  ;;  %v2355_v22 = vadd.f32 %v11197_v35, %v2061_v42  ;;  %v2978_v11 = vadd.f32 %v11334_v5, %v2650_v10  ;;  %v2359_v31 = vadd.f32 %v13346_v13, %v2065_v60 }
 0x20b   : > { %v11403_v2 = vpop.f32.mrf.mxu0  ;;  %v2357_v12 = vadd.f32 %v11206_v28, %v2063_v54  ;;  %v3270_v38 = vadd.f32 %v11342_v0, %v2976_v57  ;;  %v13341_v28 = vld [vmem:[#allocation89_spill] sm:$0xff]  ;;  %v13353_v57 = vld [vmem:[#allocation47_spill] sm:$0xff] }
 0x20c   : > { %13340 = vst [vmem:[#allocation114_spill] sm:$0xff] %v11403_v2  ;;  %v11456_v41 = vpop.f32.mrf.mxu1  ;;  %v3267_v35 = vadd.f32 %v11336_v1, %v2973_v24  ;;  %v13354_v54 = vld [vmem:[#allocation91_spill] sm:$0xff] }
 0x20d   : > { %v11411_v15 = vpop.f32.mrf.mxu0 }
 0x20e   : > { %v11472_v53 = vpop.f32.mrf.mxu1 }
 0x20f   : > { %v11417_v44 = vpop.f32.mrf.mxu0 }
 0x211   : > { %v11424_v2 = vpop.f32.mrf.mxu0 }
 0x213   : > { %v9119_v50 = vpop.f32.mrf.mxu0 }
 0x214   : > { %v3558_v30 = vadd.f32 %v9119_v50, %v3264_v63  ;;  %v2649_v63 = vadd.f32 %v11199_v39, %v2355_v22  ;;  %v2652_v39 = vadd.f32 %v11201_v55, %v11204_v25  ;;  %v11490_v25 = vpop.f32.mrf.mxu1  ;;  %v13351_v22 = vld [vmem:[#allocation33_spill] sm:$0xff] }
 0x215   : > { %v3398_v27 = vpop.f32.mrf.mxu0 }
 0x216   : > { %v3597_v4 = vadd.f32 %v11435_v21, %v3558_v30  ;;  %v3557_v3 = vadd.f32 %v3398_v27, %v3263_v58  ;;  %v2977_v50 = vadd.f32 %v13341_v28, %v2649_v63  ;;  %v13342_v58 = vld [vmem:[#allocation93_spill] sm:$0xff]  ;;  %v1353_v27 = vadd.f32 %v13344_v45, %v13343_v23  ;;  %v13357_v63 = vld [vmem:[#allocation50_spill] sm:$0xff] }
 0x217   : > { %v9122_v14 = vpop.f32.mrf.mxu0  ;;  %v3269_v20 = vadd.f32 %v13342_v58, %v2975_v37  ;;  %v2980_v24 = vadd.f32 %v13348_v16, %v2652_v39  ;;  %v13365_v45 = vld [vmem:[#allocation94_spill] sm:$0xff]  ;;  %v13368_v16 = vld [vmem:[#allocation20_spill] sm:$0xff] }
 0x218   : > { %v3629_v8 = vmax.f32 %v3597_v4, 0.0  ;;  %v3596_v47 = vadd.f32 %v11435_v21, %v3557_v3  ;;  %v3560_v52 = vadd.f32 %v9122_v14, %v3266_v18  ;;  %v13345_v18 = vld [vmem:[#allocation46_spill] sm:$0xff]  ;;  %v13347_v3 = vld [vmem:[#allocation96_spill] sm:$0xff] }
 0x219   : > { %v3408_v9 = vpop.f32.mrf.mxu0  ;;  %v2651_v4 = vadd.f32 %v13345_v18, %v2357_v12  ;;  %v3272_v55 = vadd.f32 %v13347_v3, %v2978_v11  ;;  %v2653_v12 = vadd.f32 %v13357_v63, %v2359_v31  ;;  %v13358_v11 = vld [vmem:[#allocation53_spill] sm:$0xff] }
 0x21a   : > { %3662 = vst.msk [vmem:[#allocation2 + $0x38] sm:$0xff] %vm667_vm2, %v3629_v8  ;;  %v3628_v32 = vmax.f32 %v3596_v47, 0.0  ;;  %v3599_v19 = vadd.f32 %v11435_v21, %v3560_v52  ;;  %v3559_v7 = vadd.f32 %v3408_v9, %v3265_v17  ;;  %v13349_v47 = vld [vmem:[#allocation32_spill] sm:$0xff]  ;;  %v13350_v52 = vld [vmem:[#allocation31_spill] sm:$0xff] }
 0x21b   : > { %v9125_v26 = vpop.f32.mrf.mxu0  ;;  %v2067_v61 = vadd.f32 %v13350_v52, %v13349_v47  ;;  %v13352_v9 = vld [vmem:[#allocation48_spill] sm:$0xff]  ;;  %v2979_v10 = vadd.f32 %v13354_v54, %v2651_v4  ;;  %v13371_v52 = vld [vmem:[#allocation107_spill] sm:$0xff] }
 0x21c   : > { %3661 = vst.msk [vmem:[#allocation2 + $0x20] sm:$0xff] %vm667_vm2, %v3628_v32  ;;  %v3631_v36 = vmax.f32 %v3599_v19, 0.0  ;;  %v3598_v62 = vadd.f32 %v11435_v21, %v3559_v7  ;;  %v3562_v34 = vadd.f32 %v9125_v26, %v3268_v46  ;;  %v1741_v46 = vadd.f32 %v13351_v22, %v1353_v27  ;;  %v13366_v4 = vld [vmem:[#allocation104_spill] sm:$0xff] }
 0x21d   : > { %v3418_v56 = vpop.f32.mrf.mxu0  ;;  %v2654_v32 = vadd.f32 %v13353_v57, %v13352_v9  ;;  %v3271_v19 = vadd.f32 %v11360_v49, %v2977_v50  ;;  %v2981_v27 = vadd.f32 %v13365_v45, %v2653_v12  ;;  %v3273_v13 = vadd.f32 %v13366_v4, %v2979_v10  ;;  %v13372_v9 = vld [vmem:[#allocation95_spill] sm:$0xff]  ;;  %v13373_v54 = vld [vmem:[#allocation36_spill] sm:$0xff]  ;;  %v13377_v12 = vld [vmem:[#allocation97_spill] sm:$0xff] }
 0x21e   : > { %3664 = vst.msk [vmem:[#allocation2 + $0x68] sm:$0xff] %vm667_vm2, %v3631_v36  ;;  %v3630_v1 = vmax.f32 %v3598_v62, 0.0  ;;  %v3601_v51 = vadd.f32 %v11435_v21, %v3562_v34  ;;  %v3561_v43 = vadd.f32 %v3418_v56, %v3267_v35  ;;  %v13355_v36 = vld [vmem:[#allocation17_spill] sm:$0xff]  ;;  %v13356_v62 = vld [vmem:[#allocation18_spill] sm:$0xff]  ;;  %v2361_v56 = vadd.f32 %v13358_v11, %v2067_v61 }
 0x21f   : > { %v9128_v5 = vpop.f32.mrf.mxu0  ;;  %v1363_v34 = vadd.f32 %v13356_v62, %v13355_v36  ;;  %v13376_v36 = vld [vmem:[#allocation55_spill] sm:$0xff] }
 0x220   : > { %3663 = vst.msk [vmem:[#allocation2 + $0x50] sm:$0xff] %vm667_vm2, %v3630_v1  ;;  %v3633_v0 = vmax.f32 %v3601_v51, 0.0  ;;  %v3600_v30 = vadd.f32 %v11435_v21, %v3561_v43  ;;  %v3564_v29 = vadd.f32 %v9128_v5, %v3270_v38  ;;  %v13359_v38 = vld [vmem:[#allocation92_spill] sm:$0xff]  ;;  %v11509_v51 = vpop.f32.mrf.mxu1  ;;  %v13360_v43 = vld [vmem:[#allocation101_spill] sm:$0xff]  ;;  %v13361_v5 = vld [vmem:[#allocation34_spill] sm:$0xff] }
 0x221   : > { %v3428_v42 = vpop.f32.mrf.mxu0  ;;  %v2982_v1 = vadd.f32 %v13359_v38, %v2654_v32  ;;  %v3274_v60 = vadd.f32 %v13360_v43, %v2980_v24  ;;  %v2069_v58 = vadd.f32 %v13361_v5, %v1741_v46  ;;  %v13379_v43 = vld [vmem:[#allocation22_spill] sm:$0xff] }
 0x222   : > { %3666 = vst.msk [vmem:[#allocation2 + $0x98] sm:$0xff] %vm667_vm2, %v3633_v0  ;;  %v3632_v14 = vmax.f32 %v3600_v30, 0.0  ;;  %v3603_v17 = vadd.f32 %v11435_v21, %v3564_v29  ;;  %v3563_v8 = vadd.f32 %v3428_v42, %v3269_v20  ;;  %v13362_v20 = vld [vmem:[#allocation35_spill] sm:$0xff]  ;;  %v13363_v30 = vld [vmem:[#allocation52_spill] sm:$0xff]  ;;  %v11527_v22 = vpop.f32.mrf.mxu1 }
 0x223   : > { %v9131_v7 = vpop.f32.mrf.mxu0  ;;  %v1743_v0 = vadd.f32 %v13362_v20, %v1363_v34  ;;  %v13364_v29 = vld [vmem:[#allocation51_spill] sm:$0xff]  ;;  %v3276_v61 = vadd.f32 %v13371_v52, %v2982_v1  ;;  %v3275_v34 = vadd.f32 %v11390_v59, %v2981_v27 }
 0x224   : > { %3665 = vst.msk [vmem:[#allocation2 + $0x80] sm:$0xff] %vm667_vm2, %v3632_v14  ;;  %v3635_v35 = vmax.f32 %v3603_v17, 0.0  ;;  %v3602_v26 = vadd.f32 %v11435_v21, %v3563_v8  ;;  %v3566_v37 = vadd.f32 %v9131_v7, %v3272_v55  ;;  %v2656_v23 = vadd.f32 %v13364_v29, %v13363_v30  ;;  %v13367_v42 = vld [vmem:[#allocation19_spill] sm:$0xff]  ;;  %v13369_v14 = vld [vmem:[#allocation54_spill] sm:$0xff]  ;;  %v13370_v8 = vld [vmem:[#allocation57_spill] sm:$0xff] }
 0x225   : > { %v3438_v49 = vpop.f32.mrf.mxu0  ;;  %v1373_v24 = vadd.f32 %v13368_v16, %v13367_v42  ;;  %v2655_v17 = vadd.f32 %v13369_v14, %v2361_v56  ;;  %v2363_v47 = vadd.f32 %v13370_v8, %v2069_v58  ;;  %v2071_v10 = vadd.f32 %v13373_v54, %v1743_v0  ;;  %v13382_v58 = vld [vmem:[#allocation98_spill] sm:$0xff]  ;;  %v11545_v0 = vpop.f32.mrf.mxu1  ;;  %v13383_v30 = vld [vmem:[#allocation113_spill] sm:$0xff]  ;;  %v13388_v16 = vld [vmem:[#allocation99_spill] sm:$0xff] }
 0x226   : > { %3668 = vst.msk [vmem:[#allocation2 + $0xc8] sm:$0xff] %vm667_vm2, %v3635_v35  ;;  %v3634_v39 = vmax.f32 %v3602_v26, 0.0  ;;  %v3605_v28 = vadd.f32 %v11435_v21, %v3566_v37  ;;  %v3565_v50 = vadd.f32 %v3438_v49, %v3271_v19  ;;  %v2984_v57 = vadd.f32 %v13372_v9, %v2656_v23  ;;  %v13374_v35 = vld [vmem:[#allocation37_spill] sm:$0xff]  ;;  %v13375_v37 = vld [vmem:[#allocation56_spill] sm:$0xff] }
 0x227   : > { %v9134_v18 = vpop.f32.mrf.mxu0  ;;  %v1745_v26 = vadd.f32 %v13374_v35, %v1373_v24  ;;  %v2658_v62 = vadd.f32 %v13376_v36, %v13375_v37  ;;  %v2983_v11 = vadd.f32 %v13377_v12, %v2655_v17  ;;  %v13378_v49 = vld [vmem:[#allocation21_spill] sm:$0xff] }
 0x228   : > { %3667 = vst.msk [vmem:[#allocation2 + $0xb0] sm:$0xff] %vm667_vm2, %v3634_v39  ;;  %v3637_v31 = vmax.f32 %v3605_v28, 0.0  ;;  %v3604_v3 = vadd.f32 %v11435_v21, %v3565_v50  ;;  %v3568_v55 = vadd.f32 %v9134_v18, %v3274_v60  ;;  %v1383_v60 = vadd.f32 %v13379_v43, %v13378_v49  ;;  %v13380_v39 = vld [vmem:[#allocation58_spill] sm:$0xff]  ;;  %v13381_v50 = vld [vmem:[#allocation61_spill] sm:$0xff] }
 0x229   : > { %v3448_v46 = vpop.f32.mrf.mxu0  ;;  %v2657_v28 = vadd.f32 %v13380_v39, %v2363_v47  ;;  %v2365_v5 = vadd.f32 %v13381_v50, %v2071_v10  ;;  %v2986_v20 = vadd.f32 %v13382_v58, %v2658_v62  ;;  %v3278_v29 = vadd.f32 %v13383_v30, %v2984_v57  ;;  %v13384_v18 = vld [vmem:[#allocation38_spill] sm:$0xff]  ;;  %v11563_v10 = vpop.f32.mrf.mxu1  ;;  %v13395_v12 = vld [vmem:[#allocation41_spill] sm:$0xff] }
 0x22a   : > { %3670 = vst.msk [vmem:[#allocation2 + $0x128] sm:$0xff] %vm667_vm2, %v3637_v31  ;;  %v3636_v32 = vmax.f32 %v3604_v3, 0.0  ;;  %v3607_v19 = vadd.f32 %v11435_v21, %v3568_v55  ;;  %v3567_v7 = vadd.f32 %v3448_v46, %v3273_v13  ;;  %v2073_v4 = vadd.f32 %v13384_v18, %v1745_v26  ;;  %v13385_v13 = vld [vmem:[#allocation39_spill] sm:$0xff]  ;;  %v13386_v3 = vld [vmem:[#allocation60_spill] sm:$0xff]  ;;  %v13391_v57 = vld [vmem:[#allocation62_spill] sm:$0xff] }
 0x22b   : > { %v9137_v63 = vpop.f32.mrf.mxu0  ;;  %v1747_v31 = vadd.f32 %v13385_v13, %v1383_v60  ;;  %v13387_v55 = vld [vmem:[#allocation59_spill] sm:$0xff]  ;;  %v2985_v24 = vadd.f32 %v13388_v16, %v2657_v28  ;;  %v3277_v17 = vadd.f32 %v11409_v6, %v2983_v11  ;;  %v13390_v46 = vld [vmem:[#allocation24_spill] sm:$0xff]  ;;  %v3280_v54 = vadd.f32 %v11422_v33, %v2986_v20  ;;  %v13398_v43 = vld [vmem:[#allocation102_spill] sm:$0xff]  ;;  %v11581_v18 = vpop.f32.mrf.mxu1 }
 0x22c   : > { %3669 = vst.msk [vmem:[#allocation2 + $0x110] sm:$0xff] %vm667_vm2, %v3636_v32  ;;  %v3639_v56 = vmax.f32 %v3607_v19, 0.0  ;;  %v3606_v38 = vadd.f32 %v11435_v21, %v3567_v7  ;;  %v3570_v1 = vadd.f32 %v9137_v63, %v3276_v61  ;;  %v2660_v42 = vadd.f32 %v13387_v55, %v13386_v3  ;;  %v13389_v61 = vld [vmem:[#allocation23_spill] sm:$0xff]  ;;  %v13392_v19 = vld [vmem:[#allocation65_spill] sm:$0xff]  ;;  %v13393_v26 = vld [vmem:[#allocation100_spill] sm:$0xff] }
 0x22d   : > { %v3458_v59 = vpop.f32.mrf.mxu0  ;;  %v1393_v9 = vadd.f32 %v13390_v46, %v13389_v61  ;;  %v2659_v32 = vadd.f32 %v13391_v57, %v2365_v5  ;;  %v2367_v7 = vadd.f32 %v13392_v19, %v2073_v4  ;;  %v3279_v33 = vadd.f32 %v11442_v40, %v2985_v24  ;;  %v13399_v5 = vld [vmem:[#allocation25_spill] sm:$0xff]  ;;  %v13400_v58 = vld [vmem:[#allocation26_spill] sm:$0xff]  ;;  %v13405_v16 = vld [vmem:[#allocation12_spill] sm:$0xff] }
 0x22e   : > { %3672 = vst.msk [vmem:[#allocation2 + $0x158] sm:$0xff] %vm667_vm2, %v3639_v56  ;;  %v3638_v23 = vmax.f32 %v3606_v38, 0.0  ;;  %v3609_v45 = vadd.f32 %v11435_v21, %v3570_v1  ;;  %v3569_v27 = vadd.f32 %v3458_v59, %v3275_v34  ;;  %v2988_v6 = vadd.f32 %v13393_v26, %v2660_v42  ;;  %v13394_v34 = vld [vmem:[#allocation40_spill] sm:$0xff]  ;;  %v13397_v38 = vld [vmem:[#allocation63_spill] sm:$0xff]  ;;  %v13401_v59 = vld [vmem:[#allocation66_spill] sm:$0xff] }
 0x22f   : > { %v9140_v14 = vpop.f32.mrf.mxu0  ;;  %v2075_v63 = vadd.f32 %v13394_v34, %v1747_v31  ;;  %v1749_v11 = vadd.f32 %v13395_v12, %v1393_v9  ;;  %v13396_v56 = vld [vmem:[#allocation64_spill] sm:$0xff]  ;;  %v2987_v60 = vadd.f32 %v13398_v43, %v2659_v32  ;;  %v1403_v20 = vadd.f32 %v13400_v58, %v13399_v5  ;;  %v13404_v55 = vld [vmem:[#allocation42_spill] sm:$0xff]  ;;  %v13409_v32 = vld [vmem:[#allocation27_spill] sm:$0xff] }
 0x230   : > { %3671 = vst.msk [vmem:[#allocation2 + $0x140] sm:$0xff] %vm667_vm2, %v3638_v23  ;;  %v3641_v8 = vmax.f32 %v3609_v45, 0.0  ;;  %v3608_v47 = vadd.f32 %v11435_v21, %v3569_v27  ;;  %v3572_v52 = vadd.f32 %v9140_v14, %v3278_v29  ;;  %v2662_v1 = vadd.f32 %v13397_v38, %v13396_v56  ;;  %v13402_v29 = vld [vmem:[#allocation69_spill] sm:$0xff]  ;;  %v13403_v45 = vld [vmem:[#allocation103_spill] sm:$0xff]  ;;  %v13406_v14 = vld [vmem:[#allocation68_spill] sm:$0xff] }
 0x231   : > { %v3468_v35 = vpop.f32.mrf.mxu0  ;;  %v2661_v30 = vadd.f32 %v13401_v59, %v2367_v7  ;;  %v2369_v23 = vadd.f32 %v13402_v29, %v2075_v63  ;;  %v3282_v4 = vadd.f32 %v11456_v41, %v2988_v6  ;;  %v2077_v42 = vadd.f32 %v13404_v55, %v1749_v11  ;;  %v13410_v19 = vld [vmem:[#allocation28_spill] sm:$0xff]  ;;  %v13412_v26 = vld [vmem:[#allocation74_spill] sm:$0xff]  ;;  %v13414_v56 = vld [vmem:[#allocation43_spill] sm:$0xff] }
 0x232   : > { %3674 = vst.msk [vmem:[#allocation2 + $0x188] sm:$0xff] %vm667_vm2, %v3641_v8  ;;  %v3640_v37 = vmax.f32 %v3608_v47, 0.0  ;;  %v3611_v36 = vadd.f32 %v11435_v21, %v3572_v52  ;;  %v3571_v62 = vadd.f32 %v3468_v35, %v3277_v17  ;;  %v2990_v27 = vadd.f32 %v13403_v45, %v2662_v1  ;;  %v13407_v17 = vld [vmem:[#allocation67_spill] sm:$0xff]  ;;  %v13408_v47 = vld [vmem:[#allocation105_spill] sm:$0xff]  ;;  %v13413_v34 = vld [vmem:[#allocation106_spill] sm:$0xff] }
 0x233   : > { %v9143_v49 = vpop.f32.mrf.mxu0  ;;  %v1751_v24 = vadd.f32 %v13405_v16, %v1403_v20  ;;  %v2664_v8 = vadd.f32 %v13407_v17, %v13406_v14  ;;  %v2989_v52 = vadd.f32 %v13408_v47, %v2661_v30  ;;  %v3281_v46 = vadd.f32 %v11472_v53, %v2987_v60  ;;  %v13415_v1 = vld [vmem:[#allocation13_spill] sm:$0xff]  ;;  %v13417_v43 = vld [vmem:[#allocation72_spill] sm:$0xff]  ;;  %v13420_v30 = vld [vmem:[#allocation30_spill] sm:$0xff] }
 0x234   : > { %3673 = vst.msk [vmem:[#allocation2 + $0x170] sm:$0xff] %vm667_vm2, %v3640_v37  ;;  %v3643_v39 = vmax.f32 %v3611_v36, 0.0  ;;  %v3610_v28 = vadd.f32 %v11435_v21, %v3571_v62  ;;  %v3574_v50 = vadd.f32 %v9143_v49, %v3280_v54  ;;  %v1413_v7 = vadd.f32 %v13410_v19, %v13409_v32  ;;  %v13411_v54 = vld [vmem:[#allocation70_spill] sm:$0xff]  ;;  %v11599_v36 = vpop.f32.mrf.mxu1  ;;  %v13416_v49 = vld [vmem:[#allocation73_spill] sm:$0xff]  ;;  %v13425_v17 = vld [vmem:[#allocation44_spill] sm:$0xff] }
 0x235   : > { %v3478_v40 = vpop.f32.mrf.mxu0  ;;  %v2663_v35 = vadd.f32 %v13411_v54, %v2369_v23  ;;  %v2371_v6 = vadd.f32 %v13412_v26, %v2077_v42  ;;  %v3284_v37 = vadd.f32 %v11490_v25, %v2990_v27  ;;  %v2992_v53 = vadd.f32 %v13413_v34, %v2664_v8  ;;  %v13419_v59 = vld [vmem:[#allocation29_spill] sm:$0xff]  ;;  %v13421_v23 = vld [vmem:[#allocation75_spill] sm:$0xff]  ;;  %v13422_v27 = vld [vmem:[#allocation78_spill] sm:$0xff] }
 0x236   : > { %3676 = vst.msk [vmem:[#allocation2 + $0x1b8] sm:$0xff] %vm667_vm2, %v3643_v39  ;;  %v3642_v13 = vmax.f32 %v3610_v28, 0.0  ;;  %v3613_v31 = vadd.f32 %v11435_v21, %v3574_v50  ;;  %v3573_v3 = vadd.f32 %v3478_v40, %v3279_v33  ;;  %v2079_v38 = vadd.f32 %v13414_v56, %v1751_v24  ;;  %v13418_v28 = vld [vmem:[#allocation108_spill] sm:$0xff]  ;;  %v13424_v24 = vld [vmem:[#allocation14_spill] sm:$0xff]  ;;  %v13426_v47 = vld [vmem:[#allocation77_spill] sm:$0xff] }
 0x237   : > { %v9146_v61 = vpop.f32.mrf.mxu0  ;;  %v1753_v33 = vadd.f32 %v13415_v1, %v1413_v7  ;;  %v2666_v60 = vadd.f32 %v13417_v43, %v13416_v49  ;;  %v3283_v25 = vadd.f32 %v11509_v51, %v2989_v52  ;;  %v2991_v50 = vadd.f32 %v13418_v28, %v2663_v35  ;;  %v13427_v52 = vld [vmem:[#allocation76_spill] sm:$0xff]  ;;  %v13429_v7 = vld [vmem:[#allocation79_spill] sm:$0xff]  ;;  %v13434_v1 = vld [vmem:[#allocation81_spill] sm:$0xff] }
 0x238   : > { %3675 = vst.msk [vmem:[#allocation2 + $0x1a0] sm:$0xff] %vm667_vm2, %v3642_v13  ;;  %v3645_v41 = vmax.f32 %v3613_v31, 0.0  ;;  %v3612_v9 = vadd.f32 %v11435_v21, %v3573_v3  ;;  %v3576_v57 = vadd.f32 %v9146_v61, %v3282_v4  ;;  %v1423_v29 = vadd.f32 %v13420_v30, %v13419_v59  ;;  %v13423_v4 = vld [vmem:[#allocation110_spill] sm:$0xff]  ;;  %v3234_v31 = vpop.f32.mrf.mxu1  ;;  %v13430_v35 = vld [vmem:[#allocation83_spill] sm:$0xff]  ;;  %v13431_v34 = vld [vmem:[#allocation112_spill] sm:$0xff] }
 0x239   : > { %v3488_v62 = vpop.f32.mrf.mxu0  ;;  %v2665_v45 = vadd.f32 %v13421_v23, %v2371_v6  ;;  %v2373_v40 = vadd.f32 %v13422_v27, %v2079_v38  ;;  %v2994_v13 = vadd.f32 %v13423_v4, %v2666_v60  ;;  %v3286_v3 = vadd.f32 %v11527_v22, %v2992_v53  ;;  %v13433_v38 = vld [vmem:[#allocation82_spill] sm:$0xff] }
 0x23a   : > { %3678 = vst.msk [vmem:[#allocation2 + $0x218] sm:$0xff] %vm667_vm2, %v3645_v41  ;;  %v3644_v63 = vmax.f32 %v3612_v9, 0.0  ;;  %v3615_v12 = vadd.f32 %v11435_v21, %v3576_v57  ;;  %v3575_v11 = vadd.f32 %v3488_v62, %v3281_v46  ;;  %v2081_v14 = vadd.f32 %v13424_v24, %v1753_v33  ;;  %v13428_v46 = vld [vmem:[#allocation111_spill] sm:$0xff]  ;;  %v13437_v30 = vld [vmem:[#allocation114_spill] sm:$0xff] }
 0x23b   : > { %v9149_v39 = vpop.f32.mrf.mxu0  ;;  %v1755_v8 = vadd.f32 %v13425_v17, %v1423_v29  ;;  %v2668_v61 = vadd.f32 %v13427_v52, %v13426_v47  ;;  %v2993_v41 = vadd.f32 %v13428_v46, %v2665_v45  ;;  %v3285_v57 = vadd.f32 %v11545_v0, %v2991_v50  ;;  %v13438_v45 = vld [vmem:[#allocation80_spill] sm:$0xff] }
 0x23c   : > { %3677 = vst.msk [vmem:[#allocation2 + $0x200] sm:$0xff] %vm667_vm2, %v3644_v63  ;;  %v3647_v5 = vmax.f32 %v3615_v12, 0.0  ;;  %v3614_v58 = vadd.f32 %v11435_v21, %v3575_v11  ;;  %v3578_v20 = vadd.f32 %v9149_v39, %v3284_v37  ;;  %v2667_v54 = vadd.f32 %v13429_v7, %v2373_v40  ;;  %v9111_v37 = vpop.f32.mrf.mxu1  ;;  %v13432_v11 = vld [vmem:[#allocation45_spill] sm:$0xff]  ;;  %v13441_v52 = vld [vmem:[#allocation88_spill] sm:$0xff] }
 0x23d   : > { %v3498_v51 = vpop.f32.mrf.mxu0  ;;  %v2375_v26 = vadd.f32 %v13430_v35, %v2081_v14  ;;  %v3288_v6 = vadd.f32 %v11563_v10, %v2994_v13  ;;  %v2996_v53 = vadd.f32 %v13431_v34, %v2668_v61  ;;  %v2083_v56 = vadd.f32 %v13432_v11, %v1755_v8  ;;  %v11643_v10 = vld [vmem:[%s13213_s3 + $0x20] sm:$0xff] }
 0x23e   : > { %3680 = vst.msk [vmem:[#allocation2 + $0x248] sm:$0xff] %vm667_vm2, %v3647_v5  ;;  %v3646_v55 = vmax.f32 %v3614_v58, 0.0  ;;  %v3617_v42 = vadd.f32 %v11435_v21, %v3578_v20  ;;  %v3577_v16 = vadd.f32 %v3498_v51, %v3283_v25  ;;  %v2670_v33 = vadd.f32 %v13434_v1, %v13433_v38  ;;  %v13435_v5 = vld [vmem:[#allocation84_spill] sm:$0xff]  ;;  %v13436_v20 = vld [vmem:[#allocation87_spill] sm:$0xff]  ;;  %v3244_v23 = vpop.f32.mrf.mxu1  ;;  %v13439_v51 = vld [vmem:[#allocation86_spill] sm:$0xff] }
 0x23f   : > { %v9152_v9 = vpop.f32.mrf.mxu0  ;;  %v3287_v49 = vadd.f32 %v11581_v18, %v2993_v41  ;;  %v2995_v25 = vadd.f32 %v11400_v48, %v2667_v54  ;;  %v2669_v58 = vadd.f32 %v13435_v5, %v2375_v26  ;;  %v2377_v59 = vadd.f32 %v13436_v20, %v2083_v56 }
 0x240   : > { %3679 = vst.msk [vmem:[#allocation2 + $0x230] sm:$0xff] %vm667_vm2, %v3646_v55  ;;  %v3649_v22 = vmax.f32 %v3617_v42, 0.0  ;;  %v3616_v32 = vadd.f32 %v11435_v21, %v3577_v16  ;;  %v3580_v19 = vadd.f32 %v9152_v9, %v3286_v3  ;;  %v2998_v29 = vadd.f32 %v13437_v30, %v2670_v33  ;;  %v13440_v3 = vld [vmem:[#allocation85_spill] sm:$0xff]  ;;  %v9114_v41 = vpop.f32.mrf.mxu1 }
 0x241   : > { %v3508_v62 = vpop.f32.mrf.mxu0  ;;  %v11650_v18 = vld [vmem:[#allocation2 + $0x218] sm:$0xff]  ;;  %v3290_v27 = vadd.f32 %v11599_v36, %v2996_v53  ;;  %v2672_v55 = vadd.f32 %v13440_v3, %v13439_v51  ;;  %v2997_v42 = vadd.f32 %v11411_v15, %v2669_v58  ;;  %v3289_v14 = vadd.f32 %v3234_v31, %v2995_v25  ;;  %v11721_v30 = vld [vmem:[%s13213_s3 + $0x28] sm:$0xff] }
 0x242   : > { %3682 = vst.msk [vmem:[#allocation2 + $0x278] sm:$0xff] %vm667_vm2, %v3649_v22  ;;  %v3648_v63 = vmax.f32 %v3616_v32, 0.0  ;;  %v3619_v0 = vadd.f32 %v11435_v21, %v3580_v19  ;;  %v3579_v12 = vadd.f32 %v3508_v62, %v3285_v57  ;;  %v2671_v61 = vadd.f32 %v13441_v52, %v2377_v59  ;;  %v11801_v52 = vld [vmem:[#allocation2 + $0x98] sm:$0xff] }
 0x243   : > { %v9155_v43 = vpop.f32.mrf.mxu0  ;;  %v11638_v60 = vld [vmem:[#allocation2 + $0x200] sm:$0xff]  ;;  %v3292_v46 = vadd.f32 %v9111_v37, %v2998_v29  ;;  %v3000_v31 = vadd.f32 %v11417_v44, %v2672_v55  ;;  %v3291_v32 = vadd.f32 %v3244_v23, %v2997_v42  ;;  %v3254_v37 = vpop.f32.mrf.mxu1  ;;  %v13442_v29 = vld [vmem:[#allocation109_spill] sm:$0xff] }
 0x244   : > { %3681 = vst.msk [vmem:[#allocation2 + $0x260] sm:$0xff] %vm667_vm2, %v3648_v63  ;;  %v3651_v39 = vmax.f32 %v3619_v0, 0.0  ;;  %v3618_v28 = vadd.f32 %v11435_v21, %v3579_v12  ;;  %v3582_v50 = vadd.f32 %v9155_v43, %v3288_v6  ;;  %9168 = vmatmul.mubr.msk.f32.vlgmr.msra.gmra.mxu1 %vm667_vm2, %v11638_v60  ;;  %v2999_v54 = vadd.f32 %v11424_v2, %v2671_v61  ;;  %v11692_v0 = vld [vmem:[#allocation2 + $0x2d8] sm:$0xff]  ;;  %v11771_v42 = vld [vmem:[#allocation2 + $0x20] sm:$0xff]  ;;  %v11807_v61 = vld [vmem:[#allocation2 + $0xb0] sm:$0xff] }
 0x245   : > { %9266 = vmatpush3.msra.mxu1 %v13438_v45  ;;  %v3518_v48 = vpop.f32.mrf.mxu0  ;;  %9170 = vmatprep.mubr.msk.f32.mxu1 %vm667_vm2, %v11650_v18  ;;  %v11671_v47 = vld [vmem:[#allocation2 + $0x248] sm:$0xff]  ;;  %v3294_v34 = vadd.f32 %v9114_v41, %v3000_v31  ;;  %v11819_v41 = vld [vmem:[#allocation2 + $0x110] sm:$0xff] }
 0x246   : > { %3684 = vst.msk [vmem:[#allocation2 + $0x2a8] sm:$0xff] %vm667_vm2, %v3651_v39  ;;  %v3650_v40 = vmax.f32 %v3618_v28, 0.0  ;;  %v3621_v4 = vadd.f32 %v11435_v21, %v3582_v50  ;;  %v3581_v13 = vadd.f32 %v3518_v48, %v3287_v49  ;;  %9365 = vmatprep.subr.mxu1 %v11643_v10  ;;  %v3293_v56 = vadd.f32 %v3254_v37, %v2999_v54  ;;  %v11824_v31 = vld [vmem:[#allocation2 + $0x128] sm:$0xff]  ;;  %v11848_v54 = vld [vmem:[#allocation2 + $0x170] sm:$0xff]  ;;  %v11864_v37 = vld [vmem:[#allocation2 + $0x1a0] sm:$0xff] }
 0x247   : > { %v9158_v16 = vpop.f32.mrf.mxu0  ;;  %v11665_v24 = vld [vmem:[#allocation2 + $0x230] sm:$0xff] }
 0x248   : > { %3683 = vst.msk [vmem:[#allocation2 + $0x290] sm:$0xff] %vm667_vm2, %v3650_v40  ;;  %v3653_v36 = vmax.f32 %v3621_v4, 0.0  ;;  %v3620_v17 = vadd.f32 %v11435_v21, %v3581_v13  ;;  %v3584_v8 = vadd.f32 %v9158_v16, %v3290_v27  ;;  %9171 = vmatmul.mubr.msk.f32.gmra.mxu1 %vm667_vm2, %v11665_v24  ;;  %v13443_v16 = vld [vmem:[#allocation71_spill] sm:$0xff] }
 0x249   : > { %v3528_v15 = vpop.f32.mrf.mxu0  ;;  %9173 = vmatprep.mubr.msk.f32.mxu1 %vm667_vm2, %v11671_v47  ;;  %v11686_v44 = vld [vmem:[#allocation2 + $0x278] sm:$0xff] }
 0x24a   : > { %3686 = vst.msk [vmem:[#allocation2 + $0x308] sm:$0xff] %vm667_vm2, %v3653_v36  ;;  %v3652_v9 = vmax.f32 %v3620_v17, 0.0  ;;  %v3623_v57 = vadd.f32 %v11435_v21, %v3584_v8  ;;  %v3583_v22 = vadd.f32 %v3528_v15, %v3289_v14  ;;  %v11777_v14 = vld [vmem:[#allocation2 + $0x38] sm:$0xff]  ;;  %v11783_v36 = vld [vmem:[#allocation2 + $0x50] sm:$0xff]  ;;  %v11789_v17 = vld [vmem:[#allocation2 + $0x68] sm:$0xff] }
 0x24b   : > { %v9161_v19 = vpop.f32.mrf.mxu0  ;;  %v11679_v7 = vld [vmem:[#allocation2 + $0x260] sm:$0xff]  ;;  %v3712_v15 = vld [vmem:[#allocation2 + $0x10f] sm:$0xff] }
 0x24c   : > { %3685 = vst.msk [vmem:[#allocation2 + $0x2f0] sm:$0xff] %vm667_vm2, %v3652_v9  ;;  %v3655_v35 = vmax.f32 %v3623_v57, 0.0  ;;  %v3622_v26 = vadd.f32 %v11435_v21, %v3583_v22  ;;  %v3586_v6 = vadd.f32 %v9161_v19, %v3292_v46  ;;  %9174 = vmatmul.mubr.msk.f32.gmra.mxu1 %vm667_vm2, %v11679_v7  ;;  %v11795_v8 = vld [vmem:[#allocation2 + $0x80] sm:$0xff]  ;;  %v11813_v46 = vld [vmem:[#allocation2 + $0xc8] sm:$0xff]  ;;  %v11842_v19 = vld [vmem:[#allocation2 + $0x157] sm:$0xff] }
 0x24d   : > { %v3538_v62 = vpop.f32.mrf.mxu0  ;;  %9176 = vmatprep.mubr.msk.f32.mxu1 %vm667_vm2, %v11686_v44  ;;  %v11826_v9 = vld [vmem:[#allocation2 + $0x127] sm:$0xff]  ;;  %v11834_v22 = vld [vmem:[#allocation2 + $0x13f] sm:$0xff] }
 0x24e   : > { %3688 = vst.msk [vmem:[#allocation2 + $0x338] sm:$0xff] %vm667_vm2, %v3655_v35  ;;  %v3654_v2 = vmax.f32 %v3622_v26, 0.0  ;;  %v3625_v53 = vadd.f32 %v11435_v21, %v3586_v6  ;;  %v3585_v63 = vadd.f32 %v3538_v62, %v3291_v32  ;;  %v11832_v57 = vld [vmem:[#allocation2 + $0x140] sm:$0xff]  ;;  %v11840_v32 = vld [vmem:[#allocation2 + $0x158] sm:$0xff]  ;;  %v11850_v35 = vld [vmem:[#allocation2 + $0x16f] sm:$0xff] }
 0x24f   : > { %v9164_v12 = vpop.f32.mrf.mxu0  ;;  %v11694_v11 = vld [vmem:[#allocation2 + $0x290] sm:$0xff]  ;;  %v11856_v26 = vld [vmem:[#allocation2 + $0x188] sm:$0xff]  ;;  %v11866_v62 = vld [vmem:[#allocation2 + $0x19f] sm:$0xff] }
 0x250   : > { %3687 = vst.msk [vmem:[#allocation2 + $0x320] sm:$0xff] %vm667_vm2, %v3654_v2  ;;  %v3657_v38 = vmax.f32 %v3625_v53, 0.0  ;;  %v3624_v1 = vadd.f32 %v11435_v21, %v3585_v63  ;;  %v3588_v33 = vadd.f32 %v9164_v12, %v3294_v34  ;;  %9177 = vmatmul.mubr.msk.f32.gmra.mxu1 %vm667_vm2, %v11694_v11  ;;  %v11858_v6 = vld [vmem:[#allocation2 + $0x187] sm:$0xff]  ;;  %v11872_v34 = vld [vmem:[#allocation2 + $0x1b8] sm:$0xff]  ;;  %v11887_v53 = vld [vmem:[%s13213_s3 + $0x30] sm:$0xff] }
 0x251   : > { %v3548_v49 = vpop.f32.mrf.mxu0  ;;  %9179 = vmatprep.mubr.msk.f32.mxu1 %vm667_vm2, %v11692_v0  ;;  %v11714_v20 = vld [vmem:[#allocation2 + $0x308] sm:$0xff]  ;;  %v11874_v2 = vld [vmem:[#allocation2 + $0x1b7] sm:$0xff] }
 0x252   : > { %3690 = vst.msk [vmem:[#allocation2 + $0x368] sm:$0xff] %vm667_vm2, %v3657_v38  ;;  %v3656_v43 = vmax.f32 %v3624_v1, 0.0  ;;  %v3627_v25 = vadd.f32 %v11435_v21, %v3588_v33  ;;  %v3587_v39 = vadd.f32 %v3548_v49, %v3293_v56  ;;  %v11716_v59 = vld [vmem:[#allocation2 + $0x307] sm:$0xff]  ;;  %v11932_v12 = vld [vmem:[%s13213_s3 + $0x38] sm:$0xff] }
 0x253   : > { %v11704_v28 = vld [vmem:[#allocation2 + $0x2f0] sm:$0xff]  ;;  %v11921_v63 = vld [vmem:[#allocation2 + $0x201] sm:$0xff]  ;;  %v11958_v33 = vld [vmem:[#allocation2 + $0x279] sm:$0xff] }
 0x254   : > { %v11706_v50 = vld [vmem:[#allocation2 + $0x2ef] sm:$0xff]  ;;  %3689 = vst.msk [vmem:[#allocation2 + $0x350] sm:$0xff] %vm667_vm2, %v3656_v43  ;;  %v3659_v5 = vmax.f32 %v3627_v25, 0.0  ;;  %v3626_v58 = vadd.f32 %v11435_v21, %v3587_v39  ;;  %9180 = vmatmul.mubr.msk.f32.gmra.mxu1 %vm667_vm2, %v11704_v28  ;;  %v11952_v1 = vld [vmem:[#allocation2 + $0x261] sm:$0xff]  ;;  %v12008_v25 = vld [vmem:[#allocation2 + $0x39] sm:$0xff] }
 0x255   : > { %9218 = vmatmul.mubr.msk.f32.vlgmr.msra.gmra.mxu0 %vm667_vm2, %v11706_v50  ;;  %9182 = vmatprep.mubr.msk.f32.mxu1 %vm667_vm2, %v11714_v20  ;;  %v11739_v48 = vld [vmem:[#allocation2 + $0x338] sm:$0xff]  ;;  %v11946_v38 = vld [vmem:[#allocation2 + $0x249] sm:$0xff]  ;;  %v12002_v43 = vld [vmem:[#allocation2 + $0x21] sm:$0xff] }
 0x256   : > { %9220 = vmatprep.mubr.msk.f32.mxu0 %vm667_vm2, %v11716_v59  ;;  %3692 = vst.msk [vmem:[#allocation2 + $0x398] sm:$0xff] %vm667_vm2, %v3659_v5  ;;  %v3658_v21 = vmax.f32 %v3626_v58, 0.0  ;;  %9316 = vmatpush3.msra.mxu0 %v13442_v29  ;;  %v11741_v27 = vld [vmem:[#allocation2 + $0x337] sm:$0xff]  ;;  %v12020_v5 = vld [vmem:[#allocation2 + $0x69] sm:$0xff]  ;;  %v12026_v58 = vld [vmem:[#allocation2 + $0x81] sm:$0xff] }
 0x257   : > { %v11729_v23 = vld [vmem:[#allocation2 + $0x320] sm:$0xff]  ;;  %9415 = vmatprep.subr.mxu0 %v11721_v30  ;;  %v11939_v56 = vld [vmem:[#allocation2 + $0x231] sm:$0xff]  ;;  %13444 = vst [vmem:[#allocation89_spill] sm:$0xff] %v12026_v58  ;;  %v12044_v29 = vld [vmem:[#allocation2 + $0xc9] sm:$0xff] }
 0x258   : > { %v11731_v45 = vld [vmem:[#allocation2 + $0x31f] sm:$0xff]  ;;  %3691 = vst.msk [vmem:[#allocation2 + $0x380] sm:$0xff] %vm667_vm2, %v3658_v21  ;;  %9183 = vmatmul.mubr.msk.f32.gmra.mxu1 %vm667_vm2, %v11729_v23  ;;  %v11964_v49 = vld [vmem:[#allocation2 + $0x291] sm:$0xff]  ;;  %13447 = vst [vmem:[#allocation16_spill] sm:$0xff] %v12044_v29 }
 0x259   : > { %9221 = vmatmul.mubr.msk.f32.gmra.mxu0 %vm667_vm2, %v11731_v45  ;;  %9185 = vmatprep.mubr.msk.f32.mxu1 %vm667_vm2, %v11739_v48  ;;  %v11755_v13 = vld [vmem:[#allocation2 + $0x368] sm:$0xff]  ;;  %v12014_v39 = vld [vmem:[#allocation2 + $0x51] sm:$0xff] }
 0x25a   : > { %9223 = vmatprep.mubr.msk.f32.mxu0 %vm667_vm2, %v11741_v27  ;;  %v11757_v51 = vld [vmem:[#allocation2 + $0x367] sm:$0xff]  ;;  %v12038_v21 = vld [vmem:[#allocation2 + $0xb1] sm:$0xff] }
 0x25b   : > { %v11747_v40 = vld [vmem:[#allocation2 + $0x350] sm:$0xff]  ;;  %13446 = vst [vmem:[#allocation15_spill] sm:$0xff] %v12038_v21 }
 0x25c   : > { %v11749_v4 = vld [vmem:[#allocation2 + $0x34f] sm:$0xff]  ;;  %9186 = vmatmul.mubr.msk.f32.gmra.mxu1 %vm667_vm2, %v11747_v40 }
 0x25d   : > { %9224 = vmatmul.mubr.msk.f32.gmra.mxu0 %vm667_vm2, %v11749_v4  ;;  %9188 = vmatprep.mubr.msk.f32.mxu1 %vm667_vm2, %v11755_v13 }
 0x25e   : > { %9226 = vmatprep.mubr.msk.f32.mxu0 %vm667_vm2, %v11757_v51 }
 0x25f   : > { %v11763_v3 = vld [vmem:[#allocation2 + $0x380] sm:$0xff] }
 0x260   : > { %v11765_v55 = vld [vmem:[#allocation2 + $0x37f] sm:$0xff]  ;;  %9189 = vmatmul.mubr.msk.f32.gmra.mxu1 %vm667_vm2, %v11763_v3 }
 0x261   : > { %9227 = vmatmul.mubr.msk.f32.gmra.mxu0 %vm667_vm2, %v11765_v55  ;;  %9191 = vmatprep.mubr.msk.f32.mxu1 %vm667_vm2, %v11771_v42 }
 0x262   : > { %9229 = vmatprep.mubr.msk.f32.mxu0 %vm667_vm2, %v13443_v16  ;;  %v12046_v16 = vld [vmem:[#allocation2 + $0x397] sm:$0xff] }
 0x264   : > { %9192 = vmatmul.mubr.msk.f32.gmra.mxu1 %vm667_vm2, %v11777_v14 }
 0x265   : > { %9230 = vmatmul.mubr.msk.f32.gmra.mxu0 %vm667_vm2, %v11638_v60  ;;  %9194 = vmatprep.mubr.msk.f32.mxu1 %vm667_vm2, %v11783_v36 }
 0x266   : > { %9232 = vmatprep.mubr.msk.f32.mxu0 %vm667_vm2, %v11650_v18 }
 0x268   : > { %9195 = vmatmul.mubr.msk.f32.gmra.mxu1 %vm667_vm2, %v11789_v17 }
 0x269   : > { %9233 = vmatmul.mubr.msk.f32.gmra.mxu0 %vm667_vm2, %v11665_v24  ;;  %9197 = vmatprep.mubr.msk.f32.mxu1 %vm667_vm2, %v11795_v8 }
 0x26a   : > { %9235 = vmatprep.mubr.msk.f32.mxu0 %vm667_vm2, %v11671_v47 }
 0x26c   : > { %9198 = vmatmul.mubr.msk.f32.gmra.mxu1 %vm667_vm2, %v11801_v52 }
 0x26d   : > { %9236 = vmatmul.mubr.msk.f32.gmra.mxu0 %vm667_vm2, %v11679_v7  ;;  %9200 = vmatprep.mubr.msk.f32.mxu1 %vm667_vm2, %v11807_v61 }
 0x26e   : > { %9238 = vmatprep.mubr.msk.f32.mxu0 %vm667_vm2, %v11686_v44 }
 0x270   : > { %9201 = vmatmul.mubr.msk.f32.gmra.mxu1 %vm667_vm2, %v11813_v46 }
 0x271   : > { %9239 = vmatmul.mubr.msk.f32.gmra.mxu0 %vm667_vm2, %v11694_v11  ;;  %9203 = vmatprep.mubr.msk.f32.mxu1 %vm667_vm2, %v11819_v41 }
 0x272   : > { %9241 = vmatprep.mubr.msk.f32.mxu0 %vm667_vm2, %v3712_v15 }
 0x274   : > { %9204 = vmatmul.mubr.msk.f32.gmra.mxu1 %vm667_vm2, %v11824_v31 }
 0x275   : > { %9242 = vmatmul.mubr.msk.f32.gmra.mxu0 %vm667_vm2, %v11826_v9  ;;  %9206 = vmatprep.mubr.msk.f32.mxu1 %vm667_vm2, %v11832_v57 }
 0x276   : > { %9244 = vmatprep.mubr.msk.f32.mxu0 %vm667_vm2, %v11834_v22 }
 0x278   : > { %9207 = vmatmul.mubr.msk.f32.gmra.mxu1 %vm667_vm2, %v11840_v32 }
 0x279   : > { %9245 = vmatmul.mubr.msk.f32.gmra.mxu0 %vm667_vm2, %v11842_v19  ;;  %9209 = vmatprep.mubr.msk.f32.mxu1 %vm667_vm2, %v11848_v54 }
 0x27a   : > { %9247 = vmatprep.mubr.msk.f32.mxu0 %vm667_vm2, %v11850_v35 }
 0x27c   : > { %9210 = vmatmul.mubr.msk.f32.gmra.mxu1 %vm667_vm2, %v11856_v26 }
 0x27d   : > { %9248 = vmatmul.mubr.msk.f32.gmra.mxu0 %vm667_vm2, %v11858_v6  ;;  %9212 = vmatprep.mubr.msk.f32.mxu1 %vm667_vm2, %v11864_v37 }
 0x27e   : > { %9250 = vmatprep.mubr.msk.f32.mxu0 %vm667_vm2, %v11866_v62 }
 0x280   : > { %9213 = vmatmul.mubr.msk.f32.gmra.mxu1 %vm667_vm2, %v11872_v34 }
 0x281   : > { %9251 = vmatmul.mubr.msk.f32.gmra.mxu0 %vm667_vm2, %v11874_v2  ;;  %9267 = vmatprep.mubr.msk.f32.mxu1 %vm667_vm2, %v11692_v0  ;;  %v11927_v0 = vld [vmem:[#allocation2 + $0x219] sm:$0xff] }
 0x282   : > { %9253 = vmatprep.mubr.msk.f32.mxu0 %vm667_vm2, %v11771_v42 }
 0x284   : > { %9268 = vmatmul.mubr.msk.f32.vlgmr.msra.gmra.mxu1 %vm667_vm2, %v11704_v28 }
 0x285   : > { %9254 = vmatmul.mubr.msk.f32.gmra.mxu0 %vm667_vm2, %v11777_v14  ;;  %9366 = vmatpush3.msra.mxu1 %v11643_v10  ;;  %v4341_v10 = vld [vmem:[#allocation2 + $0x1e9] sm:$0xff] }
 0x286   : > { %9256 = vmatprep.mubr.msk.f32.mxu0 %vm667_vm2, %v11783_v36  ;;  %9270 = vmatprep.mubr.msk.f32.mxu1 %vm667_vm2, %v11714_v20 }
 0x287   : > { %9465 = vmatprep.subr.mxu1 %v11887_v53 }
 0x288   : > { %9271 = vmatmul.mubr.msk.f32.gmra.mxu1 %vm667_vm2, %v11729_v23 }
 0x289   : > { %9257 = vmatmul.mubr.msk.f32.gmra.mxu0 %vm667_vm2, %v11789_v17  ;;  %9273 = vmatprep.mubr.msk.f32.mxu1 %vm667_vm2, %v11739_v48 }
 0x28a   : > { %9259 = vmatprep.mubr.msk.f32.mxu0 %vm667_vm2, %v11795_v8 }
 0x28c   : > { %9274 = vmatmul.mubr.msk.f32.gmra.mxu1 %vm667_vm2, %v11747_v40 }
 0x28d   : > { %9260 = vmatmul.mubr.msk.f32.gmra.mxu0 %vm667_vm2, %v11801_v52  ;;  %9276 = vmatprep.mubr.msk.f32.mxu1 %vm667_vm2, %v11755_v13 }
 0x28e   : > { %9262 = vmatprep.mubr.msk.f32.mxu0 %vm667_vm2, %v11807_v61 }
 0x290   : > { %9277 = vmatmul.mubr.msk.f32.gmra.mxu1 %vm667_vm2, %v11763_v3 }
 0x291   : > { %9263 = vmatmul.mubr.msk.f32.gmra.mxu0 %vm667_vm2, %v11813_v46  ;;  %9279 = vmatprep.mubr.msk.f32.mxu1 %vm667_vm2, %v4341_v10 }
 0x292   : > { %9317 = vmatprep.mubr.msk.f32.mxu0 %vm667_vm2, %v3712_v15  ;;  %v12059_v15 = vld [vmem:[%s13213_s3 + $0x40] sm:$0xff] }
 0x294   : > { %9280 = vmatmul.mubr.msk.f32.gmra.mxu1 %vm667_vm2, %v11921_v63 }
 0x295   : > { %9318 = vmatmul.mubr.msk.f32.vlgmr.msra.gmra.mxu0 %vm667_vm2, %v11826_v9  ;;  %9282 = vmatprep.mubr.msk.f32.mxu1 %vm667_vm2, %v11927_v0 }
 0x296   : > { %9320 = vmatprep.mubr.msk.f32.mxu0 %vm667_vm2, %v11834_v22  ;;  %9416 = vmatpush3.msra.mxu0 %v11721_v30  ;;  %v12032_v30 = vld [vmem:[#allocation2 + $0x99] sm:$0xff] }
 0x297   : > { %9515 = vmatprep.subr.mxu0 %v11932_v12  ;;  %13445 = vst [vmem:[#allocation93_spill] sm:$0xff] %v12032_v30 }
 0x298   : > { %9283 = vmatmul.mubr.msk.f32.gmra.mxu1 %vm667_vm2, %v11939_v56 }
 0x299   : > { %9321 = vmatmul.mubr.msk.f32.gmra.mxu0 %vm667_vm2, %v11842_v19  ;;  %9285 = vmatprep.mubr.msk.f32.mxu1 %vm667_vm2, %v11946_v38 }
 0x29a   : > { %9323 = vmatprep.mubr.msk.f32.mxu0 %vm667_vm2, %v11850_v35 }
 0x29c   : > { %9286 = vmatmul.mubr.msk.f32.gmra.mxu1 %vm667_vm2, %v11952_v1 }
 0x29d   : > { %9324 = vmatmul.mubr.msk.f32.gmra.mxu0 %vm667_vm2, %v11858_v6  ;;  %9288 = vmatprep.mubr.msk.f32.mxu1 %vm667_vm2, %v11958_v33 }
 0x29e   : > { %9326 = vmatprep.mubr.msk.f32.mxu0 %vm667_vm2, %v11866_v62 }
 0x2a0   : > { %9289 = vmatmul.mubr.msk.f32.gmra.mxu1 %vm667_vm2, %v11964_v49 }
 0x2a1   : > { %9327 = vmatmul.mubr.msk.f32.gmra.mxu0 %vm667_vm2, %v11874_v2  ;;  %9291 = vmatprep.mubr.msk.f32.mxu1 %vm667_vm2, %v11819_v41 }
 0x2a2   : > { %9329 = vmatprep.mubr.msk.f32.mxu0 %vm667_vm2, %v11771_v42 }
 0x2a4   : > { %9292 = vmatmul.mubr.msk.f32.gmra.mxu1 %vm667_vm2, %v11824_v31 }
 0x2a5   : > { %9330 = vmatmul.mubr.msk.f32.gmra.mxu0 %vm667_vm2, %v11777_v14  ;;  %9294 = vmatprep.mubr.msk.f32.mxu1 %vm667_vm2, %v11832_v57 }
 0x2a6   : > { %9332 = vmatprep.mubr.msk.f32.mxu0 %vm667_vm2, %v11783_v36 }
 0x2a8   : > { %9295 = vmatmul.mubr.msk.f32.gmra.mxu1 %vm667_vm2, %v11840_v32 }
 0x2a9   : > { %9333 = vmatmul.mubr.msk.f32.gmra.mxu0 %vm667_vm2, %v11789_v17  ;;  %9297 = vmatprep.mubr.msk.f32.mxu1 %vm667_vm2, %v11848_v54 }
 0x2aa   : > { %9335 = vmatprep.mubr.msk.f32.mxu0 %vm667_vm2, %v11795_v8 }
 0x2ac   : > { %9298 = vmatmul.mubr.msk.f32.gmra.mxu1 %vm667_vm2, %v11856_v26 }
 0x2ad   : > { %9336 = vmatmul.mubr.msk.f32.gmra.mxu0 %vm667_vm2, %v11801_v52  ;;  %9300 = vmatprep.mubr.msk.f32.mxu1 %vm667_vm2, %v11864_v37 }
 0x2ae   : > { %9338 = vmatprep.mubr.msk.f32.mxu0 %vm667_vm2, %v11807_v61 }
 0x2b0   : > { %9301 = vmatmul.mubr.msk.f32.gmra.mxu1 %vm667_vm2, %v11872_v34 }
 0x2b1   : > { %9339 = vmatmul.mubr.msk.f32.gmra.mxu0 %vm667_vm2, %v11813_v46  ;;  %9303 = vmatprep.mubr.msk.f32.mxu1 %vm667_vm2, %v12002_v43 }
 0x2b2   : > { %9341 = vmatprep.mubr.msk.f32.mxu0 %vm667_vm2, %v11706_v50 }
 0x2b4   : > { %9304 = vmatmul.mubr.msk.f32.gmra.mxu1 %vm667_vm2, %v12008_v25 }
 0x2b5   : > { %9342 = vmatmul.mubr.msk.f32.gmra.mxu0 %vm667_vm2, %v11716_v59  ;;  %9306 = vmatprep.mubr.msk.f32.mxu1 %vm667_vm2, %v12014_v39 }
 0x2b6   : > { %9344 = vmatprep.mubr.msk.f32.mxu0 %vm667_vm2, %v11731_v45 }
 0x2b8   : > { %9307 = vmatmul.mubr.msk.f32.gmra.mxu1 %vm667_vm2, %v12020_v5 }
 0x2b9   : > { %9345 = vmatmul.mubr.msk.f32.gmra.mxu0 %vm667_vm2, %v11741_v27  ;;  %9309 = vmatprep.mubr.msk.f32.mxu1 %vm667_vm2, %v12026_v58 }
 0x2ba   : > { %9347 = vmatprep.mubr.msk.f32.mxu0 %vm667_vm2, %v11749_v4 }
 0x2bc   : > { %9310 = vmatmul.mubr.msk.f32.gmra.mxu1 %vm667_vm2, %v12032_v30 }
 0x2bd   : > { %9348 = vmatmul.mubr.msk.f32.gmra.mxu0 %vm667_vm2, %v11757_v51  ;;  %9312 = vmatprep.mubr.msk.f32.mxu1 %vm667_vm2, %v12038_v21 }
 0x2be   : > { %9350 = vmatprep.mubr.msk.f32.mxu0 %vm667_vm2, %v11765_v55 }
 0x2c0   : > { %9313 = vmatmul.mubr.msk.f32.gmra.mxu1 %vm667_vm2, %v12044_v29 }
 0x2c1   : > { %9351 = vmatmul.mubr.msk.f32.gmra.mxu0 %vm667_vm2, %v12046_v16  ;;  %9367 = vmatprep.mubr.msk.f32.mxu1 %vm667_vm2, %v11771_v42  ;;  %v12087_v42 = vld [vmem:[#allocation2 + $0x2a8] sm:$0xff] }
 0x2c2   : > { %9353 = vmatprep.mubr.msk.f32.mxu0 %vm667_vm2, %v11638_v60 }
 0x2c4   : > { %9368 = vmatmul.mubr.msk.f32.vlgmr.msra.gmra.mxu1 %vm667_vm2, %v11777_v14 }
 0x2c5   : > { %9354 = vmatmul.mubr.msk.f32.gmra.mxu0 %vm667_vm2, %v11650_v18  ;;  %9466 = vmatpush3.msra.mxu1 %v11887_v53 }
 0x2c6   : > { %9356 = vmatprep.mubr.msk.f32.mxu0 %vm667_vm2, %v11665_v24  ;;  %9370 = vmatprep.mubr.msk.f32.mxu1 %vm667_vm2, %v11783_v36 }
 0x2c7   : > { %9565 = vmatprep.subr.mxu1 %v12059_v15 }
 0x2c8   : > { %9371 = vmatmul.mubr.msk.f32.gmra.mxu1 %vm667_vm2, %v11789_v17 }
 0x2c9   : > { %9357 = vmatmul.mubr.msk.f32.gmra.mxu0 %vm667_vm2, %v11671_v47  ;;  %9373 = vmatprep.mubr.msk.f32.mxu1 %vm667_vm2, %v11795_v8 }
 0x2ca   : > { %9359 = vmatprep.mubr.msk.f32.mxu0 %vm667_vm2, %v11679_v7 }
 0x2cc   : > { %9374 = vmatmul.mubr.msk.f32.gmra.mxu1 %vm667_vm2, %v11801_v52 }
 0x2cd   : > { %9360 = vmatmul.mubr.msk.f32.gmra.mxu0 %vm667_vm2, %v11686_v44  ;;  %9376 = vmatprep.mubr.msk.f32.mxu1 %vm667_vm2, %v11807_v61 }
 0x2ce   : > { %9362 = vmatprep.mubr.msk.f32.mxu0 %vm667_vm2, %v11694_v11 }
 0x2d0   : > { %9377 = vmatmul.mubr.msk.f32.gmra.mxu1 %vm667_vm2, %v11813_v46 }
 0x2d1   : > { %9363 = vmatmul.mubr.msk.f32.gmra.mxu0 %vm667_vm2, %v12087_v42  ;;  %9379 = vmatprep.mubr.msk.f32.mxu1 %vm667_vm2, %v11819_v41 }
 0x2d2   : > { %9417 = vmatprep.mubr.msk.f32.mxu0 %vm667_vm2, %v11819_v41  ;;  %v12186_v41 = vld [vmem:[#allocation2 + $0x398] sm:$0xff] }
 0x2d4   : > { %9380 = vmatmul.mubr.msk.f32.gmra.mxu1 %vm667_vm2, %v11824_v31 }
 0x2d5   : > { %9418 = vmatmul.mubr.msk.f32.vlgmr.msra.gmra.mxu0 %vm667_vm2, %v11824_v31  ;;  %9382 = vmatprep.mubr.msk.f32.mxu1 %vm667_vm2, %v11832_v57 }
 0x2d6   : > { %9420 = vmatprep.mubr.msk.f32.mxu0 %vm667_vm2, %v11832_v57  ;;  %9516 = vmatpush3.msra.mxu0 %v11932_v12 }
 0x2d8   : > { %9383 = vmatmul.mubr.msk.f32.gmra.mxu1 %vm667_vm2, %v11840_v32 }
 0x2d9   : > { %9421 = vmatmul.mubr.msk.f32.gmra.mxu0 %vm667_vm2, %v11840_v32  ;;  %9385 = vmatprep.mubr.msk.f32.mxu1 %vm667_vm2, %v11848_v54 }
 0x2da   : > { %9423 = vmatprep.mubr.msk.f32.mxu0 %vm667_vm2, %v11848_v54 }
 0x2dc   : > { %9386 = vmatmul.mubr.msk.f32.gmra.mxu1 %vm667_vm2, %v11856_v26 }
 0x2dd   : > { %9424 = vmatmul.mubr.msk.f32.gmra.mxu0 %vm667_vm2, %v11856_v26  ;;  %9388 = vmatprep.mubr.msk.f32.mxu1 %vm667_vm2, %v11864_v37 }
 0x2de   : > { %9426 = vmatprep.mubr.msk.f32.mxu0 %vm667_vm2, %v11864_v37 }
 0x2e0   : > { %9389 = vmatmul.mubr.msk.f32.gmra.mxu1 %vm667_vm2, %v11872_v34 }
 0x2e1   : > { %9427 = vmatmul.mubr.msk.f32.gmra.mxu0 %vm667_vm2, %v11872_v34  ;;  %9391 = vmatprep.mubr.msk.f32.mxu1 %vm667_vm2, %v11638_v60 }
 0x2e2   : > { %9429 = vmatprep.mubr.msk.f32.mxu0 %vm667_vm2, %v12002_v43 }
 0x2e4   : > { %9392 = vmatmul.mubr.msk.f32.gmra.mxu1 %vm667_vm2, %v11650_v18 }
 0x2e5   : > { %9430 = vmatmul.mubr.msk.f32.gmra.mxu0 %vm667_vm2, %v12008_v25  ;;  %9394 = vmatprep.mubr.msk.f32.mxu1 %vm667_vm2, %v11665_v24 }
 0x2e6   : > { %9432 = vmatprep.mubr.msk.f32.mxu0 %vm667_vm2, %v12014_v39 }
 0x2e8   : > { %9395 = vmatmul.mubr.msk.f32.gmra.mxu1 %vm667_vm2, %v11671_v47 }
 0x2e9   : > { %9433 = vmatmul.mubr.msk.f32.gmra.mxu0 %vm667_vm2, %v12020_v5  ;;  %9397 = vmatprep.mubr.msk.f32.mxu1 %vm667_vm2, %v11679_v7 }
 0x2ea   : > { %9435 = vmatprep.mubr.msk.f32.mxu0 %vm667_vm2, %v12026_v58 }
 0x2ec   : > { %9398 = vmatmul.mubr.msk.f32.gmra.mxu1 %vm667_vm2, %v11686_v44 }
 0x2ed   : > { %9436 = vmatmul.mubr.msk.f32.gmra.mxu0 %vm667_vm2, %v12032_v30  ;;  %9400 = vmatprep.mubr.msk.f32.mxu1 %vm667_vm2, %v11694_v11 }
 0x2ee   : > { %9438 = vmatprep.mubr.msk.f32.mxu0 %vm667_vm2, %v12038_v21 }
 0x2f0   : > { %9401 = vmatmul.mubr.msk.f32.gmra.mxu1 %vm667_vm2, %v12087_v42 }
 0x2f1   : > { %9439 = vmatmul.mubr.msk.f32.gmra.mxu0 %vm667_vm2, %v12044_v29  ;;  %9403 = vmatprep.mubr.msk.f32.mxu1 %vm667_vm2, %v11704_v28 }
 0x2f2   : > { %9441 = vmatprep.mubr.msk.f32.mxu0 %vm667_vm2, %v11704_v28 }
 0x2f4   : > { %9404 = vmatmul.mubr.msk.f32.gmra.mxu1 %vm667_vm2, %v11714_v20 }
 0x2f5   : > { %9442 = vmatmul.mubr.msk.f32.gmra.mxu0 %vm667_vm2, %v11714_v20  ;;  %9406 = vmatprep.mubr.msk.f32.mxu1 %vm667_vm2, %v11729_v23 }
 0x2f6   : > { %9444 = vmatprep.mubr.msk.f32.mxu0 %vm667_vm2, %v11729_v23 }
 0x2f8   : > { %9407 = vmatmul.mubr.msk.f32.gmra.mxu1 %vm667_vm2, %v11739_v48 }
 0x2f9   : > { %9445 = vmatmul.mubr.msk.f32.gmra.mxu0 %vm667_vm2, %v11739_v48  ;;  %9409 = vmatprep.mubr.msk.f32.mxu1 %vm667_vm2, %v11747_v40 }
 0x2fa   : > { %9447 = vmatprep.mubr.msk.f32.mxu0 %vm667_vm2, %v11747_v40 }
 0x2fc   : > { %9410 = vmatmul.mubr.msk.f32.gmra.mxu1 %vm667_vm2, %v11755_v13 }
 0x2fd   : > { %9448 = vmatmul.mubr.msk.f32.gmra.mxu0 %vm667_vm2, %v11755_v13  ;;  %9412 = vmatprep.mubr.msk.f32.mxu1 %vm667_vm2, %v11763_v3 }
 0x2fe   : > { %9450 = vmatprep.mubr.msk.f32.mxu0 %vm667_vm2, %v11763_v3 }
 0x300   : > { %9413 = vmatmul.mubr.msk.f32.gmra.mxu1 %vm667_vm2, %v12186_v41 }
 0x301   : > { %9451 = vmatmul.mubr.msk.f32.gmra.mxu0 %vm667_vm2, %v12186_v41  ;;  %9467 = vmatprep.mubr.msk.f32.mxu1 %vm667_vm2, %v11706_v50 }
 0x302   : > { %9453 = vmatprep.mubr.msk.f32.mxu0 %vm667_vm2, %v11921_v63 }
 0x304   : > { %v9169_v53 = vpop.f32.mrf.mxu1  ;;  %9468 = vmatmul.mubr.msk.f32.vlgmr.msra.gmra.mxu1 %vm667_vm2, %v11716_v59 }
 0x305   : > { %9454 = vmatmul.mubr.msk.f32.gmra.mxu0 %vm667_vm2, %v11927_v0  ;;  %9566 = vmatpush3.msra.mxu1 %v12059_v15 }
 0x306   : > { %9456 = vmatprep.mubr.msk.f32.mxu0 %vm667_vm2, %v11939_v56  ;;  %9470 = vmatprep.mubr.msk.f32.mxu1 %vm667_vm2, %v11731_v45  ;;  %v3909_v10 = vpop.f32.mrf.mxu1 }
 0x308   : > { %v9172_v12 = vpop.f32.mrf.mxu1  ;;  %9471 = vmatmul.mubr.msk.f32.gmra.mxu1 %vm667_vm2, %v11741_v27  ;;  %v12221_v27 = vld [vmem:[#allocation2 + $0x2a9] sm:$0xff] }
 0x309   : > { %9457 = vmatmul.mubr.msk.f32.gmra.mxu0 %vm667_vm2, %v11946_v38  ;;  %9473 = vmatprep.mubr.msk.f32.mxu1 %vm667_vm2, %v11749_v4 }
 0x30a   : > { %9459 = vmatprep.mubr.msk.f32.mxu0 %vm667_vm2, %v11952_v1  ;;  %v3919_v50 = vpop.f32.mrf.mxu1 }
 0x30c   : > { %v9175_v59 = vpop.f32.mrf.mxu1  ;;  %9474 = vmatmul.mubr.msk.f32.gmra.mxu1 %vm667_vm2, %v11757_v51 }
 0x30d   : > { %9460 = vmatmul.mubr.msk.f32.gmra.mxu0 %vm667_vm2, %v11958_v33  ;;  %9476 = vmatprep.mubr.msk.f32.mxu1 %vm667_vm2, %v11765_v55 }
 0x30e   : > { %9462 = vmatprep.mubr.msk.f32.mxu0 %vm667_vm2, %v11964_v49  ;;  %v3929_v45 = vpop.f32.mrf.mxu1 }
 0x310   : > { %v9178_v43 = vpop.f32.mrf.mxu1  ;;  %9477 = vmatmul.mubr.msk.f32.gmra.mxu1 %vm667_vm2, %v12046_v16 }
 0x311   : > { %9463 = vmatmul.mubr.msk.f32.gmra.mxu0 %vm667_vm2, %v12221_v27  ;;  %9479 = vmatprep.mubr.msk.f32.mxu1 %vm667_vm2, %v11638_v60 }
 0x312   : > { %9517 = vmatprep.mubr.msk.f32.mxu0 %vm667_vm2, %v11638_v60  ;;  %v3939_v4 = vpop.f32.mrf.mxu1 }
 0x314   : > { %v9181_v51 = vpop.f32.mrf.mxu1  ;;  %9480 = vmatmul.mubr.msk.f32.gmra.mxu1 %vm667_vm2, %v11650_v18 }
 0x315   : > { %v9219_v15 = vpop.f32.mrf.mxu0  ;;  %9518 = vmatmul.mubr.msk.f32.vlgmr.msra.gmra.mxu0 %vm667_vm2, %v11650_v18  ;;  %9482 = vmatprep.mubr.msk.f32.mxu1 %vm667_vm2, %v11665_v24 }
 0x316   : > { %v12235_v55 = vadd.f32 %v9219_v15, %v9169_v53  ;;  %9520 = vmatprep.mubr.msk.f32.mxu0 %vm667_vm2, %v11665_v24  ;;  %v3949_v16 = vpop.f32.mrf.mxu1 }
 0x317   : > { %v4182_v29 = vpop.f32.mrf.mxu0 }
 0x318   : > { %v12241_v60 = vadd.f32 %v4182_v29, %v3909_v10  ;;  %v9184_v21 = vpop.f32.mrf.mxu1  ;;  %9483 = vmatmul.mubr.msk.f32.gmra.mxu1 %vm667_vm2, %v11671_v47 }
 0x319   : > { %v9222_v30 = vpop.f32.mrf.mxu0  ;;  %9521 = vmatmul.mubr.msk.f32.gmra.mxu0 %vm667_vm2, %v11671_v47  ;;  %9485 = vmatprep.mubr.msk.f32.mxu1 %vm667_vm2, %v11679_v7 }
 0x31a   : > { %v12247_v18 = vadd.f32 %v9222_v30, %v9172_v12  ;;  %9523 = vmatprep.mubr.msk.f32.mxu0 %vm667_vm2, %v11679_v7  ;;  %v3959_v24 = vpop.f32.mrf.mxu1 }
 0x31b   : > { %v4192_v53 = vpop.f32.mrf.mxu0 }
 0x31c   : > { %v12253_v29 = vadd.f32 %v4192_v53, %v3919_v50  ;;  %v9187_v10 = vpop.f32.mrf.mxu1  ;;  %9486 = vmatmul.mubr.msk.f32.gmra.mxu1 %vm667_vm2, %v11686_v44 }
 0x31d   : > { %v9225_v15 = vpop.f32.mrf.mxu0  ;;  %9524 = vmatmul.mubr.msk.f32.gmra.mxu0 %vm667_vm2, %v11686_v44  ;;  %9488 = vmatprep.mubr.msk.f32.mxu1 %vm667_vm2, %v11694_v11 }
 0x31e   : > { %v12259_v47 = vadd.f32 %v9225_v15, %v9175_v59  ;;  %9526 = vmatprep.mubr.msk.f32.mxu0 %vm667_vm2, %v11694_v11  ;;  %v3969_v7 = vpop.f32.mrf.mxu1 }
 0x31f   : > { %v4202_v30 = vpop.f32.mrf.mxu0 }
 0x320   : > { %v12265_v12 = vadd.f32 %v4202_v30, %v3929_v45  ;;  %v9190_v50 = vpop.f32.mrf.mxu1  ;;  %9489 = vmatmul.mubr.msk.f32.gmra.mxu1 %vm667_vm2, %v12087_v42 }
 0x321   : > { %v9228_v53 = vpop.f32.mrf.mxu0  ;;  %9527 = vmatmul.mubr.msk.f32.gmra.mxu0 %vm667_vm2, %v12087_v42  ;;  %9491 = vmatprep.mubr.msk.f32.mxu1 %vm667_vm2, %v11826_v9 }
 0x322   : > { %v12271_v44 = vadd.f32 %v9228_v53, %v9178_v43  ;;  %9529 = vmatprep.mubr.msk.f32.mxu0 %vm667_vm2, %v11704_v28  ;;  %v3979_v11 = vpop.f32.mrf.mxu1 }
 0x323   : > { %v4212_v59 = vpop.f32.mrf.mxu0 }
 0x324   : > { %v12277_v45 = vadd.f32 %v4212_v59, %v3939_v4  ;;  %v9193_v15 = vpop.f32.mrf.mxu1  ;;  %9492 = vmatmul.mubr.msk.f32.gmra.mxu1 %vm667_vm2, %v11834_v22 }
 0x325   : > { %v9231_v30 = vpop.f32.mrf.mxu0  ;;  %9530 = vmatmul.mubr.msk.f32.gmra.mxu0 %vm667_vm2, %v11714_v20  ;;  %9494 = vmatprep.mubr.msk.f32.mxu1 %vm667_vm2, %v11842_v19 }
 0x326   : > { %v12283_v42 = vadd.f32 %v9231_v30, %v9181_v51  ;;  %9532 = vmatprep.mubr.msk.f32.mxu0 %vm667_vm2, %v11729_v23  ;;  %v12289_v9 = vpop.f32.mrf.mxu1 }
 0x327   : > { %v4222_v43 = vpop.f32.mrf.mxu0 }
 0x328   : > { %v12291_v4 = vadd.f32 %v4222_v43, %v3949_v16  ;;  %v9196_v53 = vpop.f32.mrf.mxu1  ;;  %9495 = vmatmul.mubr.msk.f32.gmra.mxu1 %vm667_vm2, %v11850_v35 }
 0x329   : > { %v9234_v59 = vpop.f32.mrf.mxu0  ;;  %9533 = vmatmul.mubr.msk.f32.gmra.mxu0 %vm667_vm2, %v11739_v48  ;;  %9497 = vmatprep.mubr.msk.f32.mxu1 %vm667_vm2, %v11858_v6  ;;  %v5579_v6 = vld [vmem:[#allocation2 + $0x1cf] sm:$0xff] }
 0x32a   : > { %v12297_v22 = vadd.f32 %v9234_v59, %v9184_v21  ;;  %9535 = vmatprep.mubr.msk.f32.mxu0 %vm667_vm2, %v11747_v40  ;;  %v12303_v19 = vpop.f32.mrf.mxu1 }
 0x32b   : > { %v4232_v51 = vpop.f32.mrf.mxu0 }
 0x32c   : > { %v12305_v16 = vadd.f32 %v4232_v51, %v3959_v24  ;;  %v9199_v30 = vpop.f32.mrf.mxu1  ;;  %9498 = vmatmul.mubr.msk.f32.gmra.mxu1 %vm667_vm2, %v11866_v62 }
 0x32d   : > { %v9237_v43 = vpop.f32.mrf.mxu0  ;;  %9536 = vmatmul.mubr.msk.f32.gmra.mxu0 %vm667_vm2, %v11755_v13  ;;  %9500 = vmatprep.mubr.msk.f32.mxu1 %vm667_vm2, %v11874_v2 }
 0x32e   : > { %v12311_v35 = vadd.f32 %v9237_v43, %v9187_v10  ;;  %9538 = vmatprep.mubr.msk.f32.mxu0 %vm667_vm2, %v11763_v3  ;;  %v12317_v21 = vpop.f32.mrf.mxu1 }
 0x32f   : > { %v4242_v24 = vpop.f32.mrf.mxu0 }
 0x330   : > { %v12319_v59 = vadd.f32 %v4242_v24, %v3969_v7  ;;  %v9202_v51 = vpop.f32.mrf.mxu1  ;;  %9501 = vmatmul.mubr.msk.f32.gmra.mxu1 %vm667_vm2, %v5579_v6 }
 0x331   : > { %v9240_v58 = vpop.f32.mrf.mxu0  ;;  %9539 = vmatmul.mubr.msk.f32.gmra.mxu0 %vm667_vm2, %v12186_v41  ;;  %9503 = vmatprep.mubr.msk.f32.mxu1 %vm667_vm2, %v11777_v14 }
 0x332   : > { %v12324_v62 = vadd.f32 %v9240_v58, %v9190_v50  ;;  %9541 = vmatprep.mubr.msk.f32.mxu0 %vm667_vm2, %v11777_v14  ;;  %v12330_v2 = vpop.f32.mrf.mxu1 }
 0x333   : > { %13448 = vst [vmem:[#allocation46_spill] sm:$0xff] %v12330_v2  ;;  %v4252_v10 = vpop.f32.mrf.mxu0 }
 0x334   : > { %v12332_v7 = vadd.f32 %v4252_v10, %v3979_v11  ;;  %v9205_v43 = vpop.f32.mrf.mxu1  ;;  %9504 = vmatmul.mubr.msk.f32.gmra.mxu1 %vm667_vm2, %v11783_v36 }
 0x335   : > { %v9243_v24 = vpop.f32.mrf.mxu0  ;;  %9542 = vmatmul.mubr.msk.f32.gmra.mxu0 %vm667_vm2, %v11783_v36  ;;  %9506 = vmatprep.mubr.msk.f32.mxu1 %vm667_vm2, %v11789_v17 }
 0x336   : > { %v12338_v58 = vadd.f32 %v9243_v24, %v9193_v15  ;;  %9544 = vmatprep.mubr.msk.f32.mxu0 %vm667_vm2, %v11789_v17  ;;  %v12344_v14 = vpop.f32.mrf.mxu1 }
 0x337   : > { %13449 = vst [vmem:[#allocation49_spill] sm:$0xff] %v12344_v14  ;;  %v12346_v50 = vpop.f32.mrf.mxu0 }
 0x338   : > { %v9208_v11 = vpop.f32.mrf.mxu1  ;;  %9507 = vmatmul.mubr.msk.f32.gmra.mxu1 %vm667_vm2, %v11795_v8 }
 0x339   : > { %v9246_v6 = vpop.f32.mrf.mxu0  ;;  %9545 = vmatmul.mubr.msk.f32.gmra.mxu0 %vm667_vm2, %v11795_v8  ;;  %9509 = vmatprep.mubr.msk.f32.mxu1 %vm667_vm2, %v11801_v52 }
 0x33a   : > { %v12352_v36 = vadd.f32 %v9246_v6, %v9196_v53  ;;  %9547 = vmatprep.mubr.msk.f32.mxu0 %vm667_vm2, %v11801_v52  ;;  %v12358_v17 = vpop.f32.mrf.mxu1  ;;  %v5588_v52 = vld [vmem:[#allocation2 + $0xe0] sm:$0xff] }
 0x33b   : > { %13450 = vst [vmem:[#allocation96_spill] sm:$0xff] %v12358_v17  ;;  %v12360_v15 = vpop.f32.mrf.mxu0 }
 0x33c   : > { %v9211_v10 = vpop.f32.mrf.mxu1  ;;  %9510 = vmatmul.mubr.msk.f32.gmra.mxu1 %vm667_vm2, %v11807_v61 }
 0x33d   : > { %v9249_v24 = vpop.f32.mrf.mxu0  ;;  %9548 = vmatmul.mubr.msk.f32.gmra.mxu0 %vm667_vm2, %v11807_v61  ;;  %9512 = vmatprep.mubr.msk.f32.mxu1 %vm667_vm2, %v11813_v46 }
 0x33e   : > { %v12366_v8 = vadd.f32 %v9249_v24, %v9199_v30  ;;  %9550 = vmatprep.mubr.msk.f32.mxu0 %vm667_vm2, %v11813_v46  ;;  %v12372_v53 = vpop.f32.mrf.mxu1 }
 0x33f   : > { %13451 = vst [vmem:[#allocation90_spill] sm:$0xff] %v12372_v53  ;;  %v12374_v6 = vpop.f32.mrf.mxu0 }
 0x340   : > { %v9214_v17 = vpop.f32.mrf.mxu1  ;;  %9513 = vmatmul.mubr.msk.f32.gmra.mxu1 %vm667_vm2, %v5588_v52 }
 0x341   : > { %v9252_v14 = vpop.f32.mrf.mxu0  ;;  %9551 = vmatmul.mubr.msk.f32.gmra.mxu0 %vm667_vm2, %v5588_v52  ;;  %9567 = vmatprep.mubr.msk.f32.mxu1 %vm667_vm2, %v11704_v28 }
 0x342   : > { %v12378_v61 = vadd.f32 %v9252_v14, %v9202_v51  ;;  %9553 = vmatprep.mubr.msk.f32.mxu0 %vm667_vm2, %v11824_v31  ;;  %v12384_v46 = vpop.f32.mrf.mxu1 }
 0x343   : > { %13452 = vst [vmem:[#allocation32_spill] sm:$0xff] %v12384_v46  ;;  %v12386_v30 = vpop.f32.mrf.mxu0 }
 0x344   : > { %13453 = vst [vmem:[#allocation31_spill] sm:$0xff] %v12386_v30  ;;  %v9269_v53 = vpop.f32.mrf.mxu1  ;;  %9568 = vmatmul.mubr.msk.f32.vlgmr.msra.gmra.mxu1 %vm667_vm2, %v11714_v20 }
 0x345   : > { %v9255_v24 = vpop.f32.mrf.mxu0  ;;  %9554 = vmatmul.mubr.msk.f32.gmra.mxu0 %vm667_vm2, %v11832_v57  ;;  %v4633_v14 = vadd.f32 %v9269_v53, %v12235_v55  ;;  %9570 = vmatprep.mubr.msk.f32.mxu1 %vm667_vm2, %v11729_v23 }
 0x346   : > { %v12392_v51 = vadd.f32 %v9255_v24, %v9205_v43  ;;  %9556 = vmatprep.mubr.msk.f32.mxu0 %vm667_vm2, %v11840_v32  ;;  %v4473_v52 = vpop.f32.mrf.mxu1 }
 0x347   : > { %v12399_v28 = vpop.f32.mrf.mxu0  ;;  %v4632_v46 = vadd.f32 %v4473_v52, %v12241_v60 }
 0x348   : > { %v9272_v2 = vpop.f32.mrf.mxu1  ;;  %9571 = vmatmul.mubr.msk.f32.gmra.mxu1 %vm667_vm2, %v11739_v48 }
 0x349   : > { %v9258_v30 = vpop.f32.mrf.mxu0  ;;  %9557 = vmatmul.mubr.msk.f32.gmra.mxu0 %vm667_vm2, %v11848_v54  ;;  %v4635_v55 = vadd.f32 %v9272_v2, %v12247_v18  ;;  %9573 = vmatprep.mubr.msk.f32.mxu1 %vm667_vm2, %v11747_v40  ;;  %v12427_v40 = vld [vmem:[#allocation2 + $0x1d0] sm:$0xff] }
 0x34a   : > { %v12406_v20 = vadd.f32 %v9258_v30, %v9208_v11  ;;  %9559 = vmatprep.mubr.msk.f32.mxu0 %vm667_vm2, %v11856_v26  ;;  %v4483_v60 = vpop.f32.mrf.mxu1 }
 0x34b   : > { %v12413_v23 = vpop.f32.mrf.mxu0  ;;  %v4634_v43 = vadd.f32 %v4483_v60, %v12253_v29 }
 0x34c   : > { %v9275_v24 = vpop.f32.mrf.mxu1  ;;  %9574 = vmatmul.mubr.msk.f32.gmra.mxu1 %vm667_vm2, %v11755_v13 }
 0x34d   : > { %v9261_v53 = vpop.f32.mrf.mxu0  ;;  %9560 = vmatmul.mubr.msk.f32.gmra.mxu0 %vm667_vm2, %v11864_v37  ;;  %v4637_v18 = vadd.f32 %v9275_v24, %v12259_v47  ;;  %9576 = vmatprep.mubr.msk.f32.mxu1 %vm667_vm2, %v11763_v3 }
 0x34e   : > { %v12420_v48 = vadd.f32 %v9261_v53, %v9211_v10  ;;  %9562 = vmatprep.mubr.msk.f32.mxu0 %vm667_vm2, %v11872_v34  ;;  %v4493_v2 = vpop.f32.mrf.mxu1 }
 0x34f   : > { %v12429_v29 = vpop.f32.mrf.mxu0  ;;  %v4636_v11 = vadd.f32 %v4493_v2, %v12265_v12 }
 0x350   : > { %v9278_v52 = vpop.f32.mrf.mxu1  ;;  %9577 = vmatmul.mubr.msk.f32.gmra.mxu1 %vm667_vm2, %v12186_v41 }
 0x351   : > { %v9264_v30 = vpop.f32.mrf.mxu0  ;;  %9563 = vmatmul.mubr.msk.f32.gmra.mxu0 %vm667_vm2, %v12427_v40  ;;  %v4639_v47 = vadd.f32 %v9278_v52, %v12271_v44  ;;  %9579 = vmatprep.mubr.msk.f32.mxu1 %vm667_vm2, %v11921_v63 }
 0x352   : > { %v12436_v13 = vadd.f32 %v9264_v30, %v9214_v17  ;;  %v4503_v10 = vpop.f32.mrf.mxu1 }
 0x353   : > { %v12441_v3 = vpop.f32.mrf.mxu0  ;;  %v4638_v12 = vadd.f32 %v4503_v10, %v12277_v45 }
 0x354   : > { %v9281_v60 = vpop.f32.mrf.mxu1  ;;  %9580 = vmatmul.mubr.msk.f32.gmra.mxu1 %vm667_vm2, %v11927_v0 }
 0x355   : > { %v9319_v53 = vpop.f32.mrf.mxu0  ;;  %v4641_v24 = vadd.f32 %v9281_v60, %v12283_v42  ;;  %9582 = vmatprep.mubr.msk.f32.mxu1 %vm667_vm2, %v11939_v56 }
 0x356   : > { %v12447_v41 = vadd.f32 %v9319_v53, %v4633_v14  ;;  %v4513_v44 = vpop.f32.mrf.mxu1 }
 0x357   : > { %v4798_v17 = vpop.f32.mrf.mxu0  ;;  %v4640_v63 = vadd.f32 %v4513_v44, %v12291_v4 }
 0x358   : > { %v12452_v2 = vadd.f32 %v4798_v17, %v4632_v46  ;;  %v9284_v30 = vpop.f32.mrf.mxu1  ;;  %9583 = vmatmul.mubr.msk.f32.gmra.mxu1 %vm667_vm2, %v11946_v38 }
 0x359   : > { %v9322_v45 = vpop.f32.mrf.mxu0  ;;  %v4643_v0 = vadd.f32 %v9284_v30, %v12297_v22  ;;  %9585 = vmatprep.mubr.msk.f32.mxu1 %vm667_vm2, %v11952_v1 }
 0x35a   : > { %v12457_v52 = vadd.f32 %v9322_v45, %v4635_v55  ;;  %v4523_v42 = vpop.f32.mrf.mxu1 }
 0x35b   : > { %v4808_v56 = vpop.f32.mrf.mxu0  ;;  %v4642_v14 = vadd.f32 %v4523_v42, %v12305_v16 }
 0x35c   : > { %v12462_v10 = vadd.f32 %v4808_v56, %v4634_v43  ;;  %v9287_v4 = vpop.f32.mrf.mxu1  ;;  %9586 = vmatmul.mubr.msk.f32.gmra.mxu1 %vm667_vm2, %v11958_v33 }
 0x35d   : > { %v9325_v46 = vpop.f32.mrf.mxu0  ;;  %v4645_v38 = vadd.f32 %v9287_v4, %v12311_v35  ;;  %9588 = vmatprep.mubr.msk.f32.mxu1 %vm667_vm2, %v11964_v49 }
 0x35e   : > { %v12467_v60 = vadd.f32 %v9325_v46, %v4637_v18  ;;  %v4533_v22 = vpop.f32.mrf.mxu1 }
 0x35f   : > { %v4818_v1 = vpop.f32.mrf.mxu0  ;;  %v4644_v55 = vadd.f32 %v4533_v22, %v12319_v59 }
 0x360   : > { %v12472_v53 = vadd.f32 %v4818_v1, %v4636_v11  ;;  %v9290_v16 = vpop.f32.mrf.mxu1  ;;  %9589 = vmatmul.mubr.msk.f32.gmra.mxu1 %vm667_vm2, %v12221_v27  ;;  %v4263_v1 = vadd.f32 %v12346_v50, %v12289_v9  ;;  %v4273_v9 = vadd.f32 %v12360_v15, %v12303_v19  ;;  %v4283_v19 = vadd.f32 %v12374_v6, %v12317_v21  ;;  %v13459_v21 = vld [vmem:[#allocation31_spill] sm:$0xff] }
 0x361   : > { %v9328_v43 = vpop.f32.mrf.mxu0  ;;  %v4647_v33 = vadd.f32 %v9290_v16, %v12324_v62  ;;  %9591 = vmatprep.mubr.msk.f32.mxu1 %vm667_vm2, %v11824_v31 }
 0x362   : > { %v12477_v44 = vadd.f32 %v9328_v43, %v4639_v47  ;;  %v4543_v35 = vpop.f32.mrf.mxu1 }
 0x363   : > { %v4828_v49 = vpop.f32.mrf.mxu0  ;;  %v4646_v18 = vadd.f32 %v4543_v35, %v12332_v7 }
 0x364   : > { %v12482_v17 = vadd.f32 %v4828_v49, %v4638_v12  ;;  %v9293_v59 = vpop.f32.mrf.mxu1  ;;  %9592 = vmatmul.mubr.msk.f32.gmra.mxu1 %vm667_vm2, %v11832_v57 }
 0x365   : > { %v9331_v11 = vpop.f32.mrf.mxu0  ;;  %v4649_v27 = vadd.f32 %v9293_v59, %v12338_v58  ;;  %9594 = vmatprep.mubr.msk.f32.mxu1 %vm667_vm2, %v11840_v32  ;;  %v8039_v32 = vld [vmem:[%s13215_s5 + $0x8] sm:$0xff] }
 0x366   : > { %v12487_v30 = vadd.f32 %v9331_v11, %v4641_v24  ;;  %v4553_v62 = vpop.f32.mrf.mxu1  ;;  %9615 = vmatprep.subr.mxu0 %v8039_v32  ;;  %v13454_v59 = vld [vmem:[#allocation89_spill] sm:$0xff] }
 0x367   : > { %v4838_v31 = vpop.f32.mrf.mxu0  ;;  %9616 = vmatpush3.msra.mxu0 %v8039_v32  ;;  %v6194_v32 = vld [vmem:[#allocation2 + $0xe1] sm:$0xff] }
 0x368   : > { %v12491_v47 = vadd.f32 %v4838_v31, %v4640_v63  ;;  %v9296_v45 = vpop.f32.mrf.mxu1  ;;  %9595 = vmatmul.mubr.msk.f32.gmra.mxu1 %vm667_vm2, %v11848_v54 }
 0x369   : > { %v9334_v7 = vpop.f32.mrf.mxu0  ;;  %v4651_v12 = vadd.f32 %v9296_v45, %v12352_v36  ;;  %9597 = vmatprep.mubr.msk.f32.mxu1 %vm667_vm2, %v11856_v26  ;;  %v6581_v26 = vld [vmem:[%s13215_s5] sm:$0xff] }
 0x36a   : > { %v12496_v42 = vadd.f32 %v9334_v7, %v4643_v0  ;;  %v4563_v57 = vpop.f32.mrf.mxu1  ;;  %9629 = vmatprep.subr.mxu1 %v6581_v26  ;;  %v13456_v7 = vld [vmem:[#allocation15_spill] sm:$0xff] }
 0x36b   : > { %v4848_v58 = vpop.f32.mrf.mxu0  ;;  %9630 = vmatpush3.msra.mxu1 %v6581_v26  ;;  %v13458_v26 = vld [vmem:[#allocation46_spill] sm:$0xff] }
 0x36c   : > { %v12500_v24 = vadd.f32 %v4848_v58, %v4642_v14  ;;  %v9299_v63 = vpop.f32.mrf.mxu1  ;;  %9598 = vmatmul.mubr.msk.f32.gmra.mxu1 %vm667_vm2, %v11864_v37  ;;  %v13457_v58 = vld [vmem:[#allocation16_spill] sm:$0xff]  ;;  %v4293_v6 = vadd.f32 %v13459_v21, %v13458_v26 }
 0x36d   : > { %v9337_v56 = vpop.f32.mrf.mxu0  ;;  %v4653_v54 = vadd.f32 %v9299_v63, %v12366_v8  ;;  %9600 = vmatprep.mubr.msk.f32.mxu1 %vm667_vm2, %v11872_v34  ;;  %v13463_v21 = vld [vmem:[#allocation32_spill] sm:$0xff] }
 0x36e   : > { %v12508_v36 = vadd.f32 %v9337_v56, %v4645_v38  ;;  %v4573_v0 = vpop.f32.mrf.mxu1 }
 0x36f   : > { %v4858_v14 = vpop.f32.mrf.mxu0 }
 0x370   : > { %v12515_v4 = vadd.f32 %v4858_v14, %v4644_v55  ;;  %v9302_v37 = vpop.f32.mrf.mxu1  ;;  %9601 = vmatmul.mubr.msk.f32.gmra.mxu1 %vm667_vm2, %v12427_v40  ;;  %v4648_v40 = vadd.f32 %v4553_v62, %v4263_v1 }
 0x371   : > { %v9340_v46 = vpop.f32.mrf.mxu0  ;;  %v4655_v8 = vadd.f32 %v9302_v37, %v12378_v61  ;;  %9603 = vmatprep.mubr.msk.f32.mxu1 %vm667_vm2, %v12008_v25 }
 0x372   : > { %v12520_v38 = vadd.f32 %v9340_v46, %v4647_v33  ;;  %v4583_v34 = vpop.f32.mrf.mxu1 }
 0x373   : > { %v4868_v22 = vpop.f32.mrf.mxu0 }
 0x374   : > { %v12526_v55 = vadd.f32 %v4868_v22, %v4646_v18  ;;  %v9305_v16 = vpop.f32.mrf.mxu1  ;;  %9604 = vmatmul.mubr.msk.f32.gmra.mxu1 %vm667_vm2, %v12014_v39  ;;  %v4650_v39 = vadd.f32 %v4563_v57, %v4273_v9  ;;  %v4652_v57 = vadd.f32 %v4573_v0, %v4283_v19  ;;  %v4654_v0 = vadd.f32 %v4583_v34, %v4293_v6 }
 0x375   : > { %v9343_v43 = vpop.f32.mrf.mxu0  ;;  %v4657_v61 = vadd.f32 %v9305_v16, %v12392_v51  ;;  %9606 = vmatprep.mubr.msk.f32.mxu1 %vm667_vm2, %v12020_v5  ;;  %v13460_v16 = vld [vmem:[#allocation49_spill] sm:$0xff]  ;;  %v4333_v6 = vadd.f32 %v12441_v3, %v13463_v21 }
 0x376   : > { %v12531_v33 = vadd.f32 %v9343_v43, %v4649_v27  ;;  %v4593_v25 = vpop.f32.mrf.mxu1  ;;  %v13455_v27 = vld [vmem:[#allocation93_spill] sm:$0xff]  ;;  %v4303_v43 = vadd.f32 %v12399_v28, %v13460_v16 }
 0x377   : > { %v4878_v35 = vpop.f32.mrf.mxu0 }
 0x378   : > { %v12537_v50 = vadd.f32 %v4878_v35, %v4648_v40  ;;  %v9308_v49 = vpop.f32.mrf.mxu1  ;;  %9607 = vmatmul.mubr.msk.f32.gmra.mxu1 %vm667_vm2, %v13454_v59 }
 0x379   : > { %v9346_v18 = vpop.f32.mrf.mxu0  ;;  %v4659_v51 = vadd.f32 %v9308_v49, %v12406_v20  ;;  %9609 = vmatprep.mubr.msk.f32.mxu1 %vm667_vm2, %v13455_v27  ;;  %v4656_v49 = vadd.f32 %v4593_v25, %v4303_v43 }
 0x37a   : > { %v12542_v11 = vadd.f32 %v9346_v18, %v4651_v12  ;;  %v4603_v5 = vpop.f32.mrf.mxu1 }
 0x37b   : > { %v4888_v62 = vpop.f32.mrf.mxu0 }
 0x37c   : > { %v12548_v15 = vadd.f32 %v4888_v62, %v4650_v39  ;;  %v9311_v31 = vpop.f32.mrf.mxu1  ;;  %9610 = vmatmul.mubr.msk.f32.gmra.mxu1 %vm667_vm2, %v13456_v7  ;;  %v13462_v7 = vld [vmem:[#allocation90_spill] sm:$0xff] }
 0x37d   : > { %v9349_v45 = vpop.f32.mrf.mxu0  ;;  %v4661_v20 = vadd.f32 %v9311_v31, %v12420_v48  ;;  %9612 = vmatprep.mubr.msk.f32.mxu1 %vm667_vm2, %v13457_v58 }
 0x37e   : > { %v12553_v12 = vadd.f32 %v9349_v45, %v4653_v54  ;;  %v4613_v63 = vpop.f32.mrf.mxu1 }
 0x37f   : > { %v4898_v56 = vpop.f32.mrf.mxu0 }
 0x380   : > { %v12559_v14 = vadd.f32 %v4898_v56, %v4652_v57  ;;  %v9314_v37 = vpop.f32.mrf.mxu1  ;;  %9613 = vmatmul.mubr.msk.f32.gmra.mxu1 %vm667_vm2, %v6194_v32  ;;  %v4323_v57 = vadd.f32 %v12429_v29, %v13462_v7 }
 0x381   : > { %v9352_v46 = vpop.f32.mrf.mxu0  ;;  %v4663_v48 = vadd.f32 %v9314_v37, %v12436_v13  ;;  %v13461_v13 = vld [vmem:[#allocation96_spill] sm:$0xff] }
 0x382   : > { %v12563_v54 = vadd.f32 %v9352_v46, %v4655_v8  ;;  %v4623_v22 = vpop.f32.mrf.mxu1  ;;  %v4313_v8 = vadd.f32 %v12413_v23, %v13461_v13  ;;  %v4660_v56 = vadd.f32 %v4613_v63, %v4323_v57 }
 0x383   : > { %v4908_v1 = vpop.f32.mrf.mxu0 }
 0x384   : > { %v12567_v40 = vadd.f32 %v4908_v1, %v4654_v0  ;;  %v9369_v9 = vpop.f32.mrf.mxu1  ;;  %v4658_v31 = vadd.f32 %v4603_v5, %v4313_v8  ;;  %v4662_v0 = vadd.f32 %v4623_v22, %v4333_v6 }
 0x385   : > { %v9355_v35 = vpop.f32.mrf.mxu0  ;;  %v12572_v59 = vadd.f32 %v9369_v9, %v12447_v41 }
 0x386   : > { %v12569_v18 = vadd.f32 %v9355_v35, %v4657_v61  ;;  %v5089_v39 = vpop.f32.mrf.mxu1 }
 0x387   : > { %v4918_v34 = vpop.f32.mrf.mxu0  ;;  %v12579_v62 = vadd.f32 %v5089_v39, %v12452_v2 }
 0x388   : > { %v12576_v27 = vadd.f32 %v4918_v34, %v4656_v49  ;;  %v9372_v19 = vpop.f32.mrf.mxu1 }
 0x389   : > { %v9358_v28 = vpop.f32.mrf.mxu0  ;;  %v12584_v61 = vadd.f32 %v9372_v19, %v12457_v52 }
 0x38a   : > { %v12581_v45 = vadd.f32 %v9358_v28, %v4659_v51  ;;  %v5099_v25 = vpop.f32.mrf.mxu1 }
 0x38b   : > { %v4928_v41 = vpop.f32.mrf.mxu0  ;;  %v12591_v23 = vadd.f32 %v5099_v25, %v12462_v10 }
 0x38c   : > { %v12588_v58 = vadd.f32 %v4928_v41, %v4658_v31  ;;  %v9375_v32 = vpop.f32.mrf.mxu1 }
 0x38d   : > { %v9361_v2 = vpop.f32.mrf.mxu0  ;;  %v12596_v51 = vadd.f32 %v9375_v32, %v12467_v60 }
 0x38e   : > { %v12593_v26 = vadd.f32 %v9361_v2, %v4661_v20  ;;  %v5109_v5 = vpop.f32.mrf.mxu1 }
 0x38f   : > { %v4938_v52 = vpop.f32.mrf.mxu0  ;;  %v12603_v29 = vadd.f32 %v5109_v5, %v12472_v53 }
 0x390   : > { %v12600_v37 = vadd.f32 %v4938_v52, %v4660_v56  ;;  %v9378_v46 = vpop.f32.mrf.mxu1 }
 0x391   : > { %v9364_v10 = vpop.f32.mrf.mxu0  ;;  %v12608_v20 = vadd.f32 %v9378_v46, %v12477_v44 }
 0x392   : > { %v12605_v1 = vadd.f32 %v9364_v10, %v4663_v48  ;;  %v5119_v63 = vpop.f32.mrf.mxu1 }
 0x393   : > { %v4948_v60 = vpop.f32.mrf.mxu0  ;;  %v12613_v43 = vadd.f32 %v5119_v63, %v12482_v17 }
 0x394   : > { %v12610_v16 = vadd.f32 %v4948_v60, %v4662_v0  ;;  %v9381_v3 = vpop.f32.mrf.mxu1 }
 0x395   : > { %v12615_v35 = vpop.f32.mrf.mxu0  ;;  %v12618_v53 = vadd.f32 %v9381_v3, %v12487_v30 }
 0x396   : > { %v5129_v9 = vpop.f32.mrf.mxu1 }
 0x397   : > { %v12620_v22 = vpop.f32.mrf.mxu0  ;;  %v12623_v48 = vadd.f32 %v5129_v9, %v12491_v47 }
 0x398   : > { %v9384_v44 = vpop.f32.mrf.mxu1 }
 0x399   : > { %v12625_v49 = vpop.f32.mrf.mxu0  ;;  %v12628_v34 = vadd.f32 %v9384_v44, %v12496_v42 }
 0x39a   : > { %v5139_v17 = vpop.f32.mrf.mxu1 }
 0x39b   : > { %v12630_v39 = vpop.f32.mrf.mxu0  ;;  %v12633_v13 = vadd.f32 %v5139_v17, %v12500_v24 }
 0x39c   : > { %v9387_v30 = vpop.f32.mrf.mxu1 }
 0x39d   : > { %v12635_v8 = vpop.f32.mrf.mxu0  ;;  %v12638_v28 = vadd.f32 %v9387_v30, %v12508_v36  ;;  %v12704_v30 = vld [vmem:[%s13215_s5 + $0x18] sm:$0xff] }
 0x39e   : > { %v5149_v47 = vpop.f32.mrf.mxu1  ;;  %9657 = vmatprep.subr.mxu1 %v12704_v30 }
 0x39f   : > { %v12640_v19 = vpop.f32.mrf.mxu0  ;;  %v12643_v31 = vadd.f32 %v5149_v47, %v12515_v4 }
 0x3a0   : > { %v9390_v42 = vpop.f32.mrf.mxu1 }
 0x3a1   : > { %v12645_v41 = vpop.f32.mrf.mxu0  ;;  %v12648_v25 = vadd.f32 %v9390_v42, %v12520_v38 }
 0x3a2   : > { %v5159_v24 = vpop.f32.mrf.mxu1 }
 0x3a3   : > { %13464 = vst [vmem:[#allocation33_spill] sm:$0xff] %v12648_v25  ;;  %v12650_v7 = vpop.f32.mrf.mxu0  ;;  %v12653_v57 = vadd.f32 %v5159_v24, %v12526_v55 }
 0x3a4   : > { %v9393_v36 = vpop.f32.mrf.mxu1 }
 0x3a5   : > { %13465 = vst [vmem:[#allocation48_spill] sm:$0xff] %v12653_v57  ;;  %v12655_v2 = vpop.f32.mrf.mxu0  ;;  %v12658_v32 = vadd.f32 %v9393_v36, %v12531_v33 }
 0x3a6   : > { %v5169_v4 = vpop.f32.mrf.mxu1 }
 0x3a7   : > { %13466 = vst [vmem:[#allocation47_spill] sm:$0xff] %v12658_v32  ;;  %v12660_v56 = vpop.f32.mrf.mxu0  ;;  %v12663_v52 = vadd.f32 %v5169_v4, %v12537_v50  ;;  %v12680_v50 = vld [vmem:[%s13215_s5 + $0x10] sm:$0xff] }
 0x3a8   : > { %v9396_v38 = vpop.f32.mrf.mxu1  ;;  %13470 = vst [vmem:[#allocation50_spill] sm:$0xff] %v12680_v50  ;;  %9643 = vmatprep.subr.mxu0 %v12680_v50 }
 0x3a9   : > { %13467 = vst [vmem:[#allocation91_spill] sm:$0xff] %v12663_v52  ;;  %v12665_v5 = vpop.f32.mrf.mxu0  ;;  %v12668_v21 = vadd.f32 %v9396_v38, %v12542_v11 }
 0x3aa   : > { %v5179_v55 = vpop.f32.mrf.mxu1 }
 0x3ab   : > { %13468 = vst [vmem:[#allocation17_spill] sm:$0xff] %v12668_v21  ;;  %v12670_v6 = vpop.f32.mrf.mxu0  ;;  %v12673_v10 = vadd.f32 %v5179_v55, %v12548_v15 }
 0x3ac   : > { %v9399_v33 = vpop.f32.mrf.mxu1 }
 0x3ad   : > { %13469 = vst [vmem:[#allocation18_spill] sm:$0xff] %v12673_v10  ;;  %v12675_v46 = vpop.f32.mrf.mxu0  ;;  %v12683_v0 = vadd.f32 %v9399_v33, %v12553_v12 }
 0x3ae   : > { %v5189_v11 = vpop.f32.mrf.mxu1 }
 0x3af   : > { %13471 = vst [vmem:[#allocation53_spill] sm:$0xff] %v12683_v0  ;;  %v12686_v60 = vpop.f32.mrf.mxu0  ;;  %v12689_v63 = vadd.f32 %v5189_v11, %v12559_v14 }
 0x3b0   : > { %v9402_v15 = vpop.f32.mrf.mxu1 }
 0x3b1   : > { %13472 = vst [vmem:[#allocation92_spill] sm:$0xff] %v12689_v63  ;;  %v12691_v3 = vpop.f32.mrf.mxu0  ;;  %v12694_v9 = vadd.f32 %v9402_v15, %v12563_v54 }
 0x3b2   : > { %13473 = vst [vmem:[#allocation101_spill] sm:$0xff] %v12691_v3  ;;  %v5199_v44 = vpop.f32.mrf.mxu1 }
 0x3b3   : > { %13474 = vst [vmem:[#allocation34_spill] sm:$0xff] %v12694_v9  ;;  %v12696_v17 = vpop.f32.mrf.mxu0  ;;  %v12699_v12 = vadd.f32 %v5199_v44, %v12567_v40 }
 0x3b4   : > { %13475 = vst [vmem:[#allocation35_spill] sm:$0xff] %v12696_v17  ;;  %v9405_v47 = vpop.f32.mrf.mxu1 }
 0x3b5   : > { %13476 = vst [vmem:[#allocation52_spill] sm:$0xff] %v12699_v12  ;;  %v12706_v14 = vpop.f32.mrf.mxu0  ;;  %v12710_v42 = vadd.f32 %v9405_v47, %v12569_v18 }
 0x3b6   : > { %13477 = vst [vmem:[#allocation51_spill] sm:$0xff] %v12706_v14  ;;  %v5209_v54 = vpop.f32.mrf.mxu1 }
 0x3b7   : > { %13478 = vst [vmem:[#allocation94_spill] sm:$0xff] %v12710_v42  ;;  %v12712_v24 = vpop.f32.mrf.mxu0  ;;  %v12715_v36 = vadd.f32 %v5209_v54, %v12576_v27 }
 0x3b8   : > { %13479 = vst [vmem:[#allocation104_spill] sm:$0xff] %v12712_v24  ;;  %v9408_v40 = vpop.f32.mrf.mxu1 }
 0x3b9   : > { %13480 = vst [vmem:[#allocation19_spill] sm:$0xff] %v12715_v36  ;;  %v12717_v4 = vpop.f32.mrf.mxu0  ;;  %v12720_v38 = vadd.f32 %v9408_v40, %v12581_v45 }
 0x3ba   : > { %13481 = vst [vmem:[#allocation20_spill] sm:$0xff] %v12717_v4  ;;  %v5219_v55 = vpop.f32.mrf.mxu1 }
 0x3bb   : > { %13482 = vst [vmem:[#allocation54_spill] sm:$0xff] %v12720_v38  ;;  %v12722_v33 = vpop.f32.mrf.mxu0  ;;  %v12725_v11 = vadd.f32 %v5219_v55, %v12588_v58 }
 0x3bc   : > { %13483 = vst [vmem:[#allocation57_spill] sm:$0xff] %v12722_v33  ;;  %v9411_v18 = vpop.f32.mrf.mxu1 }
 0x3bd   : > { %13484 = vst [vmem:[#allocation107_spill] sm:$0xff] %v12725_v11  ;;  %v12727_v15 = vpop.f32.mrf.mxu0  ;;  %v12730_v44 = vadd.f32 %v9411_v18, %v12593_v26 }
 0x3be   : > { %13485 = vst [vmem:[#allocation95_spill] sm:$0xff] %v12727_v15  ;;  %v5229_v27 = vpop.f32.mrf.mxu1 }
 0x3bf   : > { %13486 = vst [vmem:[#allocation36_spill] sm:$0xff] %v12730_v44  ;;  %v12732_v47 = vpop.f32.mrf.mxu0  ;;  %v12735_v54 = vadd.f32 %v5229_v27, %v12600_v37 }
 0x3c0   : > { %13487 = vst [vmem:[#allocation37_spill] sm:$0xff] %v12732_v47  ;;  %v9414_v45 = vpop.f32.mrf.mxu1 }
 0x3c1   : > { %13488 = vst [vmem:[#allocation56_spill] sm:$0xff] %v12735_v54  ;;  %v12737_v40 = vpop.f32.mrf.mxu0  ;;  %v12740_v38 = vadd.f32 %v9414_v45, %v12605_v1 }
 0x3c2   : > { %13489 = vst [vmem:[#allocation55_spill] sm:$0xff] %v12737_v40  ;;  %v5239_v58 = vpop.f32.mrf.mxu1 }
 0x3c3   : > { %13490 = vst [vmem:[#allocation97_spill] sm:$0xff] %v12740_v38  ;;  %v12742_v55 = vpop.f32.mrf.mxu0  ;;  %v12745_v11 = vadd.f32 %v5239_v58, %v12610_v16 }
 0x3c4   : > { %13491 = vst [vmem:[#allocation21_spill] sm:$0xff] %v12742_v55  ;;  %v9469_v18 = vpop.f32.mrf.mxu1 }
 0x3c5   : > { %13492 = vst [vmem:[#allocation22_spill] sm:$0xff] %v12745_v11  ;;  %v12747_v26 = vpop.f32.mrf.mxu0 }
 0x3c6   : > { %13493 = vst [vmem:[#allocation58_spill] sm:$0xff] %v12747_v26  ;;  %v5705_v36 = vpop.f32.mrf.mxu1 }
 0x3c7   : > { %v12749_v44 = vpop.f32.mrf.mxu0 }
 0x3c8   : > { %13494 = vst [vmem:[#allocation61_spill] sm:$0xff] %v12749_v44  ;;  %v9472_v27 = vpop.f32.mrf.mxu1 }
 0x3c9   : > { %v12751_v37 = vpop.f32.mrf.mxu0 }
 0x3ca   : > { %13495 = vst [vmem:[#allocation98_spill] sm:$0xff] %v12751_v37  ;;  %v12755_v42 = vpop.f32.mrf.mxu1 }
 0x3cb   : > { %v12753_v54 = vpop.f32.mrf.mxu0 }
 0x3cc   : > { %13496 = vst [vmem:[#allocation113_spill] sm:$0xff] %v12753_v54  ;;  %v12759_v45 = vpop.f32.mrf.mxu1 }
 0x3cd   : > { %v12757_v1 = vpop.f32.mrf.mxu0 }
 0x3ce   : > { %13497 = vst [vmem:[#allocation38_spill] sm:$0xff] %v12757_v1  ;;  %v12763_v16 = vpop.f32.mrf.mxu1 }
 0x3cf   : > { %v12761_v38 = vpop.f32.mrf.mxu0 }
 0x3d0   : > { %13498 = vst [vmem:[#allocation39_spill] sm:$0xff] %v12761_v38  ;;  %v12767_v11 = vpop.f32.mrf.mxu1 }
 0x3d1   : > { %v12765_v58 = vpop.f32.mrf.mxu0 }
 0x3d2   : > { %13499 = vst [vmem:[#allocation60_spill] sm:$0xff] %v12765_v58  ;;  %v12771_v37 = vpop.f32.mrf.mxu1 }
 0x3d3   : > { %v12769_v44 = vpop.f32.mrf.mxu0 }
 0x3d4   : > { %13500 = vst [vmem:[#allocation59_spill] sm:$0xff] %v12769_v44  ;;  %v12773_v26 = vpop.f32.mrf.mxu1 }
 0x3d5   : > { %v9519_v54 = vpop.f32.mrf.mxu0 }
 0x3d6   : > { %v12775_v55 = vpop.f32.mrf.mxu1 }
 0x3d7   : > { %v5996_v1 = vpop.f32.mrf.mxu0 }
 0x3d8   : > { %v12777_v12 = vpop.f32.mrf.mxu1 }
 0x3d9   : > { %v9522_v40 = vpop.f32.mrf.mxu0 }
 0x3da   : > { %v12779_v38 = vpop.f32.mrf.mxu1 }
 0x3db   : > { %v6006_v9 = vpop.f32.mrf.mxu0 }
 0x3dc   : > { %v12781_v47 = vpop.f32.mrf.mxu1 }
 0x3dd   : > { %v12783_v58 = vpop.f32.mrf.mxu0 }
 0x3de   : > { %v12785_v63 = vpop.f32.mrf.mxu1 }
 0x3df   : > { %13501 = vst [vmem:[#allocation99_spill] sm:$0xff] %v12785_v63  ;;  %v12787_v44 = vpop.f32.mrf.mxu0 }
 0x3e0   : > { %v12789_v15 = vpop.f32.mrf.mxu1 }
 0x3e1   : > { %13502 = vst [vmem:[#allocation23_spill] sm:$0xff] %v12789_v15  ;;  %v12791_v0 = vpop.f32.mrf.mxu0 }
 0x3e2   : > { %v12793_v33 = vpop.f32.mrf.mxu1 }
 0x3e3   : > { %13503 = vst [vmem:[#allocation24_spill] sm:$0xff] %v12793_v33  ;;  %v12795_v10 = vpop.f32.mrf.mxu0 }
 0x3e4   : > { %v12797_v4 = vpop.f32.mrf.mxu1 }
 0x3e5   : > { %13504 = vst [vmem:[#allocation62_spill] sm:$0xff] %v12797_v4  ;;  %v12799_v21 = vpop.f32.mrf.mxu0 }
 0x3e6   : > { %v12801_v24 = vpop.f32.mrf.mxu1 }
 0x3e7   : > { %13505 = vst [vmem:[#allocation65_spill] sm:$0xff] %v12801_v24  ;;  %v12803_v52 = vpop.f32.mrf.mxu0 }
 0x3e8   : > { %v12805_v50 = vpop.f32.mrf.mxu1 }
 0x3e9   : > { %13506 = vst [vmem:[#allocation100_spill] sm:$0xff] %v12805_v50  ;;  %v12807_v14 = vpop.f32.mrf.mxu0 }
 0x3ea   : > { %v12809_v32 = vpop.f32.mrf.mxu1 }
 0x3eb   : > { %13507 = vst [vmem:[#allocation40_spill] sm:$0xff] %v12809_v32  ;;  %v12813_v17 = vpop.f32.mrf.mxu0 }
 0x3ec   : > { %v12811_v15 = vpop.f32.mrf.mxu1  ;;  %13509 = vst [vmem:[#allocation64_spill] sm:$0xff] %v12813_v17 }
 0x3ed   : > { %13508 = vst [vmem:[#allocation41_spill] sm:$0xff] %v12811_v15  ;;  %v12819_v4 = vpop.f32.mrf.mxu0 }
 0x3ee   : > { %v12815_v33 = vpop.f32.mrf.mxu1  ;;  %13512 = vst [vmem:[#allocation25_spill] sm:$0xff] %v12819_v4 }
 0x3ef   : > { %13510 = vst [vmem:[#allocation63_spill] sm:$0xff] %v12815_v33  ;;  %v12825_v3 = vpop.f32.mrf.mxu0 }
 0x3f0   : > { %v12817_v57 = vpop.f32.mrf.mxu1  ;;  %13515 = vst [vmem:[#allocation69_spill] sm:$0xff] %v12825_v3 }
 0x3f1   : > { %13511 = vst [vmem:[#allocation102_spill] sm:$0xff] %v12817_v57  ;;  %v12831_v32 = vpop.f32.mrf.mxu0 }
 0x3f2   : > { %v12821_v63 = vpop.f32.mrf.mxu1  ;;  %13518 = vst [vmem:[#allocation12_spill] sm:$0xff] %v12831_v32 }
 0x3f3   : > { %13513 = vst [vmem:[#allocation26_spill] sm:$0xff] %v12821_v63  ;;  %v12837_v33 = vpop.f32.mrf.mxu0 }
 0x3f4   : > { %v12823_v24 = vpop.f32.mrf.mxu1  ;;  %13521 = vst [vmem:[#allocation105_spill] sm:$0xff] %v12837_v33 }
 0x3f5   : > { %13514 = vst [vmem:[#allocation66_spill] sm:$0xff] %v12823_v24  ;;  %v5540_v24 = vadd.f32 %v12615_v35, %v12572_v59  ;;  %v12847_v3 = vpop.f32.mrf.mxu0  ;;  %v12856_v59 = vld [vmem:[%s13214_s4] ss:$0 sm:$0xff]  ;;  %v5541_v35 = vadd.f32 %v12630_v39, %v12591_v23 }
 0x3f6   : > { %v12827_v50 = vpop.f32.mrf.mxu1 }
 0x3f7   : > { %13516 = vst [vmem:[#allocation103_spill] sm:$0xff] %v12827_v50  ;;  %v5539_v50 = vadd.f32 %v12620_v22, %v12579_v62 }
 0x3f8   : > { %v12829_v25 = vpop.f32.mrf.mxu1 }
 0x3f9   : > { %13517 = vst [vmem:[#allocation42_spill] sm:$0xff] %v12829_v25  ;;  %v5865_v25 = vadd.f32 %v9469_v18, %v5540_v24  ;;  %v5544_v18 = vadd.f32 %v12635_v8, %v12596_v51  ;;  %v5546_v8 = vadd.f32 %v12645_v41, %v12608_v20  ;;  %v5545_v20 = vadd.f32 %v12650_v7, %v12613_v43 }
 0x3fa   : > { %v12833_v15 = vpop.f32.mrf.mxu1 }
 0x3fb   : > { %13519 = vst [vmem:[#allocation68_spill] sm:$0xff] %v12833_v15  ;;  %v5864_v15 = vadd.f32 %v5705_v36, %v5539_v50  ;;  %v6156_v33 = vadd.f32 %v9519_v54, %v5865_v25  ;;  %v5543_v54 = vadd.f32 %v12640_v19, %v12603_v29  ;;  %v5869_v23 = vadd.f32 %v12759_v45, %v5544_v18 }
 0x3fc   : > { %v12835_v17 = vpop.f32.mrf.mxu1  ;;  %v5871_v41 = vadd.f32 %v12767_v11, %v5546_v8 }
 0x3fd   : > { %13520 = vst [vmem:[#allocation67_spill] sm:$0xff] %v12835_v17  ;;  %v5542_v17 = vadd.f32 %v12625_v49, %v12584_v61  ;;  %v6155_v22 = vadd.f32 %v5996_v1, %v5864_v15  ;;  %v5866_v49 = vadd.f32 %v12755_v42, %v5541_v35  ;;  %v5868_v42 = vadd.f32 %v12763_v16, %v5543_v54 }
 0x3fe   : > { %v12839_v57 = vpop.f32.mrf.mxu1  ;;  %v6162_v11 = vadd.f32 %v12791_v0, %v5871_v41  ;;  %v13526_v41 = vld [vmem:[#allocation99_spill] sm:$0xff] }
 0x3ff   : > { %v5867_v62 = vadd.f32 %v9472_v27, %v5542_v17  ;;  %v6157_v17 = vadd.f32 %v6006_v9, %v5866_v49  ;;  %v6160_v27 = vadd.f32 %v12783_v58, %v5869_v23  ;;  %v6159_v45 = vadd.f32 %v12787_v44, %v5868_v42 }
 0x400   : > { %v12843_v63 = vpop.f32.mrf.mxu1  ;;  %v5549_v23 = vadd.f32 %v12670_v6, %v12633_v13  ;;  %v5551_v42 = vadd.f32 %v12686_v60, %v12643_v31 }
 0x401   : > { %v6158_v25 = vadd.f32 %v9522_v40, %v5867_v62  ;;  %v5548_v62 = vadd.f32 %v12655_v2, %v12618_v53  ;;  %v5547_v53 = vadd.f32 %v12660_v56, %v12623_v48 }
 0x402   : > { %v12849_v32 = vpop.f32.mrf.mxu1 }
 0x403   : > { %13522 = vst [vmem:[#allocation27_spill] sm:$0xff] %v12849_v32  ;;  %v12863_v32 = vpop.f32.mrf.mxu0  ;;  %v5873_v2 = vadd.f32 %v12773_v26, %v5548_v62  ;;  %v13528_v62 = vld [vmem:[#allocation48_spill] sm:$0xff] }
 0x404   : > { %v9569_v4 = vpop.f32.mrf.mxu1 }
 0x405   : > { %v6447_v24 = vadd.f32 %v9569_v4, %v6156_v33  ;;  %v12874_v15 = vpop.f32.mrf.mxu0 }
 0x406   : > { %v6287_v61 = vpop.f32.mrf.mxu1 }
 0x407   : > { %v6486_v50 = vadd.f32 %v12856_v59, %v6447_v24  ;;  %v6446_v36 = vadd.f32 %v6287_v61, %v6155_v22  ;;  %v5870_v22 = vadd.f32 %v12771_v37, %v5545_v20  ;;  %v12893_v43 = vpop.f32.mrf.mxu0 }
 0x408   : > { %v9572_v39 = vpop.f32.mrf.mxu1 }
 0x409   : > { %v6518_v4 = vmax.f32 %v6486_v50, 0.0  ;;  %v6485_v33 = vadd.f32 %v12856_v59, %v6446_v36  ;;  %v6449_v51 = vadd.f32 %v9572_v39, %v6158_v25  ;;  %v6161_v61 = vadd.f32 %v12795_v10, %v5870_v22  ;;  %v12912_v48 = vpop.f32.mrf.mxu0  ;;  %v13529_v22 = vld [vmem:[#allocation35_spill] sm:$0xff] }
 0x40a   : > { %v6297_v40 = vpop.f32.mrf.mxu1  ;;  %v5872_v50 = vadd.f32 %v12775_v55, %v5547_v53  ;;  %v6164_v10 = vadd.f32 %v12799_v21, %v5873_v2 }
 0x40b   : > { %6550 = vst.msk [vmem:[%s12877_s10 + $0x8] sm:$0xff] %vm667_vm2, %v6518_v4  ;;  %v6517_v29 = vmax.f32 %v6485_v33, 0.0  ;;  %v6488_v19 = vadd.f32 %v12856_v59, %v6449_v51  ;;  %v6448_v9 = vadd.f32 %v6297_v40, %v6157_v17  ;;  %v5874_v33 = vadd.f32 %v12779_v38, %v5549_v23  ;;  %v12930_v13 = vpop.f32.mrf.mxu0  ;;  %v13523_v38 = vld [vmem:[#allocation64_spill] sm:$0xff] }
 0x40c   : > { %v9575_v1 = vpop.f32.mrf.mxu1  ;;  %v6163_v55 = vadd.f32 %v12803_v52, %v5872_v50 }
 0x40d   : > { %6549 = vst.msk [vmem:[%s12877_s10] sm:$0xff] %vm667_vm2, %v6517_v29  ;;  %v6520_v16 = vmax.f32 %v6488_v19, 0.0  ;;  %v6487_v58 = vadd.f32 %v12856_v59, %v6448_v9  ;;  %v6451_v35 = vadd.f32 %v9575_v1, %v6160_v27  ;;  %9631 = vmatprep.mubr.msk.f32.mxu1 %vm667_vm2, %v6517_v29  ;;  %v6165_v40 = vadd.f32 %v13523_v38, %v5874_v33  ;;  %v13524_v19 = vld [vmem:[#allocation33_spill] sm:$0xff]  ;;  %v12948_v31 = vpop.f32.mrf.mxu0 }
 0x40e   : > { %v6307_v7 = vpop.f32.mrf.mxu1  ;;  %9632 = vmatmul.mubr.msk.f32.vlgmr.msra.gmra.mxu1 %vm667_vm2, %v6518_v4  ;;  %v5552_v4 = vadd.f32 %v12675_v46, %v12638_v28  ;;  %v13525_v9 = vld [vmem:[#allocation101_spill] sm:$0xff]  ;;  %v5876_v1 = vadd.f32 %v13526_v41, %v5551_v42  ;;  %v13544_v41 = vld [vmem:[#allocation18_spill] sm:$0xff] }
 0x40f   : > { %6552 = vst.msk [vmem:[%s12877_s10 + $0x18] sm:$0xff] %vm667_vm2, %v6520_v16  ;;  %v6519_v44 = vmax.f32 %v6487_v58, 0.0  ;;  %v6490_v24 = vadd.f32 %v12856_v59, %v6451_v35  ;;  %v6450_v18 = vadd.f32 %v6307_v7, %v6159_v45  ;;  %9658 = vmatpush3.msra.mxu1 %v12704_v30  ;;  %v5550_v30 = vadd.f32 %v12665_v5, %v12628_v34  ;;  %v13541_v42 = vld [vmem:[#allocation17_spill] sm:$0xff] }
 0x410   : > { %v9578_v37 = vpop.f32.mrf.mxu1  ;;  %v5877_v28 = vadd.f32 %v12781_v47, %v5552_v4  ;;  %v5554_v20 = vadd.f32 %v13525_v9, %v13524_v19  ;;  %v13527_v47 = vld [vmem:[#allocation25_spill] sm:$0xff]  ;;  %v5553_v7 = vadd.f32 %v13529_v22, %v13528_v62 }
 0x411   : > { %6551 = vst.msk [vmem:[%s12877_s10 + $0x10] sm:$0xff] %vm667_vm2, %v6519_v44  ;;  %v6522_v0 = vmax.f32 %v6490_v24, 0.0  ;;  %v6489_v49 = vadd.f32 %v12856_v59, %v6450_v18  ;;  %v6453_v25 = vadd.f32 %v9578_v37, %v6162_v11  ;;  %9634 = vmatprep.mubr.msk.f32.mxu1 %vm667_vm2, %v6519_v44  ;;  %v5875_v34 = vadd.f32 %v12777_v12, %v5550_v30  ;;  %v13530_v11 = vld [vmem:[#allocation23_spill] sm:$0xff]  ;;  %v13531_v18 = vld [vmem:[#allocation69_spill] sm:$0xff]  ;;  %v13534_v30 = vld [vmem:[#allocation24_spill] sm:$0xff] }
 0x412   : > { %v6317_v56 = vpop.f32.mrf.mxu1  ;;  %9635 = vmatmul.mubr.msk.f32.gmra.mxu1 %vm667_vm2, %v6520_v16  ;;  %v6168_v45 = vadd.f32 %v13527_v47, %v5877_v28  ;;  %v5879_v44 = vadd.f32 %v13530_v11, %v5554_v20  ;;  %v6167_v53 = vadd.f32 %v13531_v18, %v5876_v1  ;;  %v5878_v50 = vadd.f32 %v13534_v30, %v5553_v7  ;;  %v13542_v28 = vld [vmem:[#allocation20_spill] sm:$0xff]  ;;  %v13543_v38 = vld [vmem:[#allocation65_spill] sm:$0xff]  ;;  %v13548_v7 = vld [vmem:[#allocation95_spill] sm:$0xff] }
 0x413   : > { %6554 = vst.msk [vmem:[%s12877_s10 + $0x28] sm:$0xff] %vm667_vm2, %v6522_v0  ;;  %v6521_v26 = vmax.f32 %v6489_v49, 0.0  ;;  %v6492_v36 = vadd.f32 %v12856_v59, %v6453_v25  ;;  %v6452_v54 = vadd.f32 %v6317_v56, %v6161_v61  ;;  %v6166_v52 = vadd.f32 %v12807_v14, %v5875_v34  ;;  %v13533_v49 = vld [vmem:[#allocation51_spill] sm:$0xff]  ;;  %v12966_v56 = vpop.f32.mrf.mxu0  ;;  %v13545_v1 = vld [vmem:[#allocation57_spill] sm:$0xff]  ;;  %v13546_v47 = vld [vmem:[#allocation100_spill] sm:$0xff] }
 0x414   : > { %v9581_v5 = vpop.f32.mrf.mxu1  ;;  %v13547_v22 = vld [vmem:[#allocation53_spill] sm:$0xff] }
 0x415   : > { %6553 = vst.msk [vmem:[%s12877_s10 + $0x20] sm:$0xff] %vm667_vm2, %v6521_v26  ;;  %v6524_v39 = vmax.f32 %v6492_v36, 0.0  ;;  %v6491_v21 = vadd.f32 %v12856_v59, %v6452_v54  ;;  %v6455_v17 = vadd.f32 %v9581_v5, %v6164_v10  ;;  %9637 = vmatprep.mubr.msk.f32.mxu1 %vm667_vm2, %v6521_v26  ;;  %v13535_v26 = vld [vmem:[#allocation12_spill] sm:$0xff]  ;;  %v13536_v5 = vld [vmem:[#allocation50_spill] sm:$0xff]  ;;  %v5560_v11 = vadd.f32 %v13548_v7, %v13547_v22  ;;  %v13552_v30 = vld [vmem:[#allocation41_spill] sm:$0xff] }
 0x416   : > { %v6327_v6 = vpop.f32.mrf.mxu1  ;;  %9638 = vmatmul.mubr.msk.f32.gmra.mxu1 %vm667_vm2, %v6522_v0  ;;  %v13532_v0 = vld [vmem:[#allocation47_spill] sm:$0xff]  ;;  %v6170_v36 = vadd.f32 %v13535_v26, %v5879_v44  ;;  %v13549_v44 = vld [vmem:[#allocation40_spill] sm:$0xff] }
 0x417   : > { %6556 = vst.msk [vmem:[%s12877_s10 + $0x38] sm:$0xff] %vm667_vm2, %v6524_v39  ;;  %v6523_v12 = vmax.f32 %v6491_v21, 0.0  ;;  %v6494_v51 = vadd.f32 %v12856_v59, %v6455_v17  ;;  %v6454_v8 = vadd.f32 %v6327_v6, %v6163_v55  ;;  %v5556_v25 = vadd.f32 %v13533_v49, %v13532_v0  ;;  %v13537_v55 = vld [vmem:[#allocation91_spill] sm:$0xff]  ;;  %v13539_v17 = vld [vmem:[#allocation62_spill] sm:$0xff]  ;;  %v13540_v6 = vld [vmem:[#allocation105_spill] sm:$0xff] }
 0x418   : > { %v9584_v46 = vpop.f32.mrf.mxu1  ;;  %v13550_v0 = vld [vmem:[#allocation92_spill] sm:$0xff]  ;;  %v13551_v49 = vld [vmem:[#allocation37_spill] sm:$0xff] }
 0x419   : > { %6555 = vst.msk [vmem:[%s12877_s10 + $0x30] sm:$0xff] %vm667_vm2, %v6523_v12  ;;  %v6526_v27 = vmax.f32 %v6494_v51, 0.0  ;;  %v6493_v14 = vadd.f32 %v12856_v59, %v6454_v8  ;;  %v6457_v29 = vadd.f32 %v9584_v46, %v6166_v52  ;;  %9640 = vmatprep.mubr.msk.f32.mxu1 %vm667_vm2, %v6523_v12  ;;  %v5881_v4 = vadd.f32 %v13539_v17, %v5556_v25 }
 0x41a   : > { %v6337_v60 = vpop.f32.mrf.mxu1  ;;  %9641 = vmatmul.mubr.msk.f32.gmra.mxu1 %vm667_vm2, %v6524_v39  ;;  %v13538_v39 = vld [vmem:[#allocation104_spill] sm:$0xff]  ;;  %v6169_v52 = vadd.f32 %v13540_v6, %v5878_v50  ;;  %v5558_v46 = vadd.f32 %v13542_v28, %v13541_v42  ;;  %v5559_v25 = vadd.f32 %v13551_v49, %v13550_v0  ;;  %v5885_v50 = vadd.f32 %v13552_v30, %v5560_v11 }
 0x41b   : > { %6558 = vst.msk [vmem:[%s12877_s10 + $0x48] sm:$0xff] %vm667_vm2, %v6526_v27  ;;  %v6525_v16 = vmax.f32 %v6493_v14, 0.0  ;;  %v6496_v58 = vadd.f32 %v12856_v59, %v6457_v29  ;;  %v6456_v35 = vadd.f32 %v6337_v60, %v6165_v40  ;;  %v5555_v21 = vadd.f32 %v13538_v39, %v13537_v55  ;;  %v13555_v55 = vld [vmem:[#allocation63_spill] sm:$0xff] }
 0x41c   : > { %v9587_v24 = vpop.f32.mrf.mxu1  ;;  %v6172_v29 = vadd.f32 %v12847_v3, %v5881_v4  ;;  %v5557_v60 = vadd.f32 %v13545_v1, %v13544_v41  ;;  %v5884_v39 = vadd.f32 %v13555_v55, %v5559_v25  ;;  %v13571_v55 = vld [vmem:[#allocation36_spill] sm:$0xff] }
 0x41d   : > { %6557 = vst.msk [vmem:[%s12877_s10 + $0x40] sm:$0xff] %vm667_vm2, %v6525_v16  ;;  %v6528_v2 = vmax.f32 %v6496_v58, 0.0  ;;  %v6495_v37 = vadd.f32 %v12856_v59, %v6456_v35  ;;  %v6459_v61 = vadd.f32 %v9587_v24, %v6168_v45  ;;  %9617 = vmatprep.mubr.msk.f32.mxu0 %vm667_vm2, %v6525_v16  ;;  %v5880_v40 = vadd.f32 %v13543_v38, %v5555_v21 }
 0x41e   : > { %v6347_v10 = vpop.f32.mrf.mxu1  ;;  %9618 = vmatmul.mubr.msk.f32.vlgmr.msra.gmra.mxu0 %vm667_vm2, %v6526_v27  ;;  %v12985_v27 = vpop.f32.mrf.mxu0  ;;  %v5883_v45 = vadd.f32 %v13546_v47, %v5558_v46  ;;  %v5882_v24 = vadd.f32 %v13549_v44, %v5557_v60  ;;  %v6175_v46 = vadd.f32 %v12930_v13, %v5884_v39  ;;  %v13572_v39 = vld [vmem:[#allocation38_spill] sm:$0xff] }
 0x41f   : > { %6560 = vst.msk [vmem:[%s12877_s10 + $0x58] sm:$0xff] %vm667_vm2, %v6528_v2  ;;  %v6527_v54 = vmax.f32 %v6495_v37, 0.0  ;;  %v6498_v23 = vadd.f32 %v12856_v59, %v6459_v61  ;;  %v6458_v34 = vadd.f32 %v6347_v10, %v6167_v53  ;;  %9644 = vmatpush3.msra.mxu0 %v13536_v5  ;;  %v6171_v58 = vadd.f32 %v12863_v32, %v5880_v40 }
 0x420   : > { %v9590_v33 = vpop.f32.mrf.mxu1  ;;  %v13003_v18 = vpop.f32.mrf.mxu0  ;;  %v6174_v32 = vadd.f32 %v12874_v15, %v5883_v45  ;;  %v6173_v26 = vadd.f32 %v12893_v43, %v5882_v24  ;;  %v6176_v43 = vadd.f32 %v12912_v48, %v5885_v50  ;;  %v13565_v24 = vld [vmem:[#allocation54_spill] sm:$0xff]  ;;  %v13568_v50 = vld [vmem:[#allocation107_spill] sm:$0xff] }
 0x421   : > { %6559 = vst.msk [vmem:[%s12877_s10 + $0x50] sm:$0xff] %vm667_vm2, %v6527_v54  ;;  %v6530_v12 = vmax.f32 %v6498_v23, 0.0  ;;  %v6497_v51 = vadd.f32 %v12856_v59, %v6458_v34  ;;  %v6461_v8 = vadd.f32 %v9590_v33, %v6170_v36  ;;  %9620 = vmatprep.mubr.msk.f32.mxu0 %vm667_vm2, %v6527_v54  ;;  %v13553_v23 = vld [vmem:[#allocation34_spill] sm:$0xff]  ;;  %v13554_v34 = vld [vmem:[#allocation55_spill] sm:$0xff] }
 0x422   : > { %v6357_v14 = vpop.f32.mrf.mxu1  ;;  %9621 = vmatmul.mubr.msk.f32.gmra.mxu0 %vm667_vm2, %v6528_v2  ;;  %v5562_v5 = vadd.f32 %v13554_v34, %v13553_v23  ;;  %v9558_v21 = vpop.f32.mrf.mxu0 }
 0x423   : > { %6562 = vst.msk [vmem:[%s12877_s10 + $0x68] sm:$0xff] %vm667_vm2, %v6530_v12  ;;  %v6529_v19 = vmax.f32 %v6497_v51, 0.0  ;;  %v6500_v9 = vadd.f32 %v12856_v59, %v6461_v8  ;;  %v6460_v20 = vadd.f32 %v6357_v14, %v6169_v52  ;;  %v13556_v52 = vld [vmem:[#allocation52_spill] sm:$0xff]  ;;  %v13558_v8 = vld [vmem:[#allocation102_spill] sm:$0xff] }
 0x424   : > { %v9593_v16 = vpop.f32.mrf.mxu1  ;;  %v5887_v42 = vadd.f32 %v13558_v8, %v5562_v5  ;;  %v13559_v14 = vld [vmem:[#allocation94_spill] sm:$0xff]  ;;  %v6126_v41 = vpop.f32.mrf.mxu0  ;;  %v13574_v8 = vld [vmem:[#allocation56_spill] sm:$0xff] }
 0x425   : > { %6561 = vst.msk [vmem:[%s12877_s10 + $0x60] sm:$0xff] %vm667_vm2, %v6529_v19  ;;  %v6532_v35 = vmax.f32 %v6500_v9, 0.0  ;;  %v6499_v3 = vadd.f32 %v12856_v59, %v6460_v20  ;;  %v6463_v62 = vadd.f32 %v9593_v16, %v6172_v29  ;;  %9623 = vmatprep.mubr.msk.f32.mxu0 %vm667_vm2, %v6529_v19  ;;  %v13560_v29 = vld [vmem:[#allocation58_spill] sm:$0xff]  ;;  %v13562_v16 = vld [vmem:[#allocation19_spill] sm:$0xff] }
 0x426   : > { %v6367_v53 = vpop.f32.mrf.mxu1  ;;  %9624 = vmatmul.mubr.msk.f32.gmra.mxu0 %vm667_vm2, %v6530_v12  ;;  %v13557_v12 = vld [vmem:[#allocation21_spill] sm:$0xff]  ;;  %v5564_v19 = vadd.f32 %v13560_v29, %v13559_v14  ;;  %v13561_v9 = vld [vmem:[#allocation26_spill] sm:$0xff]  ;;  %v6178_v13 = vadd.f32 %v12948_v31, %v5887_v42  ;;  %v13575_v42 = vld [vmem:[#allocation39_spill] sm:$0xff] }
 0x427   : > { %6564 = vst.msk [vmem:[%s12877_s10 + $0x78] sm:$0xff] %vm667_vm2, %v6532_v35  ;;  %v6531_v2 = vmax.f32 %v6499_v3, 0.0  ;;  %v6502_v37 = vadd.f32 %v12856_v59, %v6463_v62  ;;  %v6462_v61 = vadd.f32 %v6367_v53, %v6171_v58  ;;  %v5561_v51 = vadd.f32 %v13557_v12, %v13556_v52  ;;  %v13563_v58 = vld [vmem:[#allocation61_spill] sm:$0xff]  ;;  %v13564_v3 = vld [vmem:[#allocation66_spill] sm:$0xff] }
 0x428   : > { %v9596_v10 = vpop.f32.mrf.mxu1  ;;  %v5889_v62 = vadd.f32 %v13564_v3, %v5564_v19  ;;  %v13566_v53 = vld [vmem:[#allocation98_spill] sm:$0xff]  ;;  %v13577_v19 = vld [vmem:[#allocation97_spill] sm:$0xff] }
 0x429   : > { %6563 = vst.msk [vmem:[%s12877_s10 + $0x70] sm:$0xff] %vm667_vm2, %v6531_v2  ;;  %v6534_v36 = vmax.f32 %v6502_v37, 0.0  ;;  %v6501_v15 = vadd.f32 %v12856_v59, %v6462_v61  ;;  %v6465_v54 = vadd.f32 %v9596_v10, %v6174_v32  ;;  %9626 = vmatprep.mubr.msk.f32.mxu0 %vm667_vm2, %v6531_v2  ;;  %v5886_v20 = vadd.f32 %v13561_v9, %v5561_v51  ;;  %v13567_v2 = vld [vmem:[#allocation103_spill] sm:$0xff]  ;;  %v9561_v61 = vpop.f32.mrf.mxu0  ;;  %v13569_v10 = vld [vmem:[#allocation113_spill] sm:$0xff]  ;;  %v13578_v9 = vld [vmem:[#allocation60_spill] sm:$0xff] }
 0x42a   : > { %v6377_v17 = vpop.f32.mrf.mxu1  ;;  %9627 = vmatmul.mubr.msk.f32.gmra.mxu0 %vm667_vm2, %v6532_v35  ;;  %v5563_v35 = vadd.f32 %v13563_v58, %v13562_v16  ;;  %v5566_v32 = vadd.f32 %v13566_v53, %v13565_v24  ;;  %v13579_v58 = vld [vmem:[#allocation22_spill] sm:$0xff] }
 0x42b   : > { %6566 = vst.msk [vmem:[%s12877_s10 + $0x88] sm:$0xff] %vm667_vm2, %v6534_v36  ;;  %v6533_v4 = vmax.f32 %v6501_v15, 0.0  ;;  %v6504_v33 = vadd.f32 %v12856_v59, %v6465_v54  ;;  %v6464_v6 = vadd.f32 %v6377_v17, %v6173_v26  ;;  %v6177_v7 = vadd.f32 %v12966_v56, %v5886_v20 }
 0x42c   : > { %v9599_v28 = vpop.f32.mrf.mxu1  ;;  %v5888_v37 = vadd.f32 %v13567_v2, %v5563_v35  ;;  %v6180_v56 = vadd.f32 %v12985_v27, %v5889_v62  ;;  %v5565_v26 = vadd.f32 %v13569_v10, %v13568_v50  ;;  %v5568_v17 = vadd.f32 %v13572_v39, %v13571_v55  ;;  %v13580_v35 = vld [vmem:[#allocation59_spill] sm:$0xff] }
 0x42d   : > { %6565 = vst.msk [vmem:[%s12877_s10 + $0x80] sm:$0xff] %vm667_vm2, %v6533_v4  ;;  %v6536_v38 = vmax.f32 %v6504_v33, 0.0  ;;  %v6503_v48 = vadd.f32 %v12856_v59, %v6464_v6  ;;  %v6467_v40 = vadd.f32 %v9599_v28, %v6176_v43  ;;  %9645 = vmatprep.mubr.msk.f32.mxu0 %vm667_vm2, %v6533_v4  ;;  %v13573_v43 = vld [vmem:[#allocation68_spill] sm:$0xff]  ;;  %v6136_v33 = vpop.f32.mrf.mxu0  ;;  %v5567_v28 = vadd.f32 %v13575_v42, %v13574_v8 }
 0x42e   : > { %v6387_v1 = vpop.f32.mrf.mxu1  ;;  %9646 = vmatmul.mubr.msk.f32.vlgmr.msra.gmra.mxu0 %vm667_vm2, %v6534_v36  ;;  %v13570_v36 = vld [vmem:[#allocation42_spill] sm:$0xff]  ;;  %v6179_v23 = vadd.f32 %v13003_v18, %v5888_v37  ;;  %v5890_v4 = vadd.f32 %v13573_v43, %v5565_v26  ;;  %v5570_v20 = vadd.f32 %v13578_v9, %v13577_v19  ;;  %v5569_v3 = vadd.f32 %v13580_v35, %v13579_v58  ;;  %v8074_v19 = vld [vmem:[%s13216_s6] ss:$0 sm:$0xff] }
 0x42f   : > { %6568 = vst.msk [vmem:[%s12877_s10 + $0x98] sm:$0xff] %vm667_vm2, %v6536_v38  ;;  %v6535_v60 = vmax.f32 %v6503_v48, 0.0  ;;  %v6506_v47 = vadd.f32 %v12856_v59, %v6467_v40  ;;  %v6466_v45 = vadd.f32 %v6387_v1, %v6175_v46  ;;  %v5891_v15 = vadd.f32 %v13570_v36, %v5566_v32  ;;  %v13576_v46 = vld [vmem:[#allocation67_spill] sm:$0xff] }
 0x430   : > { %v9602_v22 = vpop.f32.mrf.mxu1  ;;  %v6181_v40 = vadd.f32 %v6126_v41, %v5890_v4  ;;  %v5892_v1 = vadd.f32 %v12839_v57, %v5567_v28  ;;  %v5895_v62 = vadd.f32 %v12843_v63, %v5570_v20 }
 0x431   : > { %6567 = vst.msk [vmem:[%s12877_s10 + $0x90] sm:$0xff] %vm667_vm2, %v6535_v60  ;;  %v6538_v11 = vmax.f32 %v6506_v47, 0.0  ;;  %v6505_v31 = vadd.f32 %v12856_v59, %v6466_v45  ;;  %v6469_v44 = vadd.f32 %v9602_v22, %v6178_v13  ;;  %9648 = vmatprep.mubr.msk.f32.mxu0 %vm667_vm2, %v6535_v60  ;;  %v6182_v52 = vadd.f32 %v9558_v21, %v5891_v15  ;;  %v9564_v13 = vpop.f32.mrf.mxu0 }
 0x432   : > { %v6397_v0 = vpop.f32.mrf.mxu1  ;;  %9649 = vmatmul.mubr.msk.f32.gmra.mxu0 %vm667_vm2, %v6536_v38  ;;  %v5893_v38 = vadd.f32 %v13576_v46, %v5568_v17  ;;  %v6186_v2 = vadd.f32 %v9564_v13, %v5895_v62 }
 0x433   : > { %6570 = vst.msk [vmem:[%s12877_s10 + $0xa8] sm:$0xff] %vm667_vm2, %v6538_v11  ;;  %v6537_v49 = vmax.f32 %v6505_v31, 0.0  ;;  %v6508_v25 = vadd.f32 %v12856_v59, %v6469_v44  ;;  %v6468_v30 = vadd.f32 %v6397_v0, %v6177_v7  ;;  %v6183_v7 = vadd.f32 %v6136_v33, %v5892_v1  ;;  %v13581_v44 = vld [vmem:[#allocation27_spill] sm:$0xff]  ;;  %v6146_v53 = vpop.f32.mrf.mxu0 }
 0x434   : > { %v9605_v54 = vpop.f32.mrf.mxu1  ;;  %v6184_v47 = vadd.f32 %v9561_v61, %v5893_v38  ;;  %v5894_v24 = vadd.f32 %v13581_v44, %v5569_v3 }
 0x435   : > { %6569 = vst.msk [vmem:[%s12877_s10 + $0xa0] sm:$0xff] %vm667_vm2, %v6537_v49  ;;  %v6540_v34 = vmax.f32 %v6508_v25, 0.0  ;;  %v6507_v27 = vadd.f32 %v12856_v59, %v6468_v30  ;;  %v6471_v5 = vadd.f32 %v9605_v54, %v6180_v56  ;;  %9651 = vmatprep.mubr.msk.f32.mxu0 %vm667_vm2, %v6537_v49 }
 0x436   : > { %v6407_v6 = vpop.f32.mrf.mxu1  ;;  %9652 = vmatmul.mubr.msk.f32.gmra.mxu0 %vm667_vm2, %v6538_v11  ;;  %v6185_v56 = vadd.f32 %v6146_v53, %v5894_v24 }
 0x437   : > { %6572 = vst.msk [vmem:[%s12877_s10 + $0xb8] sm:$0xff] %vm667_vm2, %v6540_v34  ;;  %v6539_v18 = vmax.f32 %v6507_v27, 0.0  ;;  %v6510_v12 = vadd.f32 %v12856_v59, %v6471_v5  ;;  %v6470_v51 = vadd.f32 %v6407_v6, %v6179_v23 }
 0x438   : > { %v9608_v48 = vpop.f32.mrf.mxu1 }
 0x439   : > { %6571 = vst.msk [vmem:[%s12877_s10 + $0xb0] sm:$0xff] %vm667_vm2, %v6539_v18  ;;  %v6542_v14 = vmax.f32 %v6510_v12, 0.0  ;;  %v6509_v29 = vadd.f32 %v12856_v59, %v6470_v51  ;;  %v6473_v21 = vadd.f32 %v9608_v48, %v6182_v52  ;;  %9654 = vmatprep.mubr.msk.f32.mxu0 %vm667_vm2, %v6539_v18 }
 0x43a   : > { %v6417_v60 = vpop.f32.mrf.mxu1  ;;  %9655 = vmatmul.mubr.msk.f32.gmra.mxu0 %vm667_vm2, %v6540_v34 }
 0x43b   : > { %6574 = vst.msk [vmem:[%s12877_s10 + $0xc8] sm:$0xff] %vm667_vm2, %v6542_v14  ;;  %v6541_v41 = vmax.f32 %v6509_v29, 0.0  ;;  %v6512_v45 = vadd.f32 %v12856_v59, %v6473_v21  ;;  %v6472_v16 = vadd.f32 %v6417_v60, %v6181_v40 }
 0x43c   : > { %v9611_v22 = vpop.f32.mrf.mxu1 }
 0x43d   : > { %6573 = vst.msk [vmem:[%s12877_s10 + $0xc0] sm:$0xff] %vm667_vm2, %v6541_v41  ;;  %v6544_v57 = vmax.f32 %v6512_v45, 0.0  ;;  %v6511_v11 = vadd.f32 %v12856_v59, %v6472_v16  ;;  %v6475_v31 = vadd.f32 %v9611_v22, %v6184_v47  ;;  %9659 = vmatprep.mubr.msk.f32.mxu1 %vm667_vm2, %v6541_v41 }
 0x43e   : > { %v6427_v32 = vpop.f32.mrf.mxu1  ;;  %9660 = vmatmul.mubr.msk.f32.vlgmr.msra.gmra.mxu1 %vm667_vm2, %v6542_v14 }
 0x43f   : > { %6576 = vst.msk [vmem:[%s12877_s10 + $0xd8] sm:$0xff] %vm667_vm2, %v6544_v57  ;;  %v6543_v63 = vmax.f32 %v6511_v11, 0.0  ;;  %v6514_v37 = vadd.f32 %v12856_v59, %v6475_v31  ;;  %v6474_v61 = vadd.f32 %v6427_v32, %v6183_v7 }
 0x440   : > { %v9614_v0 = vpop.f32.mrf.mxu1 }
 0x441   : > { %6575 = vst.msk [vmem:[%s12877_s10 + $0xd0] sm:$0xff] %vm667_vm2, %v6543_v63  ;;  %v6546_v49 = vmax.f32 %v6514_v37, 0.0  ;;  %v6513_v25 = vadd.f32 %v12856_v59, %v6474_v61  ;;  %v6477_v30 = vadd.f32 %v9614_v0, %v6186_v2  ;;  %9662 = vmatprep.mubr.msk.f32.mxu1 %vm667_vm2, %v6543_v63 }
 0x442   : > { %v6437_v50 = vpop.f32.mrf.mxu1  ;;  %9663 = vmatmul.mubr.msk.f32.gmra.mxu1 %vm667_vm2, %v6544_v57 }
 0x443   : > { %6578 = vst.msk [vmem:[%s12877_s10 + $0xe8] sm:$0xff] %vm667_vm2, %v6546_v49  ;;  %v6545_v10 = vmax.f32 %v6513_v25, 0.0  ;;  %v6516_v26 = vadd.f32 %v12856_v59, %v6477_v30  ;;  %v6476_v36 = vadd.f32 %v6437_v50, %v6185_v56 }
 0x445   : > { %6577 = vst.msk [vmem:[%s12877_s10 + $0xe0] sm:$0xff] %vm667_vm2, %v6545_v10  ;;  %v6548_v15 = vmax.f32 %v6516_v26, 0.0  ;;  %v6515_v54 = vadd.f32 %v12856_v59, %v6476_v36  ;;  %9665 = vmatprep.mubr.msk.f32.mxu1 %vm667_vm2, %v6545_v10 }
 0x446   : > { %9666 = vmatmul.mubr.msk.f32.gmra.mxu1 %vm667_vm2, %v6546_v49 }
 0x447   : > { %6580 = vst.msk [vmem:[%s12877_s10 + $0xf8] sm:$0xff] %vm667_vm2, %v6548_v15  ;;  %v6547_v23 = vmax.f32 %v6515_v54, 0.0 }
 0x449   : > { %6579 = vst.msk [vmem:[%s12877_s10 + $0xf0] sm:$0xff] %vm667_vm2, %v6547_v23  ;;  %9668 = vmatprep.mubr.msk.f32.mxu1 %vm667_vm2, %v6547_v23 }
 0x44a   : > { %9669 = vmatmul.mubr.msk.f32.gmra.mxu1 %vm667_vm2, %v6548_v15 }
 0x4ce   : > { %v9633_v27 = vpop.f32.mrf.mxu1 }
 0x4d0   : > { %v6803_v39 = vpop.f32.mrf.mxu1 }
 0x4d2   : > { %v9636_v43 = vpop.f32.mrf.mxu1 }
 0x4d4   : > { %v6813_v6 = vpop.f32.mrf.mxu1 }
 0x4d6   : > { %v9639_v12 = vpop.f32.mrf.mxu1 }
 0x4d8   : > { %v6823_v8 = vpop.f32.mrf.mxu1 }
 0x4da   : > { %v9642_v28 = vpop.f32.mrf.mxu1 }
 0x4dc   : > { %v6833_v48 = vpop.f32.mrf.mxu1 }
 0x4de   : > { %v9619_v34 = vpop.f32.mrf.mxu0 }
 0x4df   : > { %v6809_v38 = vadd.f32 %v9633_v27, %v9619_v34 }
 0x4e0   : > { %v6674_v5 = vpop.f32.mrf.mxu0 }
 0x4e1   : > { %v6804_v14 = vadd.f32 %v6803_v39, %v6674_v5 }
 0x4e2   : > { %v9622_v55 = vpop.f32.mrf.mxu0 }
 0x4e3   : > { %v6819_v9 = vadd.f32 %v9636_v43, %v9622_v55 }
 0x4e4   : > { %v6684_v17 = vpop.f32.mrf.mxu0 }
 0x4e5   : > { %v6814_v47 = vadd.f32 %v6813_v6, %v6684_v17 }
 0x4e6   : > { %v9625_v59 = vpop.f32.mrf.mxu0 }
 0x4e7   : > { %v6829_v35 = vadd.f32 %v9639_v12, %v9625_v59 }
 0x4e8   : > { %v6694_v4 = vpop.f32.mrf.mxu0 }
 0x4e9   : > { %v6824_v11 = vadd.f32 %v6823_v8, %v6694_v4 }
 0x4ea   : > { %v9628_v33 = vpop.f32.mrf.mxu0 }
 0x4eb   : > { %v6839_v32 = vadd.f32 %v9642_v28, %v9628_v33 }
 0x4ec   : > { %v6704_v52 = vpop.f32.mrf.mxu0 }
 0x4ed   : > { %v6834_v56 = vadd.f32 %v6833_v48, %v6704_v52 }
 0x4ee   : > { %v9647_v18 = vpop.f32.mrf.mxu0 }
 0x4ef   : > { %v6974_v29 = vadd.f32 %v9647_v18, %v6809_v38 }
 0x4f0   : > { %v6934_v51 = vpop.f32.mrf.mxu0 }
 0x4f1   : > { %v6973_v20 = vadd.f32 %v6934_v51, %v6804_v14 }
 0x4f2   : > { %v9650_v42 = vpop.f32.mrf.mxu0 }
 0x4f3   : > { %v6976_v41 = vadd.f32 %v9650_v42, %v6819_v9 }
 0x4f4   : > { %v6944_v46 = vpop.f32.mrf.mxu0 }
 0x4f5   : > { %v6975_v3 = vadd.f32 %v6944_v46, %v6814_v47 }
 0x4f6   : > { %v9653_v40 = vpop.f32.mrf.mxu0 }
 0x4f7   : > { %v6978_v31 = vadd.f32 %v9653_v40, %v6829_v35 }
 0x4f8   : > { %v6954_v13 = vpop.f32.mrf.mxu0 }
 0x4f9   : > { %v6977_v2 = vadd.f32 %v6954_v13, %v6824_v11 }
 0x4fa   : > { %v9656_v7 = vpop.f32.mrf.mxu0 }
 0x4fb   : > { %v6980_v49 = vadd.f32 %v9656_v7, %v6839_v32 }
 0x4fc   : > { %v6964_v61 = vpop.f32.mrf.mxu0 }
 0x4fd   : > { %v6979_v10 = vadd.f32 %v6964_v61, %v6834_v56 }
 0x4fe   : > { %v9661_v21 = vpop.f32.mrf.mxu1 }
 0x4ff   : > { %v7113_v1 = vadd.f32 %v9661_v21, %v6974_v29 }
 0x500   : > { %v7073_v60 = vpop.f32.mrf.mxu1 }
 0x501   : > { %v7128_v45 = vadd.f32 %v8074_v19, %v7113_v1  ;;  %v7112_v16 = vadd.f32 %v7073_v60, %v6973_v20 }
 0x502   : > { %v9664_v58 = vpop.f32.mrf.mxu1 }
 0x503   : > { %7136 = vst.msk [vmem:[%s13122_s19 + $0x8] sm:$0xff] %vm667_vm2, %v7128_v45  ;;  %v7127_v62 = vadd.f32 %v8074_v19, %v7112_v16  ;;  %v7115_v22 = vadd.f32 %v9664_v58, %v6976_v41 }
 0x504   : > { %v7083_v57 = vpop.f32.mrf.mxu1 }
 0x505   : > { %7135 = vst.msk [vmem:[%s13122_s19] sm:$0xff] %vm667_vm2, %v7127_v62  ;;  %v7130_v44 = vadd.f32 %v8074_v19, %v7115_v22  ;;  %v7114_v24 = vadd.f32 %v7083_v57, %v6975_v3 }
 0x506   : > { %v9667_v53 = vpop.f32.mrf.mxu1 }
 0x507   : > { %7138 = vst.msk [vmem:[%s13122_s19 + $0x18] sm:$0xff] %vm667_vm2, %v7130_v44  ;;  %v7129_v63 = vadd.f32 %v8074_v19, %v7114_v24  ;;  %v7117_v37 = vadd.f32 %v9667_v53, %v6978_v31 }
 0x508   : > { %v7093_v0 = vpop.f32.mrf.mxu1 }
 0x509   : > { %7137 = vst.msk [vmem:[%s13122_s19 + $0x10] sm:$0xff] %vm667_vm2, %v7129_v63  ;;  %v7132_v25 = vadd.f32 %v8074_v19, %v7117_v37  ;;  %v7116_v30 = vadd.f32 %v7093_v0, %v6977_v2 }
 0x50a   : > { %v9670_v50 = vpop.f32.mrf.mxu1 }
 0x50b   : > { %7140 = vst.msk [vmem:[%s13122_s19 + $0x28] sm:$0xff] %vm667_vm2, %v7132_v25  ;;  %v7131_v26 = vadd.f32 %v8074_v19, %v7116_v30  ;;  %v7119_v36 = vadd.f32 %v9670_v50, %v6980_v49 }
 0x50c   : > { %v7103_v15 = vpop.f32.mrf.mxu1 }
 0x50d   : > { %7139 = vst.msk [vmem:[%s13122_s19 + $0x20] sm:$0xff] %vm667_vm2, %v7131_v26  ;;  %v7134_v54 = vadd.f32 %v8074_v19, %v7119_v36  ;;  %v7118_v23 = vadd.f32 %v7103_v15, %v6979_v10 }
 0x50f   : > { %7142 = vst.msk [vmem:[%s13122_s19 + $0x38] sm:$0xff] %vm667_vm2, %v7134_v54  ;;  %v7133_v34 = vadd.f32 %v8074_v19, %v7118_v23 }
 0x511   : > { %7141 = vst.msk [vmem:[%s13122_s19 + $0x30] sm:$0xff] %vm667_vm2, %v7133_v34 }
 0x512   : > { %s8083_s21 = sshll.u32 %s7300_s9, 10  ;;  %s7172_s23 = sshll.u32 %s12877_s10, 4  ;;  %s7173_s23 = int_to_ptr.vmem [resolvable:$true] %s7172_s23 }
 0x513   : > { %s7161_s26 = scalar_lea.hbm %s13217_s7, %s8083_s21  ;;  %s9800_s13 = smov 1024  }
 0x514   : > { %9674 = sst [smem:[#allocation9]] (%p9892_p6), %s9800_s13  ;;  %s9801_s17 = smov 2048  }
 0x515   : > { %9675 = sst [smem:[#allocation9 + $0x1]] (%p9892_p6), %s9801_s17  ;;  %s9802_s18 = smov 8  }
 0x516   : > { %9676 = sst [smem:[#allocation9 + $0x2]] (%p9892_p6), %s9802_s18  ;;  %s9803_s22 = smov 128  }
 0x517   : > { %9677 = sst [smem:[#allocation9 + $0x3]] (%p9892_p6), %s9803_s22  ;;  %s9804_s9 = smov 131072  }
 0x518   : > { %9678 = sst [smem:[#allocation9 + $0x4]] (%p9892_p6), %s9803_s22  ;;  %s9805_s10 = smov 0  }
 0x519   : > { %9679 = sst [smem:[#allocation9 + $0x5]] (%p9892_p6), %s9802_s18  ;;  %s13165_s13 = scalar_lea.hbm %s13218_s8, %s8083_s21 }
 0x51a   : > { %9680 = dma.general (%p9892_p6), %s7173_s23, 4096, %s7161_s26, %s7144_s20, %s9804_s9, [#allocation9], %s9805_s10, 0  }
 0x51b   : > { %s7201_s17 = sshll.u32 %s13122_s19, 4  ;;  %s9806_s18 = smov [#allocation6]   ;;  %s13168_s17 = int_to_ptr.vmem [resolvable:$true] %s7201_s17 }
 0x51c   : > { %s9733_s22 = scalar_lea.vmem %s13168_s17, 1024  ;;  %s9737_s20 = sshll.u32 %s9806_s18, 4  ;;  %s9738_s20 = int_to_ptr.vmem [resolvable:$false] %s9737_s20 }
 0x51d   : > { %p9734_p13 = scmp.ne.s32.totalorder %s13168_s17, %s9733_s22  ;;  %s9739_s23 = scalar_lea.vmem %s9738_s20, 2048 }
 0x51e   : > { %p9740_p2 = scmp.lt.s32.totalorder %s13168_s17, %s9738_s20  ;;  %p9741_p3 = scmp.lt.s32.totalorder %s9739_s23, %s9733_s22 }
 0x51f   : > { %p9735_p0 = pnand %p9734_p13, %p9892_p6 }
 0x520   : > { %p9742_p4 = por %p9741_p3, %p9740_p2 }
 0x521   : > { %p9736_p1 = pneg %p9735_p0 }
 0x523   : > { %p9743_p5 = pnand %p9742_p4, %p9736_p1 }
 0x525   : > { %9746 = shalt.err (!%p9743_p5)
}
 0x526   : > { %s9747_s19 = scalar_lea.hbm %s13165_s13, 1024  ;;  %s9751_s9 = scalar_lea.hbm %s13218_s8, 2048 }
 0x527   : > { %p9748_p7 = scmp.ne.s32.totalorder %s13165_s13, %s9747_s19  ;;  %p9752_p12 = scmp.lt.s32.totalorder %s13165_s13, %s13218_s8 }
 0x528   : > { %p9753_p13 = scmp.lt.s32.totalorder %s9751_s9, %s9747_s19 }
 0x529   : > { %p9749_p10 = pnand %p9748_p7, %p9892_p6 }
 0x52a   : > { %p9754_p0 = por %p9753_p13, %p9752_p12 }
 0x52b   : > { %p9750_p11 = pneg %p9749_p10 }
 0x52d   : > { %p9755_p1 = pnand %p9754_p0, %p9750_p11 }
 0x52f   : > { %9758 = shalt.err (!%p9755_p1)
}
 0x530   : > { %s9807_s25 = smov 128   ;;  %s9808_s22 = smov 8  }
 0x531   : > { %s13582_s18 = scalar_lea.sflag [#allocation7], %s10081_s12 }
 0x532   : > { %9681 = dma.vmem_to_hbm [thread:$0]  (%p9892_p6), %s13168_s17, 1024, %s13165_s13, %s13582_s18, %s9807_s25, %s9807_s25, %s9808_s22  }
 0x533 PF: > { %s7216_s20 = sand.u32 1, %s9785_s27   ;;  %p9685_p2 = pnand %p7303_p9, %p9896_p8 }
 0x534   : > { %s7217_s23 = scalar_lea.sflag [#allocation5], %s7216_s20 }
 0x535   : > { %p9686_p3 = pneg %p9685_p2 }
 0x537   : > { %9776 = dma.done.wait (%p9686_p3), %s7217_s23, 4096  }
 0x538   : > { %9778 = vsyncadd (%p9686_p3), %s7217_s23, 4294963200  ;;  %s7226_s19 = scalar_lea.sflag [#allocation7], %s7216_s20 }
 0x539   : > { %9780 = dma.done.wait (%p9686_p3), %s7226_s19, 1024  }
 0x53a   : > { %9782 = vsyncadd (%p9686_p3), %s7226_s19, 4294966272  ;;  %p22_p6 = scmp.ge.s32.totalorder %s9877_s11, 4   ;;  %s13583_s27 = smov %s9789_s28 }
 0x53b   : > { %s13584_s28 = smov %s9793_s29  ;;  %s13585_s29 = smov %s9890_s14 }
 0x53c   : > { %s13586_s30 = smov %s9877_s11  ;;  %24 = sbr.rel (!%p22_p6) target bundleno = 5 (0x5), region = 184 }
 0x541   :  { %7231 = vsyncpa [#allocation5], 1 }
 0x542   :  { %7233 = vsyncpa [#allocation5 + $0x1], 1 }
 0x543   :  { %7234 = vsyncpa [#allocation7], 1 }
 0x544   :  { %7236 = vsyncpa [#allocation7 + $0x1], 1 }

</bundles_post_ra>
